<compile_context>
chip_gen: v6e
topology: v6e:2x2x1
jax: 0.10.0
libtpu: 0.0.40
codegen_flags: <defaults>
</compile_context>

<pallas_src>
import functools

import jax
import jax.numpy as jnp
from jax.experimental import pallas as pl
from jax.experimental.pallas import tpu as pltpu

DIM_OUT = 64
HIDDEN_DEC = 128
WEIGHT_DTYPE = jnp.bfloat16   # bf16 weights, f32 accumulation

# Layers after O_enc, flattened in this fixed order into pallas_call operands.
_TAIL_LAYERS = ("W_enc", "O_proj1", "O_proj2", "D_o1", "D_o2", "W_proj", "D_w")


# ----------------------------------------------------------------------------
# Fused kernel: entire ClipClap forward for one batch tile.
# ----------------------------------------------------------------------------
def _clipclap_fused_kernel(
    v_ref, a_ref, wclip_ref,
    w_oev, w_oea, b_oe,          # O_enc (split: video half / audio half)
    w_we, b_we,                  # W_enc
    w_op1, b_op1, w_op2, b_op2,  # O_proj (2 layers)
    w_do1, b_do1, w_do2, b_do2,  # D_o    (2 layers)
    w_wp, b_wp,                  # W_proj
    w_dw, b_dw,                  # D_w
    theta_ref, we_ref, rho_w_ref, rho_o_ref,
):
    cdt = w_oev.dtype  # matmul input dtype (bf16)

    def layer(x, wt_ref, b_ref):
        y = jnp.dot(x.astype(cdt), wt_ref[...],
                    preferred_element_type=jnp.float32)
        return jnp.maximum(y + b_ref[...], 0.0)

    # --- O_enc on concat(v, a): split matmul, concat never materialized ------
    v = v_ref[...].astype(cdt)
    a = a_ref[...].astype(cdt)
    o_pre = (jnp.dot(v, w_oev[...], preferred_element_type=jnp.float32)
             + jnp.dot(a, w_oea[...], preferred_element_type=jnp.float32))
    o = jnp.maximum(o_pre + b_oe[...], 0.0)                        # (TB, 512)

    # --- W_enc on 'clip' word embeddings (column block delivered by BlockSpec)
    w_e = layer(wclip_ref[...], w_we, b_we)                        # (TB, 512)

    # --- O branch: O_proj (2 layers) -> D_o (2 layers) ------------------------
    h = layer(o, w_op1, b_op1)                                     # (TB, 128)
    theta_o = layer(h, w_op2, b_op2)                               # (TB, 64)
    h = layer(theta_o, w_do1, b_do1)                               # (TB, 128)
    rho_o = layer(h, w_do2, b_do2)                                 # (TB, 512)

    # --- W branch: W_proj -> D_w ----------------------------------------------
    theta_w = layer(w_e, w_wp, b_wp)                               # (TB, 64)
    rho_w = layer(theta_w, w_dw, b_dw)                             # (TB, 512)

    # Lane-dense packed store: [theta_o | theta_w] -> (TB, 128).
    theta_ref[...] = jnp.concatenate([theta_o, theta_w],
                                     axis=1).astype(theta_ref.dtype)
    we_ref[...] = w_e.astype(we_ref.dtype)
    rho_w_ref[...] = rho_w.astype(rho_w_ref.dtype)
    rho_o_ref[...] = rho_o.astype(rho_o_ref.dtype)


def _const_spec(shape):
    """Full-array block whose block index never changes -> fetched once."""
    ndim = len(shape)
    return pl.BlockSpec(shape, lambda i, _n=ndim: (0,) * _n)


def clipclap_forward(params, a, v, w, *, tile_b=None):
    """modality='both', word_embeddings='clip', use_mhsa=False, eval-mode BN.

    (The PyTorch forward's `masks` / `timesteps` args are unused by the model.)
    """
    B = a.shape[0]
    v = v.astype(jnp.float32)

    # ---- batch tile size ------------------------------------------------------
    if tile_b is None:
        tile_b = 256
    tb = B if B <= tile_b else tile_b
    if tb < B:
        assert tb % 8 == 0, "batch tile must be a multiple of 8 when tiling"
    grid = (pl.cdiv(B, tb),)

    # ---- flatten params in the kernel's operand order -------------------------
    oe = params["O_enc"]
    flat = [oe["wt_v"], oe["wt_a"], oe["b"]]
    for name in _TAIL_LAYERS:
        flat.append(params[name]["wt"])
        flat.append(params[name]["b"])

    # ---- specs -----------------------------------------------------------------
    in_specs = [
        pl.BlockSpec((tb, 512), lambda i: (i, 0)),    # v  (B, 512)
        pl.BlockSpec((tb, 1024), lambda i: (i, 0)),   # a  (B, 1024)
        pl.BlockSpec((tb, 512), lambda i: (i, 0)),    # w  -> clip cols 0:512
    ] + [_const_spec(p.shape) for p in flat]

    out_shape = (
        jax.ShapeDtypeStruct((B, 2 * DIM_OUT), jnp.float32),  # [theta_o|theta_w]
        jax.ShapeDtypeStruct((B, 512), jnp.float32),          # w (encoded)
        jax.ShapeDtypeStruct((B, 512), jnp.float32),          # rho_w
        jax.ShapeDtypeStruct((B, 512), jnp.float32),          # rho_o
    )
    out_specs = [
        pl.BlockSpec((tb, 2 * DIM_OUT), lambda i: (i, 0)),
        pl.BlockSpec((tb, 512), lambda i: (i, 0)),
        pl.BlockSpec((tb, 512), lambda i: (i, 0)),
        pl.BlockSpec((tb, 512), lambda i: (i, 0)),
    ]

    # ---- VMEM budget: weights (x2 buffers) + double-buffered tile I/O + slack --
    weight_bytes = sum(p.size * p.dtype.itemsize for p in flat)
    tile_io_bytes = tb * (512 + 1024 + 512) * 4 + tb * (128 + 3 * 512) * 4
    vmem_limit = int(2 * weight_bytes + 4 * tile_io_bytes + (16 << 20))
    vmem_limit = min(vmem_limit, 56 << 20)   # stay under v7x's 64 MiB VMEM

    packed, w_e, rho_w, rho_o = pl.pallas_call(
        _clipclap_fused_kernel,
        out_shape=out_shape,
        grid=grid,
        in_specs=in_specs,
        out_specs=out_specs,
        compiler_params=pltpu.CompilerParams(
            dimension_semantics=("parallel",),   # megacore splits batch tiles
            vmem_limit_bytes=vmem_limit,
        ),
    )(v, a, w, *flat)

    theta_o = packed[:, :DIM_OUT]
    theta_w = packed[:, DIM_OUT:]
    return {
        "theta_w": theta_w,
        "w": w_e,
        "rho_w": rho_w,
        "theta_o": theta_o,
        "rho_o": rho_o,
    }


# ----------------------------------------------------------------------------
# Deterministic parameter construction with eval-mode BN folded into (wt, b).
# ----------------------------------------------------------------------------
def _init_layer(key, in_dim, out_dim):
    k1, k2, k3, k4, k5, k6 = jax.random.split(key, 6)
    wt = jax.random.normal(k1, (in_dim, out_dim), jnp.float32) / jnp.sqrt(
        jnp.float32(in_dim))
    b = 0.01 * jax.random.normal(k2, (out_dim,), jnp.float32)
    gamma = 1.0 + 0.1 * jax.random.normal(k3, (out_dim,), jnp.float32)
    beta = 0.1 * jax.random.normal(k4, (out_dim,), jnp.float32)
    rmean = 0.1 * jax.random.normal(k5, (out_dim,), jnp.float32)
    rvar = 1.0 + 0.1 * jnp.abs(jax.random.normal(k6, (out_dim,), jnp.float32))
    # eval-mode BN fold:  y = (x@wt + b)*s + t  ==  x@(wt*s) + (b*s + t)
    s = gamma / jnp.sqrt(rvar + 1e-5)
    t = beta - rmean * s
    wt_f = (wt * s[None, :]).astype(WEIGHT_DTYPE)
    b_f = (b * s + t).reshape(1, out_dim).astype(jnp.float32)
    return {"wt": wt_f, "b": b_f}


def build_params(key, dim_out=DIM_OUT, hidden_dec=HIDDEN_DEC):
    ks = jax.random.split(key, 8)
    o_enc = _init_layer(ks[0], 1536, 512)
    return {
        # O_enc weight stored pre-split: rows 0:512 multiply v, 512:1536 multiply a.
        "O_enc": {"wt_v": o_enc["wt"][:512], "wt_a": o_enc["wt"][512:],
                  "b": o_enc["b"]},
        "W_enc":   _init_layer(ks[1], 512, 512),
        "O_proj1": _init_layer(ks[2], 512, hidden_dec),
        "O_proj2": _init_layer(ks[3], hidden_dec, dim_out),
        "D_o1":    _init_layer(ks[4], dim_out, hidden_dec),
        "D_o2":    _init_layer(ks[5], hidden_dec, 512),
        "W_proj":  _init_layer(ks[6], 512, dim_out),
        "D_w":     _init_layer(ks[7], dim_out, 512),
    }


# ----------------------------------------------------------------------------
# Pure-JAX reference (same math: bf16 weights, f32 accumulation, BN folded).
# ----------------------------------------------------------------------------
def _ref_layer(x, p):
    y = jnp.dot(x.astype(p["wt"].dtype), p["wt"],
                preferred_element_type=jnp.float32)
    return jnp.maximum(y + p["b"], 0.0)


def clipclap_forward_ref(params, a, v, w):
    v = v.astype(jnp.float32)
    w_clip = w[:, :512]
    oe = params["O_enc"]
    cdt = oe["wt_v"].dtype
    o_pre = (jnp.dot(v.astype(cdt), oe["wt_v"], preferred_element_type=jnp.float32)
             + jnp.dot(a.astype(cdt), oe["wt_a"], preferred_element_type=jnp.float32))
    o = jnp.maximum(o_pre + oe["b"], 0.0)
    w_e = _ref_layer(w_clip, params["W_enc"])
    theta_o = _ref_layer(_ref_layer(o, params["O_proj1"]), params["O_proj2"])
    rho_o = _ref_layer(_ref_layer(theta_o, params["D_o1"]), params["D_o2"])
    theta_w = _ref_layer(w_e, params["W_proj"])
    rho_w = _ref_layer(theta_w, params["D_w"])
    return {
        "theta_w": theta_w,
        "w": w_e,
        "rho_w": rho_w,
        "theta_o": theta_o,
        "rho_o": rho_o,
    }


if __name__ == "__main__":
    key = jax.random.PRNGKey(0)
    k_params, k_a, k_v, k_w = jax.random.split(key, 4)

    B = 16          # small demo batch; multiple of 8 so sublanes are full
    TILE_B = 8      # forces a 2-tile grid to exercise the batch-tiled pipeline
    # audio features 1024-d (CLAP), video features 512-d (CLIP),
    # word embeddings 1536-d (clip 512 || wavcaps 1024).
    a = jax.random.normal(k_a, (B, 1024), jnp.float32)
    v = jax.random.normal(k_v, (B, 512), jnp.float32)
    w = jax.random.normal(k_w, (B, 1536), jnp.float32)

    params = build_params(k_params)

    fwd = jax.jit(clipclap_forward, static_argnames=("tile_b",))
    out = fwd(params, a, v, w, tile_b=TILE_B)
    out = jax.tree_util.tree_map(jax.block_until_ready, out)

    ref = clipclap_forward_ref(params, a, v, w)
    for name in ("theta_w", "w", "rho_w", "theta_o", "rho_o"):
        assert out[name].shape == ref[name].shape, name
        assert jnp.allclose(out[name], ref[name], atol=2e-3, rtol=2e-3), name

    print("KERNEL_OK")
</pallas_src>

<mosaic_0001>
module attributes {stable_mosaic.version = 11 : i64} {
  func.func @_clipclap_fused_kernel(%arg0: i32, %arg1: memref<8x512xf32, #tpu.memory_space<vmem>>, %arg2: memref<8x1024xf32, #tpu.memory_space<vmem>>, %arg3: memref<8x512xf32, #tpu.memory_space<vmem>>, %arg4: memref<512x512xbf16, #tpu.memory_space<vmem>>, %arg5: memref<1024x512xbf16, #tpu.memory_space<vmem>>, %arg6: memref<1x512xf32, #tpu.memory_space<vmem>>, %arg7: memref<512x512xbf16, #tpu.memory_space<vmem>>, %arg8: memref<1x512xf32, #tpu.memory_space<vmem>>, %arg9: memref<512x128xbf16, #tpu.memory_space<vmem>>, %arg10: memref<1x128xf32, #tpu.memory_space<vmem>>, %arg11: memref<128x64xbf16, #tpu.memory_space<vmem>>, %arg12: memref<1x64xf32, #tpu.memory_space<vmem>>, %arg13: memref<64x128xbf16, #tpu.memory_space<vmem>>, %arg14: memref<1x128xf32, #tpu.memory_space<vmem>>, %arg15: memref<128x512xbf16, #tpu.memory_space<vmem>>, %arg16: memref<1x512xf32, #tpu.memory_space<vmem>>, %arg17: memref<512x64xbf16, #tpu.memory_space<vmem>>, %arg18: memref<1x64xf32, #tpu.memory_space<vmem>>, %arg19: memref<64x512xbf16, #tpu.memory_space<vmem>>, %arg20: memref<1x512xf32, #tpu.memory_space<vmem>>, %arg21: memref<8x128xf32, #tpu.memory_space<vmem>>, %arg22: memref<8x512xf32, #tpu.memory_space<vmem>>, %arg23: memref<8x512xf32, #tpu.memory_space<vmem>>, %arg24: memref<8x512xf32, #tpu.memory_space<vmem>>) attributes {dimension_semantics = [#tpu.dimension_semantics<parallel>], iteration_bounds = array<i64: 2>, scalar_prefetch = 0 : i64, scratch_operands = 0 : i64, tpu.core_type = #tpu.core_type<tc>, window_params = [{transform_indices = @transform_0, window_bounds = array<i64: 8, 512>}, {transform_indices = @transform_1, window_bounds = array<i64: 8, 1024>}, {transform_indices = @transform_2, window_bounds = array<i64: 8, 512>}, {pipeline_mode = #tpu.pipeline_mode<synchronous>, transform_indices = @transform_3, window_bounds = array<i64: 512, 512>}, {pipeline_mode = #tpu.pipeline_mode<synchronous>, transform_indices = @transform_4, window_bounds = array<i64: 1024, 512>}, {pipeline_mode = #tpu.pipeline_mode<synchronous>, transform_indices = @transform_5, window_bounds = array<i64: 1, 512>}, {pipeline_mode = #tpu.pipeline_mode<synchronous>, transform_indices = @transform_6, window_bounds = array<i64: 512, 512>}, {pipeline_mode = #tpu.pipeline_mode<synchronous>, transform_indices = @transform_7, window_bounds = array<i64: 1, 512>}, {pipeline_mode = #tpu.pipeline_mode<synchronous>, transform_indices = @transform_8, window_bounds = array<i64: 512, 128>}, {pipeline_mode = #tpu.pipeline_mode<synchronous>, transform_indices = @transform_9, window_bounds = array<i64: 1, 128>}, {pipeline_mode = #tpu.pipeline_mode<synchronous>, transform_indices = @transform_10, window_bounds = array<i64: 128, 64>}, {pipeline_mode = #tpu.pipeline_mode<synchronous>, transform_indices = @transform_11, window_bounds = array<i64: 1, 64>}, {pipeline_mode = #tpu.pipeline_mode<synchronous>, transform_indices = @transform_12, window_bounds = array<i64: 64, 128>}, {pipeline_mode = #tpu.pipeline_mode<synchronous>, transform_indices = @transform_13, window_bounds = array<i64: 1, 128>}, {pipeline_mode = #tpu.pipeline_mode<synchronous>, transform_indices = @transform_14, window_bounds = array<i64: 128, 512>}, {pipeline_mode = #tpu.pipeline_mode<synchronous>, transform_indices = @transform_15, window_bounds = array<i64: 1, 512>}, {pipeline_mode = #tpu.pipeline_mode<synchronous>, transform_indices = @transform_16, window_bounds = array<i64: 512, 64>}, {pipeline_mode = #tpu.pipeline_mode<synchronous>, transform_indices = @transform_17, window_bounds = array<i64: 1, 64>}, {pipeline_mode = #tpu.pipeline_mode<synchronous>, transform_indices = @transform_18, window_bounds = array<i64: 64, 512>}, {pipeline_mode = #tpu.pipeline_mode<synchronous>, transform_indices = @transform_19, window_bounds = array<i64: 1, 512>}, {transform_indices = @transform_20, window_bounds = array<i64: 8, 128>}, {transform_indices = @transform_21, window_bounds = array<i64: 8, 512>}, {transform_indices = @transform_22, window_bounds = array<i64: 8, 512>}, {transform_indices = @transform_23, window_bounds = array<i64: 8, 512>}]} {
    %c0 = arith.constant 0 : index
    %c0_0 = arith.constant 0 : index
    %0 = vector.load %arg1[%c0, %c0_0] : memref<8x512xf32, #tpu.memory_space<vmem>>, vector<8x512xf32>
    %1 = arith.truncf %0 : vector<8x512xf32> to vector<8x512xbf16>
    %c0_1 = arith.constant 0 : index
    %c0_2 = arith.constant 0 : index
    %2 = vector.load %arg2[%c0_1, %c0_2] : memref<8x1024xf32, #tpu.memory_space<vmem>>, vector<8x1024xf32>
    %3 = arith.truncf %2 : vector<8x1024xf32> to vector<8x1024xbf16>
    %c0_3 = arith.constant 0 : index
    %c0_4 = arith.constant 0 : index
    %4 = vector.load %arg4[%c0_3, %c0_4] : memref<512x512xbf16, #tpu.memory_space<vmem>>, vector<512x512xbf16>
    %cst = arith.constant dense<0.000000e+00> : vector<8x512xf32>
    %5 = tpu.matmul %1, %4, %cst {dimension_numbers = #tpu.dot_dimension_numbers<[1], [0], [0], [1], [0, 0, 1, 1], [], []>} : vector<8x512xbf16>, vector<512x512xbf16>, vector<8x512xf32> -> vector<8x512xf32>
    %c0_5 = arith.constant 0 : index
    %c0_6 = arith.constant 0 : index
    %6 = vector.load %arg5[%c0_5, %c0_6] : memref<1024x512xbf16, #tpu.memory_space<vmem>>, vector<1024x512xbf16>
    %cst_7 = arith.constant dense<0.000000e+00> : vector<8x512xf32>
    %7 = tpu.matmul %3, %6, %cst_7 {dimension_numbers = #tpu.dot_dimension_numbers<[1], [0], [0], [1], [0, 0, 1, 1], [], []>} : vector<8x1024xbf16>, vector<1024x512xbf16>, vector<8x512xf32> -> vector<8x512xf32>
    %8 = arith.addf %5, %7 : vector<8x512xf32>
    %c0_8 = arith.constant 0 : index
    %c0_9 = arith.constant 0 : index
    %9 = vector.load %arg6[%c0_8, %c0_9] : memref<1x512xf32, #tpu.memory_space<vmem>>, vector<1x512xf32>
    %10 = vector.broadcast %9 : vector<1x512xf32> to vector<8x512xf32>
    %11 = arith.addf %8, %10 : vector<8x512xf32>
    %cst_10 = arith.constant 0.000000e+00 : f32
    %12 = vector.broadcast %cst_10 : f32 to vector<8x512xf32>
    %13 = arith.maximumf %11, %12 : vector<8x512xf32>
    %c0_11 = arith.constant 0 : index
    %c0_12 = arith.constant 0 : index
    %14 = vector.load %arg3[%c0_11, %c0_12] : memref<8x512xf32, #tpu.memory_space<vmem>>, vector<8x512xf32>
    %15 = arith.truncf %14 : vector<8x512xf32> to vector<8x512xbf16>
    %c0_13 = arith.constant 0 : index
    %c0_14 = arith.constant 0 : index
    %16 = vector.load %arg7[%c0_13, %c0_14] : memref<512x512xbf16, #tpu.memory_space<vmem>>, vector<512x512xbf16>
    %cst_15 = arith.constant dense<0.000000e+00> : vector<8x512xf32>
    %17 = tpu.matmul %15, %16, %cst_15 {dimension_numbers = #tpu.dot_dimension_numbers<[1], [0], [0], [1], [0, 0, 1, 1], [], []>} : vector<8x512xbf16>, vector<512x512xbf16>, vector<8x512xf32> -> vector<8x512xf32>
    %c0_16 = arith.constant 0 : index
    %c0_17 = arith.constant 0 : index
    %18 = vector.load %arg8[%c0_16, %c0_17] : memref<1x512xf32, #tpu.memory_space<vmem>>, vector<1x512xf32>
    %19 = vector.broadcast %18 : vector<1x512xf32> to vector<8x512xf32>
    %20 = arith.addf %17, %19 : vector<8x512xf32>
    %cst_18 = arith.constant 0.000000e+00 : f32
    %21 = vector.broadcast %cst_18 : f32 to vector<8x512xf32>
    %22 = arith.maximumf %20, %21 : vector<8x512xf32>
    %23 = arith.truncf %13 : vector<8x512xf32> to vector<8x512xbf16>
    %c0_19 = arith.constant 0 : index
    %c0_20 = arith.constant 0 : index
    %24 = vector.load %arg9[%c0_19, %c0_20] : memref<512x128xbf16, #tpu.memory_space<vmem>>, vector<512x128xbf16>
    %cst_21 = arith.constant dense<0.000000e+00> : vector<8x128xf32>
    %25 = tpu.matmul %23, %24, %cst_21 {dimension_numbers = #tpu.dot_dimension_numbers<[1], [0], [0], [1], [0, 0, 1, 1], [], []>} : vector<8x512xbf16>, vector<512x128xbf16>, vector<8x128xf32> -> vector<8x128xf32>
    %c0_22 = arith.constant 0 : index
    %c0_23 = arith.constant 0 : index
    %26 = vector.load %arg10[%c0_22, %c0_23] : memref<1x128xf32, #tpu.memory_space<vmem>>, vector<1x128xf32>
    %27 = vector.broadcast %26 : vector<1x128xf32> to vector<8x128xf32>
    %28 = arith.addf %25, %27 : vector<8x128xf32>
    %cst_24 = arith.constant 0.000000e+00 : f32
    %29 = vector.broadcast %cst_24 : f32 to vector<8x128xf32>
    %30 = arith.maximumf %28, %29 : vector<8x128xf32>
    %31 = arith.truncf %30 : vector<8x128xf32> to vector<8x128xbf16>
    %c0_25 = arith.constant 0 : index
    %c0_26 = arith.constant 0 : index
    %32 = vector.load %arg11[%c0_25, %c0_26] : memref<128x64xbf16, #tpu.memory_space<vmem>>, vector<128x64xbf16>
    %cst_27 = arith.constant dense<0.000000e+00> : vector<8x64xf32>
    %33 = tpu.matmul %31, %32, %cst_27 {dimension_numbers = #tpu.dot_dimension_numbers<[1], [0], [0], [1], [0, 0, 1, 1], [], []>} : vector<8x128xbf16>, vector<128x64xbf16>, vector<8x64xf32> -> vector<8x64xf32>
    %c0_28 = arith.constant 0 : index
    %c0_29 = arith.constant 0 : index
    %34 = vector.load %arg12[%c0_28, %c0_29] : memref<1x64xf32, #tpu.memory_space<vmem>>, vector<1x64xf32>
    %35 = vector.broadcast %34 : vector<1x64xf32> to vector<8x64xf32>
    %36 = arith.addf %33, %35 : vector<8x64xf32>
    %cst_30 = arith.constant 0.000000e+00 : f32
    %37 = vector.broadcast %cst_30 : f32 to vector<8x64xf32>
    %38 = arith.maximumf %36, %37 : vector<8x64xf32>
    %39 = arith.truncf %38 : vector<8x64xf32> to vector<8x64xbf16>
    %c0_31 = arith.constant 0 : index
    %c0_32 = arith.constant 0 : index
    %40 = vector.load %arg13[%c0_31, %c0_32] : memref<64x128xbf16, #tpu.memory_space<vmem>>, vector<64x128xbf16>
    %cst_33 = arith.constant dense<0.000000e+00> : vector<8x128xf32>
    %41 = tpu.matmul %39, %40, %cst_33 {dimension_numbers = #tpu.dot_dimension_numbers<[1], [0], [0], [1], [0, 0, 1, 1], [], []>} : vector<8x64xbf16>, vector<64x128xbf16>, vector<8x128xf32> -> vector<8x128xf32>
    %c0_34 = arith.constant 0 : index
    %c0_35 = arith.constant 0 : index
    %42 = vector.load %arg14[%c0_34, %c0_35] : memref<1x128xf32, #tpu.memory_space<vmem>>, vector<1x128xf32>
    %43 = vector.broadcast %42 : vector<1x128xf32> to vector<8x128xf32>
    %44 = arith.addf %41, %43 : vector<8x128xf32>
    %cst_36 = arith.constant 0.000000e+00 : f32
    %45 = vector.broadcast %cst_36 : f32 to vector<8x128xf32>
    %46 = arith.maximumf %44, %45 : vector<8x128xf32>
    %47 = arith.truncf %46 : vector<8x128xf32> to vector<8x128xbf16>
    %c0_37 = arith.constant 0 : index
    %c0_38 = arith.constant 0 : index
    %48 = vector.load %arg15[%c0_37, %c0_38] : memref<128x512xbf16, #tpu.memory_space<vmem>>, vector<128x512xbf16>
    %cst_39 = arith.constant dense<0.000000e+00> : vector<8x512xf32>
    %49 = tpu.matmul %47, %48, %cst_39 {dimension_numbers = #tpu.dot_dimension_numbers<[1], [0], [0], [1], [0, 0, 1, 1], [], []>} : vector<8x128xbf16>, vector<128x512xbf16>, vector<8x512xf32> -> vector<8x512xf32>
    %c0_40 = arith.constant 0 : index
    %c0_41 = arith.constant 0 : index
    %50 = vector.load %arg16[%c0_40, %c0_41] : memref<1x512xf32, #tpu.memory_space<vmem>>, vector<1x512xf32>
    %51 = vector.broadcast %50 : vector<1x512xf32> to vector<8x512xf32>
    %52 = arith.addf %49, %51 : vector<8x512xf32>
    %cst_42 = arith.constant 0.000000e+00 : f32
    %53 = vector.broadcast %cst_42 : f32 to vector<8x512xf32>
    %54 = arith.maximumf %52, %53 : vector<8x512xf32>
    %55 = arith.truncf %22 : vector<8x512xf32> to vector<8x512xbf16>
    %c0_43 = arith.constant 0 : index
    %c0_44 = arith.constant 0 : index
    %56 = vector.load %arg17[%c0_43, %c0_44] : memref<512x64xbf16, #tpu.memory_space<vmem>>, vector<512x64xbf16>
    %cst_45 = arith.constant dense<0.000000e+00> : vector<8x64xf32>
    %57 = tpu.matmul %55, %56, %cst_45 {dimension_numbers = #tpu.dot_dimension_numbers<[1], [0], [0], [1], [0, 0, 1, 1], [], []>} : vector<8x512xbf16>, vector<512x64xbf16>, vector<8x64xf32> -> vector<8x64xf32>
    %c0_46 = arith.constant 0 : index
    %c0_47 = arith.constant 0 : index
    %58 = vector.load %arg18[%c0_46, %c0_47] : memref<1x64xf32, #tpu.memory_space<vmem>>, vector<1x64xf32>
    %59 = vector.broadcast %58 : vector<1x64xf32> to vector<8x64xf32>
    %60 = arith.addf %57, %59 : vector<8x64xf32>
    %cst_48 = arith.constant 0.000000e+00 : f32
    %61 = vector.broadcast %cst_48 : f32 to vector<8x64xf32>
    %62 = arith.maximumf %60, %61 : vector<8x64xf32>
    %63 = arith.truncf %62 : vector<8x64xf32> to vector<8x64xbf16>
    %c0_49 = arith.constant 0 : index
    %c0_50 = arith.constant 0 : index
    %64 = vector.load %arg19[%c0_49, %c0_50] : memref<64x512xbf16, #tpu.memory_space<vmem>>, vector<64x512xbf16>
    %cst_51 = arith.constant dense<0.000000e+00> : vector<8x512xf32>
    %65 = tpu.matmul %63, %64, %cst_51 {dimension_numbers = #tpu.dot_dimension_numbers<[1], [0], [0], [1], [0, 0, 1, 1], [], []>} : vector<8x64xbf16>, vector<64x512xbf16>, vector<8x512xf32> -> vector<8x512xf32>
    %c0_52 = arith.constant 0 : index
    %c0_53 = arith.constant 0 : index
    %66 = vector.load %arg20[%c0_52, %c0_53] : memref<1x512xf32, #tpu.memory_space<vmem>>, vector<1x512xf32>
    %67 = vector.broadcast %66 : vector<1x512xf32> to vector<8x512xf32>
    %68 = arith.addf %65, %67 : vector<8x512xf32>
    %cst_54 = arith.constant 0.000000e+00 : f32
    %69 = vector.broadcast %cst_54 : f32 to vector<8x512xf32>
    %70 = arith.maximumf %68, %69 : vector<8x512xf32>
    %71 = tpu.concatenate %38, %62 in 1 : vector<8x64xf32>, vector<8x64xf32> -> vector<8x128xf32>
    %c0_55 = arith.constant 0 : index
    %c0_56 = arith.constant 0 : index
    %72 = vector.load %arg21[%c0_55, %c0_56] : memref<8x128xf32, #tpu.memory_space<vmem>>, vector<8x128xf32>
    tpu.vector_store %arg21[%c0_55, %c0_56], %71 {strides = array<i32>} : memref<8x128xf32, #tpu.memory_space<vmem>>, vector<8x128xf32>,
    %c0_57 = arith.constant 0 : index
    %c0_58 = arith.constant 0 : index
    %73 = vector.load %arg22[%c0_57, %c0_58] : memref<8x512xf32, #tpu.memory_space<vmem>>, vector<8x512xf32>
    tpu.vector_store %arg22[%c0_57, %c0_58], %22 {strides = array<i32>} : memref<8x512xf32, #tpu.memory_space<vmem>>, vector<8x512xf32>,
    %c0_59 = arith.constant 0 : index
    %c0_60 = arith.constant 0 : index
    %74 = vector.load %arg23[%c0_59, %c0_60] : memref<8x512xf32, #tpu.memory_space<vmem>>, vector<8x512xf32>
    tpu.vector_store %arg23[%c0_59, %c0_60], %70 {strides = array<i32>} : memref<8x512xf32, #tpu.memory_space<vmem>>, vector<8x512xf32>,
    %c0_61 = arith.constant 0 : index
    %c0_62 = arith.constant 0 : index
    %75 = vector.load %arg24[%c0_61, %c0_62] : memref<8x512xf32, #tpu.memory_space<vmem>>, vector<8x512xf32>
    tpu.vector_store %arg24[%c0_61, %c0_62], %54 {strides = array<i32>} : memref<8x512xf32, #tpu.memory_space<vmem>>, vector<8x512xf32>,
    return
  }
  func.func @transform_0(%arg0: i32) -> (i32, i32) {
    %c0_i32 = arith.constant 0 : i32
    %c0_i32_0 = arith.constant 0 : i32
    return %arg0, %c0_i32 : i32, i32
  }
  func.func @transform_1(%arg0: i32) -> (i32, i32) {
    %c0_i32 = arith.constant 0 : i32
    %c0_i32_0 = arith.constant 0 : i32
    return %arg0, %c0_i32 : i32, i32
  }
  func.func @transform_2(%arg0: i32) -> (i32, i32) {
    %c0_i32 = arith.constant 0 : i32
    %c0_i32_0 = arith.constant 0 : i32
    return %arg0, %c0_i32 : i32, i32
  }
  func.func @transform_3(%arg0: i32) -> (i32, i32) {
    %c0_i32 = arith.constant 0 : i32
    %c0_i32_0 = arith.constant 0 : i32
    %c0_i32_1 = arith.constant 0 : i32
    return %c0_i32, %c0_i32_0 : i32, i32
  }
  func.func @transform_4(%arg0: i32) -> (i32, i32) {
    %c0_i32 = arith.constant 0 : i32
    %c0_i32_0 = arith.constant 0 : i32
    %c0_i32_1 = arith.constant 0 : i32
    return %c0_i32, %c0_i32_0 : i32, i32
  }
  func.func @transform_5(%arg0: i32) -> (i32, i32) {
    %c0_i32 = arith.constant 0 : i32
    %c0_i32_0 = arith.constant 0 : i32
    %c0_i32_1 = arith.constant 0 : i32
    return %c0_i32, %c0_i32_0 : i32, i32
  }
  func.func @transform_6(%arg0: i32) -> (i32, i32) {
    %c0_i32 = arith.constant 0 : i32
    %c0_i32_0 = arith.constant 0 : i32
    %c0_i32_1 = arith.constant 0 : i32
    return %c0_i32, %c0_i32_0 : i32, i32
  }
  func.func @transform_7(%arg0: i32) -> (i32, i32) {
    %c0_i32 = arith.constant 0 : i32
    %c0_i32_0 = arith.constant 0 : i32
    %c0_i32_1 = arith.constant 0 : i32
    return %c0_i32, %c0_i32_0 : i32, i32
  }
  func.func @transform_8(%arg0: i32) -> (i32, i32) {
    %c0_i32 = arith.constant 0 : i32
    %c0_i32_0 = arith.constant 0 : i32
    %c0_i32_1 = arith.constant 0 : i32
    return %c0_i32, %c0_i32_0 : i32, i32
  }
  func.func @transform_9(%arg0: i32) -> (i32, i32) {
    %c0_i32 = arith.constant 0 : i32
    %c0_i32_0 = arith.constant 0 : i32
    %c0_i32_1 = arith.constant 0 : i32
    return %c0_i32, %c0_i32_0 : i32, i32
  }
  func.func @transform_10(%arg0: i32) -> (i32, i32) {
    %c0_i32 = arith.constant 0 : i32
    %c0_i32_0 = arith.constant 0 : i32
    %c0_i32_1 = arith.constant 0 : i32
    return %c0_i32, %c0_i32_0 : i32, i32
  }
  func.func @transform_11(%arg0: i32) -> (i32, i32) {
    %c0_i32 = arith.constant 0 : i32
    %c0_i32_0 = arith.constant 0 : i32
    %c0_i32_1 = arith.constant 0 : i32
    return %c0_i32, %c0_i32_0 : i32, i32
  }
  func.func @transform_12(%arg0: i32) -> (i32, i32) {
    %c0_i32 = arith.constant 0 : i32
    %c0_i32_0 = arith.constant 0 : i32
    %c0_i32_1 = arith.constant 0 : i32
    return %c0_i32, %c0_i32_0 : i32, i32
  }
  func.func @transform_13(%arg0: i32) -> (i32, i32) {
    %c0_i32 = arith.constant 0 : i32
    %c0_i32_0 = arith.constant 0 : i32
    %c0_i32_1 = arith.constant 0 : i32
    return %c0_i32, %c0_i32_0 : i32, i32
  }
  func.func @transform_14(%arg0: i32) -> (i32, i32) {
    %c0_i32 = arith.constant 0 : i32
    %c0_i32_0 = arith.constant 0 : i32
    %c0_i32_1 = arith.constant 0 : i32
    return %c0_i32, %c0_i32_0 : i32, i32
  }
  func.func @transform_15(%arg0: i32) -> (i32, i32) {
    %c0_i32 = arith.constant 0 : i32
    %c0_i32_0 = arith.constant 0 : i32
    %c0_i32_1 = arith.constant 0 : i32
    return %c0_i32, %c0_i32_0 : i32, i32
  }
  func.func @transform_16(%arg0: i32) -> (i32, i32) {
    %c0_i32 = arith.constant 0 : i32
    %c0_i32_0 = arith.constant 0 : i32
    %c0_i32_1 = arith.constant 0 : i32
    return %c0_i32, %c0_i32_0 : i32, i32
  }
  func.func @transform_17(%arg0: i32) -> (i32, i32) {
    %c0_i32 = arith.constant 0 : i32
    %c0_i32_0 = arith.constant 0 : i32
    %c0_i32_1 = arith.constant 0 : i32
    return %c0_i32, %c0_i32_0 : i32, i32
  }
  func.func @transform_18(%arg0: i32) -> (i32, i32) {
    %c0_i32 = arith.constant 0 : i32
    %c0_i32_0 = arith.constant 0 : i32
    %c0_i32_1 = arith.constant 0 : i32
    return %c0_i32, %c0_i32_0 : i32, i32
  }
  func.func @transform_19(%arg0: i32) -> (i32, i32) {
    %c0_i32 = arith.constant 0 : i32
    %c0_i32_0 = arith.constant 0 : i32
    %c0_i32_1 = arith.constant 0 : i32
    return %c0_i32, %c0_i32_0 : i32, i32
  }
  func.func @transform_20(%arg0: i32) -> (i32, i32) {
    %c0_i32 = arith.constant 0 : i32
    %c0_i32_0 = arith.constant 0 : i32
    return %arg0, %c0_i32 : i32, i32
  }
  func.func @transform_21(%arg0: i32) -> (i32, i32) {
    %c0_i32 = arith.constant 0 : i32
    %c0_i32_0 = arith.constant 0 : i32
    return %arg0, %c0_i32 : i32, i32
  }
  func.func @transform_22(%arg0: i32) -> (i32, i32) {
    %c0_i32 = arith.constant 0 : i32
    %c0_i32_0 = arith.constant 0 : i32
    return %arg0, %c0_i32 : i32, i32
  }
  func.func @transform_23(%arg0: i32) -> (i32, i32) {
    %c0_i32 = arith.constant 0 : i32
    %c0_i32_0 = arith.constant 0 : i32
    return %arg0, %c0_i32 : i32, i32
  }
}

</mosaic_0001>

<bundles_post_ra>
// kernel: clipclap_forward.1
= control target key start
LH: loop header
LB: loop body
LE: loop exit
PB: predicated region body
PF: predicated region fallthrough
CT: control target
= control target key end

     0   :  { %s10052_s0 = inlined_call_operand.vmem [shape: f32[16,512], index: 0, kind: input, shape index: {}]   ;;  %s10053_s1 = inlined_call_operand.hbm [shape: f32[16,1024], index: 1, kind: input, shape index: {}]   ;;  %s10054_s2 = inlined_call_operand.vmem [shape: f32[16,1536], index: 2, kind: input, shape index: {}]   ;;  %s10055_s3 = inlined_call_operand.hbm [shape: bf16[512,512], index: 3, kind: input, shape index: {}]   ;;  %s10056_s4 = inlined_call_operand.hbm [shape: bf16[1024,512], index: 4, kind: input, shape index: {}]   ;;  %s10057_s5 = inlined_call_operand.hbm [shape: f32[1,512], index: 5, kind: input, shape index: {}]   ;;  %s10058_s6 = inlined_call_operand.hbm [shape: bf16[512,512], index: 6, kind: input, shape index: {}]   ;;  %s10059_s7 = inlined_call_operand.hbm [shape: f32[1,512], index: 7, kind: input, shape index: {}]   ;;  %s10060_s8 = inlined_call_operand.vmem [shape: bf16[512,128], index: 8, kind: input, shape index: {}]   ;;  %s10061_s9 = inlined_call_operand.hbm [shape: f32[1,128], index: 9, kind: input, shape index: {}]   ;;  %s10062_s10 = inlined_call_operand.vmem [shape: bf16[128,64], index: 10, kind: input, shape index: {}]   ;;  %s10063_s11 = inlined_call_operand.hbm [shape: f32[1,64], index: 11, kind: input, shape index: {}]   ;;  %s10064_s12 = inlined_call_operand.hbm [shape: bf16[64,128], index: 12, kind: input, shape index: {}]   ;;  %s10065_s13 = inlined_call_operand.hbm [shape: f32[1,128], index: 13, kind: input, shape index: {}]   ;;  %s10066_s14 = inlined_call_operand.hbm [shape: bf16[128,512], index: 14, kind: input, shape index: {}]   ;;  %s10067_s15 = inlined_call_operand.hbm [shape: f32[1,512], index: 15, kind: input, shape index: {}]   ;;  %s10068_s16 = inlined_call_operand.vmem [shape: bf16[512,64], index: 16, kind: input, shape index: {}]   ;;  %s10069_s17 = inlined_call_operand.hbm [shape: f32[1,64], index: 17, kind: input, shape index: {}]   ;;  %s10070_s18 = inlined_call_operand.hbm [shape: bf16[64,512], index: 18, kind: input, shape index: {}]   ;;  %s10071_s19 = inlined_call_operand.hbm [shape: f32[1,512], index: 19, kind: input, shape index: {}]   ;;  %s10072_s20 = inlined_call_operand.vmem [shape: f32[16,128], index: 20, kind: output, shape index: {0}]   ;;  %s10073_s21 = inlined_call_operand.hbm [shape: f32[16,512], index: 21, kind: output, shape index: {1}]   ;;  %s10074_s22 = inlined_call_operand.hbm [shape: f32[16,512], index: 22, kind: output, shape index: {2}]   ;;  %s10075_s23 = inlined_call_operand.hbm [shape: f32[16,512], index: 23, kind: output, shape index: {3}]  }
   0x1   :  { %10087 = sst [smem:[#allocation40_spill]] %s10052_s0 }
   0x2   :  { %10088 = sst [smem:[#allocation41_spill]] %s10053_s1 }
   0x3   :  { %10089 = sst [smem:[#allocation42_spill]] %s10054_s2 }
   0x4   :  { %10090 = sst [smem:[#allocation43_spill]] %s10055_s3 }
   0x5   :  { %10091 = sst [smem:[#allocation44_spill]] %s10056_s4 }
   0x6   :  { %10092 = sst [smem:[#allocation45_spill]] %s10057_s5 }
   0x7   :  { %10093 = sst [smem:[#allocation46_spill]] %s10058_s6 }
   0x8   :  { %10094 = sst [smem:[#allocation47_spill]] %s10059_s7 }
   0x9   :  { %10095 = sst [smem:[#allocation48_spill]] %s10060_s8 }
   0xa   :  { %10096 = sst [smem:[#allocation49_spill]] %s10061_s9 }
   0xb   :  { %10097 = sst [smem:[#allocation50_spill]] %s10062_s10 }
   0xc   :  { %10098 = sst [smem:[#allocation51_spill]] %s10063_s11 }
   0xd   :  { %10099 = sst [smem:[#allocation52_spill]] %s10064_s12 }
   0xe   :  { %10100 = sst [smem:[#allocation53_spill]] %s10065_s13 }
   0xf   :  { %10101 = sst [smem:[#allocation54_spill]] %s10066_s14 }
  0x10   :  { %10102 = sst [smem:[#allocation55_spill]] %s10067_s15 }
  0x11   :  { %10103 = sst [smem:[#allocation56_spill]] %s10068_s16 }
  0x12   :  { %10104 = sst [smem:[#allocation57_spill]] %s10069_s17 }
  0x13   :  { %10105 = sst [smem:[#allocation58_spill]] %s10070_s18 }
  0x14   :  { %10106 = sst [smem:[#allocation59_spill]] %s10072_s20 }
  0x15   :  { %10107 = sst [smem:[#allocation60_spill]] %s10073_s21 }
  0x16   :  { %10108 = sst [smem:[#allocation61_spill]] %s10074_s22 }
  0x17   :  { %10109 = sst [smem:[#allocation62_spill]] %s10075_s23 }
  0x18   :  { %29 = vsyncpa [#allocation3], 0 }
  0x19   :  { %31 = vsyncpa [#allocation3 + $0x1], 0 }
  0x1a   :  { %32 = vsyncpa [#allocation6], 0 }
  0x1b   :  { %33 = vsyncpa [#allocation9], 0 }
  0x1c   :  { %34 = vsyncpa [#allocation12], 0 }
  0x1d   :  { %35 = vsyncpa [#allocation15], 0 }
  0x1e   :  { %36 = vsyncpa [#allocation18], 0 }
  0x1f   :  { %37 = vsyncpa [#allocation21], 0 }
  0x20   :  { %38 = vsyncpa [#allocation24], 0 }
  0x21   :  { %39 = vsyncpa [#allocation4], 0 }
  0x22   :  { %41 = vsyncpa [#allocation4 + $0x1], 0 }
  0x23   :  { %42 = vsyncpa [#allocation28], 0 }
  0x24   :  { %44 = vsyncpa [#allocation28 + $0x1], 0  ;;  %s9238_s4 = smov 0   ;;  %s9240_s30 = smov 0  }
  0x25   :  { %s9242_s24 = smov 0   ;;  %s9244_s25 = smov 0  }
  0x26 LB: > { %s9092_s5 = smov [#allocation5]   ;;  %s9259_s26 = sadd.s32 4294967295, %s9090_s25   ;;  %s9090_s25 = sphi %s9244_s25, %s10166_s25   ;;  %s9086_s24 = sphi %s9242_s24, %s10165_s24   ;;  %s9082_s30 = sphi %s9240_s30, %s10164_s30   ;;  %s9078_s4 = sphi %s9238_s4, %s10163_s4  }
  0x27   : > { %s606_s1 = sshll.u32 %s9092_s5, 4  ;;  %p6593_p0 = scmp.ge.s32.totalorder %s9090_s25, 1  ;;  %s607_s1 = int_to_ptr.vmem [resolvable:$true] %s606_s1 }
  0x28   : > { %p10081_p1 = scmp.eq.s32.totalorder %s9259_s26, 0  ;;  %p594_p2 = scmp.lt.s32.totalorder %s9090_s25, 3 }
  0x29   : > { %s9093_s6 = smov [#allocation8]   ;;  %s9094_s28 = smov [#allocation11]  }
  0x2a   : > { %p9264_p3 = pnand %p6593_p0, %p594_p2  ;;  %s633_s27 = sshll.u32 %s9093_s6, 4  ;;  %s634_s27 = int_to_ptr.vmem [resolvable:$true] %s633_s27 }
  0x2b   : > { %s657_s29 = sshll.u32 %s9094_s28, 4  ;;  %s8561_s0 = scalar_lea.vmem %s607_s1, 16384  ;;  %s9277_s29 = int_to_ptr.vmem [resolvable:$true] %s657_s29 }
  0x2c   : > { %s10110_s2 = scalar_select %p9264_p3, 1, 0 }
  0x2d   : > { %p7493_p5 = pneg %p9264_p3  ;;  %p8562_p8 = scmp.ne.s32.totalorder %s607_s1, %s8561_s0 }
  0x2e   : > { %p8569_p11 = scmp.lt.s32.totalorder %s607_s1, %s607_s1  ;;  %p8570_p12 = scmp.lt.s32.totalorder %s8561_s0, %s8561_s0 }
  0x2f   : > { %p9273_p6 = pnand %p7493_p5, %p10081_p1 }
  0x30   : > { %p8571_p13 = por %p8570_p12, %p8569_p11 }
  0x31   : > { %p9281_p7 = pneg %p9273_p6 }
  0x33   : > { %p8564_p9 = pnand %p8562_p8, %p9281_p7 }
  0x35   : > { %p8565_p10 = pneg %p8564_p9 }
  0x37   : > { %p8572_p0 = pnand %p8571_p13, %p8565_p10 }
  0x39   : > { %8575 = shalt.err (!%p8572_p0)
}
  0x3a   : > { %s10083_s5 = smov 256   ;;  %s9096_s6 = smov 16  }
  0x3b   : > { %s10113_s22 = sld [smem:[#allocation43_spill]]  ;;  %s8587_s20 = scalar_lea.vmem %s634_s27, 64 }
  0x3c   : > { %p8588_p2 = scmp.ne.s32.totalorder %s634_s27, %s8587_s20  ;;  %p8595_p9 = scmp.lt.s32.totalorder %s634_s27, %s634_s27 }
  0x3d   : > { %p8596_p10 = scmp.lt.s32.totalorder %s8587_s20, %s8587_s20 }
  0x3e   : > { %p8590_p5 = pnand %p8588_p2, %p9281_p7 }
  0x3f   : > { %p8597_p11 = por %p8596_p10, %p8595_p9 }
  0x40   : > { %p8591_p8 = pneg %p8590_p5 }
  0x41   : > { %7496 = dma.hbm_to_vmem [thread:$0]  (!%p9273_p6), %s10113_s22, 16384, %s607_s1, [#allocation6], %s10083_s5, %s10083_s5, %s9096_s6  }
  0x42   : > { %p8598_p12 = pnand %p8597_p11, %p8591_p8 }
  0x44   : > { %8601 = shalt.err (!%p8598_p12)
}
  0x45   : > { %s10114_s16 = sld [smem:[#allocation45_spill]]  ;;  %s8613_s22 = scalar_lea.vmem %s9277_s29, 64 }
  0x46   : > { %p8614_p13 = scmp.ne.s32.totalorder %s9277_s29, %s8613_s22  ;;  %p8621_p5 = scmp.lt.s32.totalorder %s9277_s29, %s9277_s29 }
  0x47   : > { %p8622_p9 = scmp.lt.s32.totalorder %s8613_s22, %s8613_s22 }
  0x48   : > { %p8616_p0 = pnand %p8614_p13, %p9281_p7 }
  0x49   : > { %p8623_p8 = por %p8622_p9, %p8621_p5 }
  0x4a   : > { %p8617_p2 = pneg %p8616_p0 }
  0x4b   : > { %7502 = dma.hbm_to_vmem [thread:$0]  (!%p9273_p6), %s10114_s16, 64, %s634_s27, [#allocation9]  }
  0x4c   : > { %p8624_p10 = pnand %p8623_p8, %p8617_p2 }
  0x4e   : > { %8627 = shalt.err (!%p8624_p10)
}
  0x4f   : > { %s10115_s23 = sld [smem:[#allocation47_spill]]  ;;  %s9097_s16 = smov [#allocation14]  }
  0x50   : > { %s685_s1 = sshll.u32 %s9097_s16, 4  ;;  %s9098_s27 = smov [#allocation17]   ;;  %s686_s1 = int_to_ptr.vmem [resolvable:$true] %s685_s1 }
  0x51   : > { %s709_s28 = sshll.u32 %s9098_s27, 4  ;;  %s8639_s0 = scalar_lea.vmem %s686_s1, 16  ;;  %s710_s28 = int_to_ptr.vmem [resolvable:$true] %s709_s28 }
  0x52   : > { %p8640_p11 = scmp.ne.s32.totalorder %s686_s1, %s8639_s0  ;;  %s8646_s22 = scalar_lea.vmem %s686_s1, 32 }
  0x53   : > { %p8647_p0 = scmp.lt.s32.totalorder %s686_s1, %s686_s1  ;;  %p8648_p2 = scmp.lt.s32.totalorder %s8646_s22, %s8639_s0 }
  0x54   : > { %p8642_p12 = pnand %p8640_p11, %p9281_p7 }
  0x55   : > { %7508 = dma.hbm_to_vmem [thread:$0]  (!%p9273_p6), %s10115_s23, 64, %s9277_s29, [#allocation12]  }
  0x56   : > { %p8643_p13 = pneg %p8642_p12  ;;  %p8649_p5 = por %p8648_p2, %p8647_p0 }
  0x58   : > { %p8650_p9 = pnand %p8649_p5, %p8643_p13 }
  0x5a   : > { %8653 = shalt.err (!%p8650_p9)
}
  0x5b   : > { %s10116_s11 = sld [smem:[#allocation51_spill]]  ;;  %s8665_s21 = scalar_lea.vmem %s710_s28, 16 }
  0x5c   : > { %p8666_p8 = scmp.ne.s32.totalorder %s710_s28, %s8665_s21  ;;  %s8672_s23 = scalar_lea.vmem %s710_s28, 32 }
  0x5d   : > { %p8673_p12 = scmp.lt.s32.totalorder %s710_s28, %s710_s28  ;;  %p8674_p4 = scmp.lt.s32.totalorder %s8672_s23, %s8665_s21 }
  0x5e   : > { %p8668_p10 = pnand %p8666_p8, %p9281_p7 }
  0x5f   : > { %p8675_p1 = por %p8674_p4, %p8673_p12 }
  0x60   : > { %p8669_p11 = pneg %p8668_p10 }
  0x61   : > { %7514 = dma.hbm_to_vmem [thread:$0]  (!%p9273_p6), %s10116_s11, 16, %s686_s1, [#allocation15]  }
  0x62   : > { %p8676_p0 = pnand %p8675_p1, %p8669_p11 }
  0x64   : > { %8679 = shalt.err (!%p8676_p0)
}
  0x65   : > { %s10117_s13 = sld [smem:[#allocation53_spill]]  ;;  %s9099_s1 = smov [#allocation20]  }
  0x66   : > { %s733_s0 = sshll.u32 %s9099_s1, 4  ;;  %s9100_s22 = smov [#allocation23]   ;;  %s734_s0 = int_to_ptr.vmem [resolvable:$true] %s733_s0 }
  0x67   : > { %s757_s20 = sshll.u32 %s9100_s22, 4  ;;  %s8691_s29 = scalar_lea.vmem %s734_s0, 64  ;;  %s758_s20 = int_to_ptr.vmem [resolvable:$true] %s757_s20 }
  0x68   : > { %p8692_p13 = scmp.ne.s32.totalorder %s734_s0, %s8691_s29  ;;  %p8699_p4 = scmp.lt.s32.totalorder %s734_s0, %s734_s0 }
  0x69   : > { %p8700_p1 = scmp.lt.s32.totalorder %s8691_s29, %s8691_s29 }
  0x6a   : > { %p8694_p2 = pnand %p8692_p13, %p9281_p7 }
  0x6b   : > { %7520 = dma.hbm_to_vmem [thread:$0]  (!%p9273_p6), %s10117_s13, 16, %s710_s28, [#allocation18]  }
  0x6c   : > { %p8695_p5 = pneg %p8694_p2  ;;  %p8701_p9 = por %p8700_p1, %p8699_p4 }
  0x6e   : > { %p8702_p8 = pnand %p8701_p9, %p8695_p5 }
  0x70   : > { %8705 = shalt.err (!%p8702_p8)
}
  0x71   : > { %s10118_s15 = sld [smem:[#allocation55_spill]]  ;;  %s8717_s28 = scalar_lea.vmem %s758_s20, 2048 }
  0x72   : > { %p8718_p10 = scmp.ne.s32.totalorder %s758_s20, %s8717_s28  ;;  %p8725_p0 = scmp.lt.s32.totalorder %s758_s20, %s758_s20 }
  0x73   : > { %p8726_p13 = scmp.lt.s32.totalorder %s8717_s28, %s8717_s28 }
  0x74   : > { %p8720_p11 = pnand %p8718_p10, %p9281_p7 }
  0x75   : > { %p8727_p2 = por %p8726_p13, %p8725_p0 }
  0x76   : > { %p8721_p12 = pneg %p8720_p11 }
  0x77   : > { %7526 = dma.hbm_to_vmem [thread:$0]  (!%p9273_p6), %s10118_s15, 64, %s734_s0, [#allocation21]  }
  0x78   : > { %p8728_p3 = pnand %p8727_p2, %p8721_p12 }
  0x7a   : > { %8731 = shalt.err (!%p8728_p3)
}
  0x7b   : > { %s10119_s18 = sld [smem:[#allocation58_spill]]  ;;  %s9101_s1 = smov [#allocation7]  }
  0x7c   : > { %s619_s0 = sshll.u32 %s9101_s1, 4  ;;  %s9102_s22 = smov [#allocation10]   ;;  %s620_s0 = int_to_ptr.vmem [resolvable:$true] %s619_s0 }
  0x7d   : > { %s643_s29 = sshll.u32 %s9102_s22, 4  ;;  %s8743_s21 = scalar_lea.vmem %s620_s0, 32768  ;;  %s644_s29 = int_to_ptr.vmem [resolvable:$true] %s643_s29 }
  0x7e   : > { %p8744_p5 = scmp.ne.s32.totalorder %s620_s0, %s8743_s21  ;;  %p8751_p1 = scmp.lt.s32.totalorder %s620_s0, %s620_s0 }
  0x7f   : > { %p8752_p9 = scmp.lt.s32.totalorder %s8743_s21, %s8743_s21 }
  0x80   : > { %p8746_p4 = pnand %p8744_p5, %p9281_p7 }
  0x81   : > { %7532 = dma.hbm_to_vmem [thread:$0]  (!%p9273_p6), %s10119_s18, 2048, %s758_s20, [#allocation24], %s10083_s5, %s10083_s5, %s9096_s6  }
  0x82   : > { %p8747_p3 = pneg %p8746_p4  ;;  %p8753_p8 = por %p8752_p9, %p8751_p1 }
  0x84   : > { %p8754_p10 = pnand %p8753_p8, %p8747_p3 }
  0x86   : > { %8757 = shalt.err (!%p8754_p10)
}
  0x87   : > { %s10120_s28 = sld [smem:[#allocation44_spill]]  ;;  %s8769_s16 = scalar_lea.vmem %s644_s29, 16384 }
  0x88   : > { %p8770_p11 = scmp.ne.s32.totalorder %s644_s29, %s8769_s16  ;;  %p8777_p13 = scmp.lt.s32.totalorder %s644_s29, %s644_s29 }
  0x89   : > { %p8778_p2 = scmp.lt.s32.totalorder %s8769_s16, %s8769_s16 }
  0x8a   : > { %p8772_p12 = pnand %p8770_p11, %p9281_p7 }
  0x8b   : > { %p8779_p5 = por %p8778_p2, %p8777_p13 }
  0x8c   : > { %p8773_p0 = pneg %p8772_p12 }
  0x8d   : > { %7499 = dma.hbm_to_vmem [thread:$0]  (!%p9273_p6), %s10120_s28, 32768, %s620_s0, [#allocation6], %s10083_s5, %s10083_s5, %s9096_s6  }
  0x8e   : > { %p8780_p4 = pnand %p8779_p5, %p8773_p0 }
  0x90   : > { %8783 = shalt.err (!%p8780_p4)
}
  0x91   : > { %s10121_s22 = sld [smem:[#allocation46_spill]]  ;;  %s9103_s0 = smov [#allocation13]  }
  0x92   : > { %s671_s21 = sshll.u32 %s9103_s0, 4  ;;  %s9104_s20 = smov [#allocation16]   ;;  %s672_s21 = int_to_ptr.vmem [resolvable:$true] %s671_s21 }
  0x93   : > { %s695_s23 = sshll.u32 %s9104_s20, 4  ;;  %s8795_s28 = scalar_lea.vmem %s672_s21, 16  ;;  %s696_s23 = int_to_ptr.vmem [resolvable:$true] %s695_s23 }
  0x94   : > { %p8796_p3 = scmp.ne.s32.totalorder %s672_s21, %s8795_s28  ;;  %s8802_s16 = scalar_lea.vmem %s672_s21, 32 }
  0x95   : > { %p8803_p8 = scmp.lt.s32.totalorder %s672_s21, %s672_s21  ;;  %p8804_p10 = scmp.lt.s32.totalorder %s8802_s16, %s8795_s28 }
  0x96   : > { %p8798_p1 = pnand %p8796_p3, %p9281_p7 }
  0x97   : > { %7505 = dma.hbm_to_vmem [thread:$0]  (!%p9273_p6), %s10121_s22, 16384, %s644_s29, [#allocation9], %s10083_s5, %s10083_s5, %s9096_s6  }
  0x98   : > { %p8799_p9 = pneg %p8798_p1  ;;  %p8805_p11 = por %p8804_p10, %p8803_p8 }
  0x9a   : > { %p8806_p12 = pnand %p8805_p11, %p8799_p9 }
  0x9c   : > { %8809 = shalt.err (!%p8806_p12)
}
  0x9d   : > { %s10122_s9 = sld [smem:[#allocation49_spill]]  ;;  %s8821_s1 = scalar_lea.vmem %s696_s23, 512 }
  0x9e   : > { %p8822_p0 = scmp.ne.s32.totalorder %s696_s23, %s8821_s1  ;;  %p8829_p5 = scmp.lt.s32.totalorder %s696_s23, %s696_s23 }
  0x9f   : > { %p8830_p4 = scmp.lt.s32.totalorder %s8821_s1, %s8821_s1 }
  0xa0   : > { %p8824_p13 = pnand %p8822_p0, %p9281_p7 }
  0xa1   : > { %p8831_p3 = por %p8830_p4, %p8829_p5 }
  0xa2   : > { %p8825_p2 = pneg %p8824_p13 }
  0xa3   : > { %7511 = dma.hbm_to_vmem [thread:$0]  (!%p9273_p6), %s10122_s9, 16, %s672_s21, [#allocation12]  }
  0xa4   : > { %p8832_p1 = pnand %p8831_p3, %p8825_p2 }
  0xa6   : > { %8835 = shalt.err (!%p8832_p1)
}
  0xa7   : > { %s9105_s22 = smov 64   ;;  %s9106_s0 = smov 4  }
  0xa8   : > { %s10123_s12 = sld [smem:[#allocation52_spill]]  ;;  %s9107_s21 = smov [#allocation19]  }
  0xa9   : > { %s719_s16 = sshll.u32 %s9107_s21, 4  ;;  %s9108_s27 = smov [#allocation22]   ;;  %s720_s16 = int_to_ptr.vmem [resolvable:$true] %s719_s16 }
  0xaa   : > { %s747_s29 = sshll.u32 %s9108_s27, 4  ;;  %s8847_s5 = scalar_lea.vmem %s720_s16, 4096  ;;  %s748_s29 = int_to_ptr.vmem [resolvable:$true] %s747_s29 }
  0xab   : > { %p8848_p9 = scmp.ne.s32.totalorder %s720_s16, %s8847_s5  ;;  %p8855_p11 = scmp.lt.s32.totalorder %s720_s16, %s720_s16 }
  0xac   : > { %p8856_p12 = scmp.lt.s32.totalorder %s8847_s5, %s8847_s5 }
  0xad   : > { %p8850_p8 = pnand %p8848_p9, %p9281_p7 }
  0xae   : > { %7517 = dma.hbm_to_vmem [thread:$0]  (!%p9273_p6), %s10123_s12, 512, %s696_s23, [#allocation15], %s9105_s22, %s9105_s22, %s9106_s0  }
  0xaf   : > { %p8851_p10 = pneg %p8850_p8  ;;  %p8857_p0 = por %p8856_p12, %p8855_p11 }
  0xb1   : > { %p8858_p13 = pnand %p8857_p0, %p8851_p10 }
  0xb3   : > { %8861 = shalt.err (!%p8858_p13)
}
  0xb4   : > { %s10124_s1 = smov 256   ;;  %s10125_s14 = sld [smem:[#allocation54_spill]] }
  0xb5   : > { %s8873_s0 = scalar_lea.vmem %s748_s29, 16  ;;  %s8880_s5 = scalar_lea.vmem %s748_s29, 32 }
  0xb6   : > { %p8874_p2 = scmp.ne.s32.totalorder %s748_s29, %s8873_s0  ;;  %p8881_p3 = scmp.lt.s32.totalorder %s748_s29, %s748_s29 }
  0xb7   : > { %p8882_p1 = scmp.lt.s32.totalorder %s8880_s5, %s8873_s0 }
  0xb8   : > { %p8876_p5 = pnand %p8874_p2, %p9281_p7 }
  0xb9   : > { %p8883_p9 = por %p8882_p1, %p8881_p3 }
  0xba   : > { %7523 = dma.hbm_to_vmem [thread:$0]  (!%p9273_p6), %s10125_s14, 4096, %s720_s16, [#allocation18], %s10124_s1, %s10124_s1, %s9096_s6  }
  0xbb   : > { %p8877_p4 = pneg %p8876_p5 }
  0xbd   : > { %p8884_p8 = pnand %p8883_p9, %p8877_p4 }
  0xbf   : > { %8887 = shalt.err (!%p8884_p8)
}
  0xc0   : > { %s10126_s17 = sld [smem:[#allocation57_spill]]  ;;  %s9109_s6 = smov [#allocation25]  }
  0xc1   : > { %s771_s21 = sshll.u32 %s9109_s6, 4  ;;  %s772_s21 = int_to_ptr.vmem [resolvable:$true] %s771_s21 }
  0xc2   : > { %s8899_s16 = scalar_lea.vmem %s772_s21, 64  ;;  %p8907_p0 = scmp.lt.s32.totalorder %s772_s21, %s772_s21 }
  0xc3   : > { %p8900_p10 = scmp.ne.s32.totalorder %s772_s21, %s8899_s16  ;;  %p8908_p13 = scmp.lt.s32.totalorder %s8899_s16, %s8899_s16 }
  0xc5   : > { %p8902_p11 = pnand %p8900_p10, %p9281_p7  ;;  %p8909_p2 = por %p8908_p13, %p8907_p0 }
  0xc6   : > { %7529 = dma.hbm_to_vmem [thread:$0]  (!%p9273_p6), %s10126_s17, 16, %s748_s29, [#allocation21]  }
  0xc7   : > { %p8903_p12 = pneg %p8902_p11 }
  0xc9   : > { %p8910_p5 = pnand %p8909_p2, %p8903_p12 }
  0xcb   : > { %8913 = shalt.err (!%p8910_p5)
}
  0xcc   : > { %7535 = dma.hbm_to_vmem [thread:$0]  (!%p9273_p6), %s10071_s19, 64, %s772_s21, [#allocation24]  }
  0xcd   : > { %s10084_s7 = sadd.s32 4294967294, %s9090_s25   ;;  %s9405_s3 = sadd.s32 1, %s9090_s25  }
  0xce   : > { %s80_s29 = ssub.s32 %s9090_s25, %s9405_s3  ;;  %s83_s23 = sadd.s32 1, %s9086_s24 }
  0xcf   : > { %p81_p7 = scmp.eq.s32.totalorder %s80_s29, 0  ;;  %p90_p4 = scmp.ne.s32.totalorder %s9086_s24, %s9082_s30 }
  0xd0   : > { %p91_p3 = scmp.eq.s32.totalorder %s9090_s25, 0  ;;  %p96_p1 = scmp.ne.s32.totalorder %s9082_s30, %s9078_s4 }
  0xd1   : > { %s9416_s22 = scalar_select %p81_p7, %s9086_s24, %s83_s23  }
  0xd2   : > { %p9418_p9 = por %p91_p3, %p90_p4  ;;  %p10128_p8 = scmp.eq.s32.totalorder %s9259_s26, 0 }
  0xd3   : > { %p529_p10 = scmp.eq.s32.totalorder %s9259_s26, 1  ;;  %p535_p11 = scmp.eq.s32.totalorder %s10084_s7, 1 }
  0xd4   : > { %p9424_p6 = por %p10128_p8, %p96_p1  ;;  %p7564_p12 = scmp.lt.s32.totalorder %s9090_s25, 2 }
  0xd5   : > { %s790_s20 = sand.u32 1, %s9086_s24   ;;  %p9433_p0 = por %p529_p10, %p90_p4 }
  0xd6   : > { %s10129_s5 = scalar_select %p9424_p6, 1, 0 }
  0xd7   : > { %s10130_s28 = scalar_select %p9433_p0, 1, 0 }
  0xd8   : > { %p9437_p13 = por %p535_p11, %p96_p1  ;;  %s6609_s21 = sshll.u32 %s790_s20, 6 }
  0xd9   : > { %s7289_s16 = sshll.u32 %s9090_s25, 10  ;;  %s10132_s29 = sld [smem:[#allocation41_spill]] }
  0xda   : > { %s10131_s6 = scalar_select %p9437_p13, 1, 0 }
  0xdb   : > { %s794_s7 = scalar_lea.vmem [#allocation2], %s6609_s21  ;;  %p9449_p2 = pnand %p7564_p12, %p9418_p9 }
  0xdc   : > { %s802_s9 = sshll.u32 %s794_s7, 4  ;;  %s791_s12 = scalar_lea.sflag [#allocation3], %s790_s20  ;;  %s803_s9 = int_to_ptr.vmem [resolvable:$true] %s802_s9 }
  0xdd   : > { %p8916_p7 = pneg %p9449_p2 }
  0xdf   : > { %s9445_s23 = scalar_lea.hbm %s10132_s29, %s7289_s16  ;;  %s8919_s1 = scalar_lea.hbm %s10132_s29, 2048 }
  0xe0   : > { %s8914_s13 = scalar_lea.hbm %s9445_s23, 1024  ;;  %p8920_p1 = scmp.lt.s32.totalorder %s9445_s23, %s10132_s29 }
  0xe1   : > { %p8915_p5 = scmp.ne.s32.totalorder %s9445_s23, %s8914_s13  ;;  %p8921_p9 = scmp.lt.s32.totalorder %s8919_s1, %s8914_s13 }
  0xe3   : > { %p8917_p4 = pnand %p8916_p7, %p8915_p5  ;;  %p8922_p8 = por %p8921_p9, %p8920_p1 }
  0xe5   : > { %p8918_p3 = pneg %p8917_p4 }
  0xe7   : > { %p8923_p10 = pnand %p8922_p8, %p8918_p3 }
  0xe9   : > { %8926 = shalt.err (!%p8923_p10)
}
  0xea   : > { %s8927_s0 = scalar_lea.vmem %s803_s9, 1024  ;;  %s9110_s20 = smov [#allocation2]  }
  0xeb   : > { %p8928_p11 = scmp.ne.s32.totalorder %s803_s9, %s8927_s0  ;;  %s8932_s14 = sshll.u32 %s9110_s20, 4  ;;  %s8933_s14 = int_to_ptr.vmem [resolvable:$false] %s8932_s14 }
  0xec   : > { %s8934_s15 = scalar_lea.vmem %s8933_s14, 2048  ;;  %p8935_p5 = scmp.lt.s32.totalorder %s803_s9, %s8933_s14 }
  0xed   : > { %p8930_p12 = pnand %p8928_p11, %p8916_p7  ;;  %p8936_p4 = scmp.lt.s32.totalorder %s8934_s15, %s8927_s0 }
  0xef   : > { %p8931_p13 = pneg %p8930_p12  ;;  %p8937_p0 = por %p8936_p4, %p8935_p5 }
  0xf1   : > { %p8938_p6 = pnand %p8937_p0, %p8931_p13 }
  0xf3   : > { %8941 = shalt.err (!%p8938_p6)
}
  0xf4   : > { %7539 = dma.hbm_to_vmem [thread:$0]  (!%p9449_p2), %s9445_s23, 1024, %s803_s9, %s791_s12  }
  0xf5   : > { %p10134_p3 = scmp.ne.s32.totalorder %s10110_s2, 0 }
  0xf6   : > { %s9470_s13 = sand.u32 (!%p10134_p3), 1, %s9082_s30   ;;  %p10135_p7 = scmp.ne.s32.totalorder (!%p10134_p3), %s10129_s5, 0 }
  0xf7   : > { %819 = sbr.rel (%p10134_p3) target bundleno = 1937 (0x791), region = 100  ;;  %s6613_s16 = sshll.u32 (!%p10134_p3), %s9470_s13, 6 }
  0xf8   : > { %s822_s27 = scalar_lea.sflag (!%p10134_p3), [#allocation3], %s9470_s13  ;;  %s9474_s14 = scalar_lea.vmem (!%p10134_p3), [#allocation2], %s6613_s16 }
  0xfc   : > { %9037 = dma.done.wait (%p10135_p7), %s822_s27, 1024  }
  0xfd   : > { %9039 = vsyncadd (%p10135_p7), %s822_s27, 4294966272  ;;  %p10136_p6 = scmp.eq.s32.totalorder %s9259_s26, 0 }
  0xff   : > { %9041 = dma.done.wait (%p10136_p6), [#allocation6], 49152   ;;  %p10137_p0 = pmov %p10136_p6 }
 0x101   : > { %9043 = vsyncadd (%p10137_p0), [#allocation6], 4294918144  ;;  %p10138_p13 = pmov %p10137_p0 }
 0x102   : > { %p10139_p2 = pmov %p10137_p0 }
 0x103   : > { %9045 = dma.done.wait (%p10138_p13), [#allocation9], 16448  }
 0x104   : > { %9047 = vsyncadd (%p10139_p2), [#allocation9], 4294950848  ;;  %p10140_p1 = pmov %p10137_p0 }
 0x105   : > { %p10141_p9 = pmov %p10137_p0 }
 0x106   : > { %9049 = dma.done.wait (%p10140_p1), [#allocation12], 80  }
 0x107   : > { %9051 = vsyncadd (%p10141_p9), [#allocation12], 4294967216  ;;  %p10142_p8 = pmov %p10137_p0 }
 0x108   : > { %p10143_p10 = pmov %p10137_p0 }
 0x109   : > { %9053 = dma.done.wait (%p10142_p8), [#allocation15], 528  }
 0x10a   : > { %9055 = vsyncadd (%p10143_p10), [#allocation15], 4294966768  ;;  %p10144_p11 = pmov %p10137_p0 }
 0x10b   : > { %p10145_p12 = pmov %p10137_p0 }
 0x10c   : > { %9057 = dma.done.wait (%p10144_p11), [#allocation18], 4112  }
 0x10d   : > { %9059 = vsyncadd (%p10145_p12), [#allocation18], 4294963184  ;;  %p10146_p5 = pmov %p10137_p0 }
 0x10e   : > { %p10147_p4 = pmov %p10137_p0 }
 0x10f   : > { %9061 = dma.done.wait (%p10146_p5), [#allocation21], 80  }
 0x110   : > { %9063 = vsyncadd (%p10147_p4), [#allocation21], 4294967216  ;;  %p10148_p3 = pmov %p10137_p0 }
 0x111   : > { %p10149_p7 = pmov %p10137_p0 }
 0x112   : > { %9065 = dma.done.wait (%p10148_p3), [#allocation24], 2112  }
 0x113   : > { %9067 = vsyncadd (%p10149_p7), [#allocation24], 4294965184  ;;  %v7634_v0 = vld [vmem:[#allocation7 + $0xe4] ss:$16 sps:$4 sm:$0xff]   ;;  %v7638_v2 = vld [vmem:[#allocation7 + $0xe0] ss:$16 sps:$4 sm:$0xff]  }
 0x114   : > { %v7636_v1 = vld [vmem:[#allocation7 + $0x2e4] ss:$16 sps:$4 sm:$0xff]   ;;  %2671 = vmatprep.subr.bf16.mxu0 %v7634_v0  ;;  %v7639_v3 = vld [vmem:[#allocation7 + $0x2e0] ss:$16 sps:$4 sm:$0xff]   ;;  %v992_v46 = vld [vmem:[%s9474_s14 + $0x8] sm:$0xff]  ;;  %p968_p6 = scmp.lt.s32.totalorder %s9259_s26, 1 }
 0x115   : > { %2712 = vmatprep.subr.bf16.mxu1 %v7636_v1  ;;  %v7640_v4 = vld [vmem:[#allocation7 + $0xc4] ss:$16 sps:$4 sm:$0xff]   ;;  %2672 = vmatpush1.bf16.msra.mxu0 %v7638_v2  ;;  %v7644_v6 = vld [vmem:[#allocation7 + $0xc0] ss:$16 sps:$4 sm:$0xff]   ;;  %v9509_v49 = vpack.c.bf16 %v992_v46, %v992_v46  ;;  %v994_v50 = vld [vmem:[%s9474_s14 + $0x18] sm:$0xff]  ;;  %s10150_s2 = sld [smem:[#allocation40_spill]] }
 0x116   : > { %2713 = vmatpush1.bf16.msra.mxu1 %v7639_v3  ;;  %v7642_v5 = vld [vmem:[#allocation7 + $0x2c4] ss:$16 sps:$4 sm:$0xff]   ;;  %2673 = vmatprep.subr.bf16.mxu0 %v7640_v4  ;;  %v7645_v7 = vld [vmem:[#allocation7 + $0x2c0] ss:$16 sps:$4 sm:$0xff]   ;;  %v9512_v52 = vpack.c.bf16 %v994_v50, %v994_v50  ;;  %s9548_s9 = scalar_select %p968_p6, %s9259_s26, 1  ;;  %vm9112_vm0 = vmmov 0  }
 0x117   : > { %2714 = vmatprep.subr.bf16.mxu1 %v7642_v5  ;;  %v7646_v8 = vld [vmem:[#allocation7 + $0xa4] ss:$16 sps:$4 sm:$0xff]   ;;  %v7650_v10 = vld [vmem:[#allocation7 + $0xa0] ss:$16 sps:$4 sm:$0xff]   ;;  %2703 = vmatprep.mubr.bf16.mxu0 %v9509_v49  ;;  %s10151_s7 = sld [smem:[#allocation42_spill]]  ;;  %vm5300_vm1 = vcmask 523264  }
 0x118   : > { %v7648_v9 = vld [vmem:[#allocation7 + $0x2a4] ss:$16 sps:$4 sm:$0xff]   ;;  %v7651_v11 = vld [vmem:[#allocation7 + $0x2a0] ss:$16 sps:$4 sm:$0xff]   ;;  %2744 = vmatprep.mubr.bf16.mxu1 %v9512_v52  ;;  %s7290_s11 = sshll.u32 %s9548_s9, 5  ;;  %s7428_s23 = smul.u32 96, %s9548_s9 }
 0x119   : > { %2674 = vmatpush1.bf16.msra.mxu0 %v7644_v6  ;;  %v7652_v12 = vld [vmem:[#allocation7 + $0x84] ss:$16 sps:$4 sm:$0xff]   ;;  %v7656_v14 = vld [vmem:[#allocation7 + $0x80] ss:$16 sps:$4 sm:$0xff]   ;;  %s10152_s8 = sld [smem:[#allocation48_spill]]  ;;  %s9114_s21 = smov 64  }
 0x11a   : > { %2715 = vmatpush1.bf16.msra.mxu1 %v7645_v7  ;;  %2675 = vmatprep.subr.bf16.mxu0 %v7646_v8  ;;  %v7654_v13 = vld [vmem:[#allocation7 + $0x284] ss:$16 sps:$4 sm:$0xff]   ;;  %v7657_v15 = vld [vmem:[#allocation7 + $0x280] ss:$16 sps:$4 sm:$0xff]   ;;  %s10153_s10 = sld [smem:[#allocation50_spill]]  ;;  %p10156_p13 = scmp.ne.s32.totalorder %s10130_s28, 0 }
 0x11b   : > { %2716 = vmatprep.subr.bf16.mxu1 %v7648_v9  ;;  %v7658_v16 = vld [vmem:[#allocation7 + $0x64] ss:$16 sps:$4 sm:$0xff]   ;;  %v7662_v18 = vld [vmem:[#allocation7 + $0x60] ss:$16 sps:$4 sm:$0xff]   ;;  %s9554_s5 = scalar_lea.vmem %s10150_s2, %s7290_s11  ;;  %s9773_s11 = sshll.u32 %s9470_s13, 5 }
 0x11c   : > { %v7660_v17 = vld [vmem:[#allocation7 + $0x264] ss:$16 sps:$4 sm:$0xff]   ;;  %v7663_v19 = vld [vmem:[#allocation7 + $0x260] ss:$16 sps:$4 sm:$0xff]   ;;  %s9778_s12 = scalar_lea.vmem [#allocation26], %s9773_s11  ;;  %s10154_s20 = sld [smem:[#allocation56_spill]] }
 0x11d   : > { %2676 = vmatpush1.bf16.msra.mxu0 %v7650_v10  ;;  %v7664_v20 = vld [vmem:[#allocation7 + $0x44] ss:$16 sps:$4 sm:$0xff]   ;;  %v7668_v22 = vld [vmem:[#allocation7 + $0x40] ss:$16 sps:$4 sm:$0xff]   ;;  %s9590_s0 = scalar_lea.vmem %s10151_s7, %s7428_s23  ;;  %s9930_s1 = scalar_lea.vmem [#allocation29], %s9773_s11 }
 0x11e   : > { %2717 = vmatpush1.bf16.msra.mxu1 %v7651_v11  ;;  %2677 = vmatprep.subr.bf16.mxu0 %v7652_v12  ;;  %v7666_v21 = vld [vmem:[#allocation7 + $0x244] ss:$16 sps:$4 sm:$0xff]   ;;  %v7669_v23 = vld [vmem:[#allocation7 + $0x240] ss:$16 sps:$4 sm:$0xff]   ;;  %s9939_s7 = sshll.u32 %s9259_s26, 9  ;;  %s10155_s27 = sld [smem:[#allocation60_spill]] }
 0x11f   : > { %2718 = vmatprep.subr.bf16.mxu1 %v7654_v13  ;;  %v7670_v24 = vld [vmem:[#allocation7 + $0x24] ss:$16 sps:$4 sm:$0xff]   ;;  %v7674_v26 = vld [vmem:[#allocation7 + $0x20] ss:$16 sps:$4 sm:$0xff]   ;;  %s6252_s15 = sshll.u32 %s9778_s12, 4  ;;  %s6225_s2 = scalar_lea.sflag [#allocation4], %s9470_s13  ;;  %s6253_s15 = int_to_ptr.vmem [resolvable:$true] %s6252_s15 }
 0x120   : > { %v7672_v25 = vld [vmem:[#allocation7 + $0x224] ss:$16 sps:$4 sm:$0xff]   ;;  %v7675_v27 = vld [vmem:[#allocation7 + $0x220] ss:$16 sps:$4 sm:$0xff]   ;;  %s9115_s23 = smov [#allocation26]  }
 0x121   : > { %2678 = vmatpush1.bf16.msra.mxu0 %v7656_v14  ;;  %v7676_v28 = vld [vmem:[#allocation7 + $0x4] ss:$16 sps:$4 sm:$0xff]   ;;  %v7680_v30 = vld [vmem:[#allocation7] ss:$16 sps:$4 sm:$0xff]  }
 0x122   : > { %2719 = vmatpush1.bf16.msra.mxu1 %v7657_v15  ;;  %2679 = vmatprep.subr.bf16.mxu0 %v7658_v16  ;;  %v7678_v29 = vld [vmem:[#allocation7 + $0x204] ss:$16 sps:$4 sm:$0xff]   ;;  %v7681_v31 = vld [vmem:[#allocation7 + $0x200] ss:$16 sps:$4 sm:$0xff]  }
 0x123   : > { %2720 = vmatprep.subr.bf16.mxu1 %v7660_v17  ;;  %v7682_v32 = vld [vmem:[#allocation7 + $0x1e4] ss:$16 sps:$4 sm:$0xff]   ;;  %v7686_v34 = vld [vmem:[#allocation7 + $0x1e0] ss:$16 sps:$4 sm:$0xff]  }
 0x124   : > { %v7684_v33 = vld [vmem:[#allocation7 + $0x3e4] ss:$16 sps:$4 sm:$0xff]   ;;  %v7687_v35 = vld [vmem:[#allocation7 + $0x3e0] ss:$16 sps:$4 sm:$0xff]  }
 0x125   : > { %2680 = vmatpush1.bf16.msra.mxu0 %v7662_v18  ;;  %v7688_v36 = vld [vmem:[#allocation7 + $0x1c4] ss:$16 sps:$4 sm:$0xff]   ;;  %v7692_v38 = vld [vmem:[#allocation7 + $0x1c0] ss:$16 sps:$4 sm:$0xff]  }
 0x126   : > { %2721 = vmatpush1.bf16.msra.mxu1 %v7663_v19  ;;  %2681 = vmatprep.subr.bf16.mxu0 %v7664_v20  ;;  %v7690_v37 = vld [vmem:[#allocation7 + $0x3c4] ss:$16 sps:$4 sm:$0xff]   ;;  %v7693_v39 = vld [vmem:[#allocation7 + $0x3c0] ss:$16 sps:$4 sm:$0xff]  }
 0x127   : > { %2722 = vmatprep.subr.bf16.mxu1 %v7666_v21  ;;  %v7694_v40 = vld [vmem:[#allocation7 + $0x1a4] ss:$16 sps:$4 sm:$0xff]   ;;  %v7698_v42 = vld [vmem:[#allocation7 + $0x1a0] ss:$16 sps:$4 sm:$0xff]  }
 0x128   : > { %v7696_v41 = vld [vmem:[#allocation7 + $0x3a4] ss:$16 sps:$4 sm:$0xff]   ;;  %v7699_v43 = vld [vmem:[#allocation7 + $0x3a0] ss:$16 sps:$4 sm:$0xff]  }
 0x129   : > { %2682 = vmatpush1.bf16.msra.mxu0 %v7668_v22  ;;  %v7700_v44 = vld [vmem:[#allocation7 + $0x184] ss:$16 sps:$4 sm:$0xff]   ;;  %v7704_v47 = vld [vmem:[#allocation7 + $0x180] ss:$16 sps:$4 sm:$0xff]  }
 0x12a   : > { %2723 = vmatpush1.bf16.msra.mxu1 %v7669_v23  ;;  %2683 = vmatprep.subr.bf16.mxu0 %v7670_v24  ;;  %v7702_v45 = vld [vmem:[#allocation7 + $0x384] ss:$16 sps:$4 sm:$0xff]   ;;  %v7705_v48 = vld [vmem:[#allocation7 + $0x380] ss:$16 sps:$4 sm:$0xff]  }
 0x12b   : > { %2724 = vmatprep.subr.bf16.mxu1 %v7672_v25  ;;  %v7706_v51 = vld [vmem:[#allocation7 + $0x164] ss:$16 sps:$4 sm:$0xff]   ;;  %v7710_v54 = vld [vmem:[#allocation7 + $0x160] ss:$16 sps:$4 sm:$0xff]  }
 0x12c   : > { %v7708_v53 = vld [vmem:[#allocation7 + $0x364] ss:$16 sps:$4 sm:$0xff]   ;;  %v7711_v55 = vld [vmem:[#allocation7 + $0x360] ss:$16 sps:$4 sm:$0xff]  }
 0x12d   : > { %2684 = vmatpush1.bf16.msra.mxu0 %v7674_v26  ;;  %v7712_v56 = vld [vmem:[#allocation7 + $0x144] ss:$16 sps:$4 sm:$0xff]   ;;  %v7716_v58 = vld [vmem:[#allocation7 + $0x140] ss:$16 sps:$4 sm:$0xff]  }
 0x12e   : > { %2725 = vmatpush1.bf16.msra.mxu1 %v7675_v27  ;;  %2685 = vmatprep.subr.bf16.mxu0 %v7676_v28  ;;  %v7714_v57 = vld [vmem:[#allocation7 + $0x344] ss:$16 sps:$4 sm:$0xff]   ;;  %v7717_v59 = vld [vmem:[#allocation7 + $0x340] ss:$16 sps:$4 sm:$0xff]  }
 0x12f   : > { %2726 = vmatprep.subr.bf16.mxu1 %v7678_v29  ;;  %v7718_v60 = vld [vmem:[#allocation7 + $0x124] ss:$16 sps:$4 sm:$0xff]   ;;  %v7722_v62 = vld [vmem:[#allocation7 + $0x120] ss:$16 sps:$4 sm:$0xff]  }
 0x130   : > { %v7720_v61 = vld [vmem:[#allocation7 + $0x324] ss:$16 sps:$4 sm:$0xff]   ;;  %v7723_v63 = vld [vmem:[#allocation7 + $0x320] ss:$16 sps:$4 sm:$0xff]  }
 0x131   : > { %2686 = vmatpush1.bf16.msra.mxu0 %v7680_v30  ;;  %v7724_v0 = vld [vmem:[#allocation7 + $0x104] ss:$16 sps:$4 sm:$0xff]   ;;  %v7728_v2 = vld [vmem:[#allocation7 + $0x100] ss:$16 sps:$4 sm:$0xff]  }
 0x132   : > { %2727 = vmatpush1.bf16.msra.mxu1 %v7681_v31  ;;  %2687 = vmatprep.subr.bf16.mxu0 %v7682_v32  ;;  %v7726_v1 = vld [vmem:[#allocation7 + $0x304] ss:$16 sps:$4 sm:$0xff]   ;;  %v7729_v3 = vld [vmem:[#allocation7 + $0x300] ss:$16 sps:$4 sm:$0xff]  }
 0x133   : > { %2728 = vmatprep.subr.bf16.mxu1 %v7684_v33  ;;  %v991_v4 = vld [vmem:[%s9474_s14] sm:$0xff]  ;;  %v993_v5 = vld [vmem:[%s9474_s14 + $0x10] sm:$0xff] }
 0x134   : > { %v7732_v6 = vld [vmem:[#allocation7 + $0x4e4] ss:$16 sps:$4 sm:$0xff]   ;;  %v9518_v8 = vpack.c.bf16 %v991_v4, %v991_v4  ;;  %v9520_v9 = vpack.c.bf16 %v993_v5, %v993_v5  ;;  %v7730_v10 = vld [vmem:[#allocation7 + $0x4e0] ss:$16 sps:$4 sm:$0xff]  }
 0x135   : > { %2688 = vmatpush2.bf16.msra.mxu0 %v7686_v34  ;;  %v7735_v7 = vld [vmem:[#allocation7 + $0x6e4] ss:$16 sps:$4 sm:$0xff]   ;;  %v7733_v11 = vld [vmem:[#allocation7 + $0x6e0] ss:$16 sps:$4 sm:$0xff]   ;;  %v996_v34 = vld [vmem:[%s9474_s14 + $0x28] sm:$0xff] }
 0x136   : > { %2729 = vmatpush2.bf16.msra.mxu1 %v7687_v35  ;;  %2689 = vmatprep.subr.bf16.mxu0 %v7688_v36  ;;  %v7738_v12 = vld [vmem:[#allocation7 + $0x4c4] ss:$16 sps:$4 sm:$0xff]   ;;  %v7736_v14 = vld [vmem:[#allocation7 + $0x4c0] ss:$16 sps:$4 sm:$0xff]  }
 0x137   : > { %2730 = vmatprep.subr.bf16.mxu1 %v7690_v37  ;;  %v7741_v13 = vld [vmem:[#allocation7 + $0x6c4] ss:$16 sps:$4 sm:$0xff]   ;;  %v7739_v15 = vld [vmem:[#allocation7 + $0x6c0] ss:$16 sps:$4 sm:$0xff]   ;;  %v9525_v37 = vpack.c.bf16 %v996_v34, %v996_v34  ;;  %v7844_v34 = vld [vmem:[#allocation7 + $0x88] ss:$16 sps:$4 sm:$0xff]  }
 0x138   : > { %v7744_v16 = vld [vmem:[#allocation7 + $0x4a4] ss:$16 sps:$4 sm:$0xff]   ;;  %v7742_v18 = vld [vmem:[#allocation7 + $0x4a0] ss:$16 sps:$4 sm:$0xff]  }
 0x139   : > { %2690 = vmatpush2.bf16.msra.mxu0 %v7692_v38  ;;  %v7747_v17 = vld [vmem:[#allocation7 + $0x6a4] ss:$16 sps:$4 sm:$0xff]   ;;  %v7745_v19 = vld [vmem:[#allocation7 + $0x6a0] ss:$16 sps:$4 sm:$0xff]   ;;  %v998_v38 = vld [vmem:[%s9474_s14 + $0x38] sm:$0xff] }
 0x13a   : > { %2731 = vmatpush2.bf16.msra.mxu1 %v7693_v39  ;;  %2691 = vmatprep.subr.bf16.mxu0 %v7694_v40  ;;  %v7750_v20 = vld [vmem:[#allocation7 + $0x484] ss:$16 sps:$4 sm:$0xff]   ;;  %v7748_v22 = vld [vmem:[#allocation7 + $0x480] ss:$16 sps:$4 sm:$0xff]   ;;  %v9528_v40 = vpack.c.bf16 %v998_v38, %v998_v38  ;;  %v7855_v38 = vld [vmem:[#allocation7 + $0x26c] ss:$16 sps:$4 sm:$0xff]  }
 0x13b   : > { %2732 = vmatprep.subr.bf16.mxu1 %v7696_v41  ;;  %v7753_v21 = vld [vmem:[#allocation7 + $0x684] ss:$16 sps:$4 sm:$0xff]   ;;  %v7751_v23 = vld [vmem:[#allocation7 + $0x680] ss:$16 sps:$4 sm:$0xff]  }
 0x13c   : > { %v7756_v24 = vld [vmem:[#allocation7 + $0x464] ss:$16 sps:$4 sm:$0xff]   ;;  %v7754_v26 = vld [vmem:[#allocation7 + $0x460] ss:$16 sps:$4 sm:$0xff]  }
 0x13d   : > { %2692 = vmatpush2.bf16.msra.mxu0 %v7698_v42  ;;  %v7759_v25 = vld [vmem:[#allocation7 + $0x664] ss:$16 sps:$4 sm:$0xff]   ;;  %v7757_v27 = vld [vmem:[#allocation7 + $0x660] ss:$16 sps:$4 sm:$0xff]  }
 0x13e   : > { %2733 = vmatpush2.bf16.msra.mxu1 %v7699_v43  ;;  %2693 = vmatprep.subr.bf16.mxu0 %v7700_v44  ;;  %v7762_v28 = vld [vmem:[#allocation7 + $0x444] ss:$16 sps:$4 sm:$0xff]   ;;  %v7760_v30 = vld [vmem:[#allocation7 + $0x440] ss:$16 sps:$4 sm:$0xff]  }
 0x13f   : > { %2734 = vmatprep.subr.bf16.mxu1 %v7702_v45  ;;  %v7765_v29 = vld [vmem:[#allocation7 + $0x644] ss:$16 sps:$4 sm:$0xff]   ;;  %v7763_v31 = vld [vmem:[#allocation7 + $0x640] ss:$16 sps:$4 sm:$0xff]  }
 0x140   : > { %v7768_v32 = vld [vmem:[#allocation7 + $0x424] ss:$16 sps:$4 sm:$0xff]   ;;  %v7766_v35 = vld [vmem:[#allocation7 + $0x420] ss:$16 sps:$4 sm:$0xff]  }
 0x141   : > { %2694 = vmatpush2.bf16.msra.mxu0 %v7704_v47  ;;  %v7771_v33 = vld [vmem:[#allocation7 + $0x624] ss:$16 sps:$4 sm:$0xff]   ;;  %v7769_v36 = vld [vmem:[#allocation7 + $0x620] ss:$16 sps:$4 sm:$0xff]  }
 0x142   : > { %2735 = vmatpush2.bf16.msra.mxu1 %v7705_v48  ;;  %2695 = vmatprep.subr.bf16.mxu0 %v7706_v51  ;;  %v7774_v39 = vld [vmem:[#allocation7 + $0x404] ss:$16 sps:$4 sm:$0xff]   ;;  %v7772_v42 = vld [vmem:[#allocation7 + $0x400] ss:$16 sps:$4 sm:$0xff]  }
 0x143   : > { %2736 = vmatprep.subr.bf16.mxu1 %v7708_v53  ;;  %v7777_v41 = vld [vmem:[#allocation7 + $0x604] ss:$16 sps:$4 sm:$0xff]   ;;  %v7775_v43 = vld [vmem:[#allocation7 + $0x600] ss:$16 sps:$4 sm:$0xff]  }
 0x144   : > { %v7780_v44 = vld [vmem:[#allocation7 + $0x5e4] ss:$16 sps:$4 sm:$0xff]   ;;  %v7778_v46 = vld [vmem:[#allocation7 + $0x5e0] ss:$16 sps:$4 sm:$0xff]  }
 0x145   : > { %2696 = vmatpush2.bf16.msra.mxu0 %v7710_v54  ;;  %v7783_v45 = vld [vmem:[#allocation7 + $0x7e4] ss:$16 sps:$4 sm:$0xff]   ;;  %v7781_v47 = vld [vmem:[#allocation7 + $0x7e0] ss:$16 sps:$4 sm:$0xff]  }
 0x146   : > { %2737 = vmatpush2.bf16.msra.mxu1 %v7711_v55  ;;  %2697 = vmatprep.subr.bf16.mxu0 %v7712_v56  ;;  %v7786_v48 = vld [vmem:[#allocation7 + $0x5c4] ss:$16 sps:$4 sm:$0xff]   ;;  %v7784_v51 = vld [vmem:[#allocation7 + $0x5c0] ss:$16 sps:$4 sm:$0xff]  }
 0x147   : > { %2738 = vmatprep.subr.bf16.mxu1 %v7714_v57  ;;  %v7789_v50 = vld [vmem:[#allocation7 + $0x7c4] ss:$16 sps:$4 sm:$0xff]   ;;  %v7787_v53 = vld [vmem:[#allocation7 + $0x7c0] ss:$16 sps:$4 sm:$0xff]  }
 0x148   : > { %v7792_v54 = vld [vmem:[#allocation7 + $0x5a4] ss:$16 sps:$4 sm:$0xff]   ;;  %v7790_v56 = vld [vmem:[#allocation7 + $0x5a0] ss:$16 sps:$4 sm:$0xff]  }
 0x149   : > { %2698 = vmatpush2.bf16.msra.mxu0 %v7716_v58  ;;  %v7795_v55 = vld [vmem:[#allocation7 + $0x7a4] ss:$16 sps:$4 sm:$0xff]   ;;  %v7793_v57 = vld [vmem:[#allocation7 + $0x7a0] ss:$16 sps:$4 sm:$0xff]  }
 0x14a   : > { %2739 = vmatpush2.bf16.msra.mxu1 %v7717_v59  ;;  %2699 = vmatprep.subr.bf16.mxu0 %v7718_v60  ;;  %v7798_v58 = vld [vmem:[#allocation7 + $0x584] ss:$16 sps:$4 sm:$0xff]   ;;  %v7796_v60 = vld [vmem:[#allocation7 + $0x580] ss:$16 sps:$4 sm:$0xff]  }
 0x14b   : > { %2740 = vmatprep.subr.bf16.mxu1 %v7720_v61  ;;  %v7801_v59 = vld [vmem:[#allocation7 + $0x784] ss:$16 sps:$4 sm:$0xff]   ;;  %v7799_v61 = vld [vmem:[#allocation7 + $0x780] ss:$16 sps:$4 sm:$0xff]  }
 0x14c   : > { %v7808_v4 = vld [vmem:[#allocation7 + $0x540] ss:$16 sps:$4 sm:$0xff]  }
 0x14d   : > { %2700 = vmatpush2.bf16.msra.mxu0 %v7722_v62  ;;  %v7804_v62 = vld [vmem:[#allocation7 + $0x564] ss:$16 sps:$4 sm:$0xff]   ;;  %v7811_v5 = vld [vmem:[#allocation7 + $0x740] ss:$16 sps:$4 sm:$0xff]  }
 0x14e   : > { %2741 = vmatpush2.bf16.msra.mxu1 %v7723_v63  ;;  %2701 = vmatprep.subr.bf16.mxu0 %v7724_v0  ;;  %v7807_v63 = vld [vmem:[#allocation7 + $0x764] ss:$16 sps:$4 sm:$0xff]   ;;  %v7802_v0 = vld [vmem:[#allocation7 + $0x560] ss:$16 sps:$4 sm:$0xff]  }
 0x14f   : > { %2742 = vmatprep.subr.bf16.mxu1 %v7726_v1  ;;  %v7805_v1 = vld [vmem:[#allocation7 + $0x760] ss:$16 sps:$4 sm:$0xff]  }
 0x151   : > { %2702 = vmatpush2.bf16.msra.mxu0 %v7728_v2  ;;  %v7810_v2 = vld [vmem:[#allocation7 + $0x544] ss:$16 sps:$4 sm:$0xff]  }
 0x152   : > { %2743 = vmatpush2.bf16.msra.mxu1 %v7729_v3  ;;  %2753 = vmatprep.subr.bf16.mxu0 %v7732_v6  ;;  %v7813_v3 = vld [vmem:[#allocation7 + $0x744] ss:$16 sps:$4 sm:$0xff]  }
 0x153   : > { %2794 = vmatprep.subr.bf16.mxu1 %v7735_v7  ;;  %v7816_v6 = vld [vmem:[#allocation7 + $0x524] ss:$16 sps:$4 sm:$0xff]  }
 0x154   : > { %2704 = vmatmul.mubr.bf16.vlgmr.msra.gmra.mxu0 %v9518_v8  ;;  %v7819_v7 = vld [vmem:[#allocation7 + $0x724] ss:$16 sps:$4 sm:$0xff]  }
 0x155   : > { %2745 = vmatmul.mubr.bf16.vlgmr.msra.gmra.mxu1 %v9520_v9  ;;  %2754 = vmatpush1.bf16.msra.mxu0 %v7730_v10  ;;  %v7814_v10 = vld [vmem:[#allocation7 + $0x520] ss:$16 sps:$4 sm:$0xff]  }
 0x156   : > { %2795 = vmatpush1.bf16.msra.mxu1 %v7733_v11  ;;  %2755 = vmatprep.subr.bf16.mxu0 %v7738_v12  ;;  %v7817_v11 = vld [vmem:[#allocation7 + $0x720] ss:$16 sps:$4 sm:$0xff]   ;;  %v7822_v12 = vld [vmem:[#allocation7 + $0x504] ss:$16 sps:$4 sm:$0xff]  }
 0x157   : > { %2796 = vmatprep.subr.bf16.mxu1 %v7741_v13  ;;  %2785 = vmatprep.mubr.bf16.mxu0 %v9525_v37  ;;  %v7825_v13 = vld [vmem:[#allocation7 + $0x704] ss:$16 sps:$4 sm:$0xff]  }
 0x158   : > { %2826 = vmatprep.mubr.bf16.mxu1 %v9528_v40 }
 0x159   : > { %2756 = vmatpush1.bf16.msra.mxu0 %v7736_v14  ;;  %v7820_v14 = vld [vmem:[#allocation7 + $0x500] ss:$16 sps:$4 sm:$0xff]  }
 0x15a   : > { %2797 = vmatpush1.bf16.msra.mxu1 %v7739_v15  ;;  %2757 = vmatprep.subr.bf16.mxu0 %v7744_v16  ;;  %v7823_v15 = vld [vmem:[#allocation7 + $0x700] ss:$16 sps:$4 sm:$0xff]  }
 0x15b   : > { %2798 = vmatprep.subr.bf16.mxu1 %v7747_v17  ;;  %v995_v16 = vld [vmem:[%s9474_s14 + $0x20] sm:$0xff]  ;;  %v997_v17 = vld [vmem:[%s9474_s14 + $0x30] sm:$0xff]  ;;  %s6250_s14 = scalar_lea.hbm %s10155_s27, %s9939_s7 }
 0x15d   : > { %2758 = vmatpush1.bf16.msra.mxu0 %v7742_v18  ;;  %v7828_v18 = vld [vmem:[#allocation7 + $0xec] ss:$16 sps:$4 sm:$0xff]  }
 0x15e   : > { %2799 = vmatpush1.bf16.msra.mxu1 %v7745_v19  ;;  %2759 = vmatprep.subr.bf16.mxu0 %v7750_v20  ;;  %v7831_v19 = vld [vmem:[#allocation7 + $0x2ec] ss:$16 sps:$4 sm:$0xff]   ;;  %v9534_v20 = vpack.c.bf16 %v995_v16, %v995_v16 }
 0x15f   : > { %2800 = vmatprep.subr.bf16.mxu1 %v7753_v21  ;;  %v9536_v21 = vpack.c.bf16 %v997_v17, %v997_v17  ;;  %v7912_v16 = vld [vmem:[#allocation7 + $0x12c] ss:$16 sps:$4 sm:$0xff]  }
 0x160   : > { %v7915_v17 = vld [vmem:[#allocation7 + $0x32c] ss:$16 sps:$4 sm:$0xff]  }
 0x161   : > { %2760 = vmatpush1.bf16.msra.mxu0 %v7748_v22  ;;  %v7826_v22 = vld [vmem:[#allocation7 + $0xe8] ss:$16 sps:$4 sm:$0xff]  }
 0x162   : > { %2801 = vmatpush1.bf16.msra.mxu1 %v7751_v23  ;;  %2761 = vmatprep.subr.bf16.mxu0 %v7756_v24  ;;  %v7829_v23 = vld [vmem:[#allocation7 + $0x2e8] ss:$16 sps:$4 sm:$0xff]   ;;  %v7834_v24 = vld [vmem:[#allocation7 + $0xcc] ss:$16 sps:$4 sm:$0xff]  }
 0x163   : > { %2802 = vmatprep.subr.bf16.mxu1 %v7759_v25  ;;  %v7837_v25 = vld [vmem:[#allocation7 + $0x2cc] ss:$16 sps:$4 sm:$0xff]  }
 0x165   : > { %2762 = vmatpush1.bf16.msra.mxu0 %v7754_v26  ;;  %v7832_v26 = vld [vmem:[#allocation7 + $0xc8] ss:$16 sps:$4 sm:$0xff]  }
 0x166   : > { %2803 = vmatpush1.bf16.msra.mxu1 %v7757_v27  ;;  %2763 = vmatprep.subr.bf16.mxu0 %v7762_v28  ;;  %v7835_v27 = vld [vmem:[#allocation7 + $0x2c8] ss:$16 sps:$4 sm:$0xff]   ;;  %v7840_v28 = vld [vmem:[#allocation7 + $0xac] ss:$16 sps:$4 sm:$0xff]  }
 0x167   : > { %2804 = vmatprep.subr.bf16.mxu1 %v7765_v29  ;;  %v7843_v29 = vld [vmem:[#allocation7 + $0x2ac] ss:$16 sps:$4 sm:$0xff]  }
 0x169   : > { %2764 = vmatpush1.bf16.msra.mxu0 %v7760_v30  ;;  %v7838_v30 = vld [vmem:[#allocation7 + $0xa8] ss:$16 sps:$4 sm:$0xff]  }
 0x16a   : > { %2805 = vmatpush1.bf16.msra.mxu1 %v7763_v31  ;;  %2765 = vmatprep.subr.bf16.mxu0 %v7768_v32  ;;  %v7841_v31 = vld [vmem:[#allocation7 + $0x2a8] ss:$16 sps:$4 sm:$0xff]   ;;  %v7846_v32 = vld [vmem:[#allocation7 + $0x8c] ss:$16 sps:$4 sm:$0xff]  }
 0x16b   : > { %2806 = vmatprep.subr.bf16.mxu1 %v7771_v33  ;;  %v7849_v33 = vld [vmem:[#allocation7 + $0x28c] ss:$16 sps:$4 sm:$0xff]  }
 0x16d   : > { %2766 = vmatpush1.bf16.msra.mxu0 %v7766_v35  ;;  %v7847_v35 = vld [vmem:[#allocation7 + $0x288] ss:$16 sps:$4 sm:$0xff]  }
 0x16e   : > { %2807 = vmatpush1.bf16.msra.mxu1 %v7769_v36  ;;  %2767 = vmatprep.subr.bf16.mxu0 %v7774_v39  ;;  %v7852_v36 = vld [vmem:[#allocation7 + $0x6c] ss:$16 sps:$4 sm:$0xff]   ;;  %v7850_v39 = vld [vmem:[#allocation7 + $0x68] ss:$16 sps:$4 sm:$0xff]  }
 0x16f   : > { %2808 = vmatprep.subr.bf16.mxu1 %v7777_v41  ;;  %v7861_v41 = vld [vmem:[#allocation7 + $0x24c] ss:$16 sps:$4 sm:$0xff]  }
 0x171   : > { %2768 = vmatpush1.bf16.msra.mxu0 %v7772_v42  ;;  %v7856_v42 = vld [vmem:[#allocation7 + $0x48] ss:$16 sps:$4 sm:$0xff]  }
 0x172   : > { %2809 = vmatpush1.bf16.msra.mxu1 %v7775_v43  ;;  %2769 = vmatprep.subr.bf16.mxu0 %v7780_v44  ;;  %v7859_v43 = vld [vmem:[#allocation7 + $0x248] ss:$16 sps:$4 sm:$0xff]   ;;  %v7864_v44 = vld [vmem:[#allocation7 + $0x2c] ss:$16 sps:$4 sm:$0xff]  }
 0x173   : > { %2810 = vmatprep.subr.bf16.mxu1 %v7783_v45  ;;  %v7867_v45 = vld [vmem:[#allocation7 + $0x22c] ss:$16 sps:$4 sm:$0xff]  }
 0x175   : > { %2770 = vmatpush2.bf16.msra.mxu0 %v7778_v46  ;;  %v7862_v46 = vld [vmem:[#allocation7 + $0x28] ss:$16 sps:$4 sm:$0xff]  }
 0x176   : > { %2811 = vmatpush2.bf16.msra.mxu1 %v7781_v47  ;;  %2771 = vmatprep.subr.bf16.mxu0 %v7786_v48  ;;  %v7865_v47 = vld [vmem:[#allocation7 + $0x228] ss:$16 sps:$4 sm:$0xff]   ;;  %v7870_v48 = vld [vmem:[#allocation7 + $0xc] ss:$16 sps:$4 sm:$0xff]  }
 0x177   : > { %2812 = vmatprep.subr.bf16.mxu1 %v7789_v50  ;;  %v7873_v50 = vld [vmem:[#allocation7 + $0x20c] ss:$16 sps:$4 sm:$0xff]  }
 0x179   : > { %2772 = vmatpush2.bf16.msra.mxu0 %v7784_v51  ;;  %v7868_v51 = vld [vmem:[#allocation7 + $0x8] ss:$16 sps:$4 sm:$0xff]  }
 0x17a   : > { %2813 = vmatpush2.bf16.msra.mxu1 %v7787_v53  ;;  %2773 = vmatprep.subr.bf16.mxu0 %v7792_v54  ;;  %v7871_v53 = vld [vmem:[#allocation7 + $0x208] ss:$16 sps:$4 sm:$0xff]   ;;  %v7876_v54 = vld [vmem:[#allocation7 + $0x1ec] ss:$16 sps:$4 sm:$0xff]  }
 0x17b   : > { %2814 = vmatprep.subr.bf16.mxu1 %v7795_v55  ;;  %v7879_v55 = vld [vmem:[#allocation7 + $0x3ec] ss:$16 sps:$4 sm:$0xff]  }
 0x17d   : > { %2774 = vmatpush2.bf16.msra.mxu0 %v7790_v56  ;;  %v7874_v56 = vld [vmem:[#allocation7 + $0x1e8] ss:$16 sps:$4 sm:$0xff]  }
 0x17e   : > { %2815 = vmatpush2.bf16.msra.mxu1 %v7793_v57  ;;  %2775 = vmatprep.subr.bf16.mxu0 %v7798_v58  ;;  %v7877_v57 = vld [vmem:[#allocation7 + $0x3e8] ss:$16 sps:$4 sm:$0xff]   ;;  %v7882_v58 = vld [vmem:[#allocation7 + $0x1cc] ss:$16 sps:$4 sm:$0xff]  }
 0x17f   : > { %2816 = vmatprep.subr.bf16.mxu1 %v7801_v59  ;;  %v7885_v59 = vld [vmem:[#allocation7 + $0x3cc] ss:$16 sps:$4 sm:$0xff]  }
 0x181   : > { %2776 = vmatpush2.bf16.msra.mxu0 %v7796_v60  ;;  %v7880_v60 = vld [vmem:[#allocation7 + $0x1c8] ss:$16 sps:$4 sm:$0xff]  }
 0x182   : > { %2817 = vmatpush2.bf16.msra.mxu1 %v7799_v61  ;;  %2777 = vmatprep.subr.bf16.mxu0 %v7804_v62  ;;  %v7883_v61 = vld [vmem:[#allocation7 + $0x3c8] ss:$16 sps:$4 sm:$0xff]   ;;  %v7888_v62 = vld [vmem:[#allocation7 + $0x1ac] ss:$16 sps:$4 sm:$0xff]  }
 0x183   : > { %2818 = vmatprep.subr.bf16.mxu1 %v7807_v63  ;;  %v7891_v63 = vld [vmem:[#allocation7 + $0x3ac] ss:$16 sps:$4 sm:$0xff]  }
 0x185   : > { %2778 = vmatpush2.bf16.msra.mxu0 %v7802_v0  ;;  %v7886_v0 = vld [vmem:[#allocation7 + $0x1a8] ss:$16 sps:$4 sm:$0xff]  }
 0x186   : > { %2819 = vmatpush2.bf16.msra.mxu1 %v7805_v1  ;;  %2779 = vmatprep.subr.bf16.mxu0 %v7810_v2  ;;  %v7889_v1 = vld [vmem:[#allocation7 + $0x3a8] ss:$16 sps:$4 sm:$0xff]   ;;  %v7894_v2 = vld [vmem:[#allocation7 + $0x18c] ss:$16 sps:$4 sm:$0xff]  }
 0x187   : > { %2820 = vmatprep.subr.bf16.mxu1 %v7813_v3  ;;  %v7897_v3 = vld [vmem:[#allocation7 + $0x38c] ss:$16 sps:$4 sm:$0xff]  }
 0x189   : > { %2780 = vmatpush2.bf16.msra.mxu0 %v7808_v4  ;;  %v7892_v4 = vld [vmem:[#allocation7 + $0x188] ss:$16 sps:$4 sm:$0xff]  }
 0x18a   : > { %2821 = vmatpush2.bf16.msra.mxu1 %v7811_v5  ;;  %2781 = vmatprep.subr.bf16.mxu0 %v7816_v6  ;;  %v7895_v5 = vld [vmem:[#allocation7 + $0x388] ss:$16 sps:$4 sm:$0xff]   ;;  %v7900_v6 = vld [vmem:[#allocation7 + $0x16c] ss:$16 sps:$4 sm:$0xff]  }
 0x18b   : > { %2822 = vmatprep.subr.bf16.mxu1 %v7819_v7  ;;  %v7903_v7 = vld [vmem:[#allocation7 + $0x36c] ss:$16 sps:$4 sm:$0xff]  }
 0x18d   : > { %2782 = vmatpush2.bf16.msra.mxu0 %v7814_v10  ;;  %v7898_v10 = vld [vmem:[#allocation7 + $0x168] ss:$16 sps:$4 sm:$0xff]  }
 0x18e   : > { %2823 = vmatpush2.bf16.msra.mxu1 %v7817_v11  ;;  %2783 = vmatprep.subr.bf16.mxu0 %v7822_v12  ;;  %v7901_v11 = vld [vmem:[#allocation7 + $0x368] ss:$16 sps:$4 sm:$0xff]   ;;  %v7906_v12 = vld [vmem:[#allocation7 + $0x14c] ss:$16 sps:$4 sm:$0xff]  }
 0x18f   : > { %2824 = vmatprep.subr.bf16.mxu1 %v7825_v13  ;;  %v7909_v13 = vld [vmem:[#allocation7 + $0x34c] ss:$16 sps:$4 sm:$0xff]  }
 0x191   : > { %2784 = vmatpush2.bf16.msra.mxu0 %v7820_v14  ;;  %v7904_v14 = vld [vmem:[#allocation7 + $0x148] ss:$16 sps:$4 sm:$0xff]  }
 0x192   : > { %2825 = vmatpush2.bf16.msra.mxu1 %v7823_v15  ;;  %2835 = vmatprep.subr.bf16.mxu0 %v7828_v18  ;;  %v7907_v15 = vld [vmem:[#allocation7 + $0x348] ss:$16 sps:$4 sm:$0xff]  }
 0x193   : > { %2876 = vmatprep.subr.bf16.mxu1 %v7831_v19  ;;  %v7910_v18 = vld [vmem:[#allocation7 + $0x128] ss:$16 sps:$4 sm:$0xff]  }
 0x194   : > { %2786 = vmatmul.mubr.bf16.vlgmr.msra.gmra.mxu0 %v9534_v20  ;;  %v7913_v19 = vld [vmem:[#allocation7 + $0x328] ss:$16 sps:$4 sm:$0xff]  }
 0x195   : > { %2827 = vmatmul.mubr.bf16.vlgmr.msra.gmra.mxu1 %v9536_v21  ;;  %2836 = vmatpush1.bf16.msra.mxu0 %v7826_v22  ;;  %v7918_v22 = vld [vmem:[#allocation7 + $0x10c] ss:$16 sps:$4 sm:$0xff]  }
 0x196   : > { %2877 = vmatpush1.bf16.msra.mxu1 %v7829_v23  ;;  %2837 = vmatprep.subr.bf16.mxu0 %v7834_v24  ;;  %v7921_v23 = vld [vmem:[#allocation7 + $0x30c] ss:$16 sps:$4 sm:$0xff]   ;;  %v7916_v24 = vld [vmem:[#allocation7 + $0x108] ss:$16 sps:$4 sm:$0xff]  }
 0x197   : > { %2878 = vmatprep.subr.bf16.mxu1 %v7837_v25  ;;  %2867 = vmatprep.mubr.bf16.mxu0 %v9509_v49  ;;  %v7853_v49 = vld [vmem:[#allocation7 + $0x268] ss:$16 sps:$4 sm:$0xff]  }
 0x198   : > { %2908 = vmatprep.mubr.bf16.mxu1 %v9512_v52  ;;  %v7858_v52 = vld [vmem:[#allocation7 + $0x4c] ss:$16 sps:$4 sm:$0xff]   ;;  %v7919_v25 = vld [vmem:[#allocation7 + $0x308] ss:$16 sps:$4 sm:$0xff]  }
 0x199   : > { %2838 = vmatpush1.bf16.msra.mxu0 %v7832_v26  ;;  %v7924_v26 = vld [vmem:[#allocation7 + $0x4ec] ss:$16 sps:$4 sm:$0xff]  }
 0x19a   : > { %2879 = vmatpush1.bf16.msra.mxu1 %v7835_v27  ;;  %2839 = vmatprep.subr.bf16.mxu0 %v7840_v28  ;;  %v7927_v27 = vld [vmem:[#allocation7 + $0x6ec] ss:$16 sps:$4 sm:$0xff]   ;;  %v7922_v28 = vld [vmem:[#allocation7 + $0x4e8] ss:$16 sps:$4 sm:$0xff]  }
 0x19b   : > { %2880 = vmatprep.subr.bf16.mxu1 %v7843_v29  ;;  %v7925_v29 = vld [vmem:[#allocation7 + $0x6e8] ss:$16 sps:$4 sm:$0xff]  }
 0x19d   : > { %2840 = vmatpush1.bf16.msra.mxu0 %v7838_v30  ;;  %v7930_v30 = vld [vmem:[#allocation7 + $0x4cc] ss:$16 sps:$4 sm:$0xff]  }
 0x19e   : > { %2881 = vmatpush1.bf16.msra.mxu1 %v7841_v31  ;;  %2841 = vmatprep.subr.bf16.mxu0 %v7846_v32  ;;  %v7933_v31 = vld [vmem:[#allocation7 + $0x6cc] ss:$16 sps:$4 sm:$0xff]   ;;  %v7928_v32 = vld [vmem:[#allocation7 + $0x4c8] ss:$16 sps:$4 sm:$0xff]  }
 0x19f   : > { %2882 = vmatprep.subr.bf16.mxu1 %v7849_v33  ;;  %v7931_v33 = vld [vmem:[#allocation7 + $0x6c8] ss:$16 sps:$4 sm:$0xff]  }
 0x1a1   : > { %2842 = vmatpush1.bf16.msra.mxu0 %v7844_v34  ;;  %v7936_v34 = vld [vmem:[#allocation7 + $0x4ac] ss:$16 sps:$4 sm:$0xff]  }
 0x1a2   : > { %2883 = vmatpush1.bf16.msra.mxu1 %v7847_v35  ;;  %2843 = vmatprep.subr.bf16.mxu0 %v7852_v36  ;;  %v7939_v35 = vld [vmem:[#allocation7 + $0x6ac] ss:$16 sps:$4 sm:$0xff]   ;;  %v7934_v36 = vld [vmem:[#allocation7 + $0x4a8] ss:$16 sps:$4 sm:$0xff]  }
 0x1a3   : > { %2884 = vmatprep.subr.bf16.mxu1 %v7855_v38  ;;  %v7937_v38 = vld [vmem:[#allocation7 + $0x6a8] ss:$16 sps:$4 sm:$0xff]  }
 0x1a5   : > { %2844 = vmatpush1.bf16.msra.mxu0 %v7850_v39  ;;  %v7942_v39 = vld [vmem:[#allocation7 + $0x48c] ss:$16 sps:$4 sm:$0xff]  }
 0x1a6   : > { %2885 = vmatpush1.bf16.msra.mxu1 %v7853_v49  ;;  %2845 = vmatprep.subr.bf16.mxu0 %v7858_v52  ;;  %v7943_v49 = vld [vmem:[#allocation7 + $0x688] ss:$16 sps:$4 sm:$0xff]   ;;  %v7948_v52 = vld [vmem:[#allocation7 + $0x46c] ss:$16 sps:$4 sm:$0xff]  }
 0x1a7   : > { %2886 = vmatprep.subr.bf16.mxu1 %v7861_v41  ;;  %v7951_v41 = vld [vmem:[#allocation7 + $0x66c] ss:$16 sps:$4 sm:$0xff]  }
 0x1a9   : > { %2846 = vmatpush1.bf16.msra.mxu0 %v7856_v42  ;;  %v7946_v42 = vld [vmem:[#allocation7 + $0x468] ss:$16 sps:$4 sm:$0xff]  }
 0x1aa   : > { %2887 = vmatpush1.bf16.msra.mxu1 %v7859_v43  ;;  %2847 = vmatprep.subr.bf16.mxu0 %v7864_v44  ;;  %v7957_v43 = vld [vmem:[#allocation7 + $0x64c] ss:$16 sps:$4 sm:$0xff]   ;;  %v7952_v44 = vld [vmem:[#allocation7 + $0x448] ss:$16 sps:$4 sm:$0xff]  }
 0x1ab   : > { %2888 = vmatprep.subr.bf16.mxu1 %v7867_v45  ;;  %v7955_v45 = vld [vmem:[#allocation7 + $0x648] ss:$16 sps:$4 sm:$0xff]  }
 0x1ad   : > { %2848 = vmatpush1.bf16.msra.mxu0 %v7862_v46  ;;  %v7960_v46 = vld [vmem:[#allocation7 + $0x42c] ss:$16 sps:$4 sm:$0xff]  }
 0x1ae   : > { %2889 = vmatpush1.bf16.msra.mxu1 %v7865_v47  ;;  %2849 = vmatprep.subr.bf16.mxu0 %v7870_v48  ;;  %v7963_v47 = vld [vmem:[#allocation7 + $0x62c] ss:$16 sps:$4 sm:$0xff]   ;;  %v7958_v48 = vld [vmem:[#allocation7 + $0x428] ss:$16 sps:$4 sm:$0xff]  }
 0x1af   : > { %2890 = vmatprep.subr.bf16.mxu1 %v7873_v50  ;;  %v7961_v50 = vld [vmem:[#allocation7 + $0x628] ss:$16 sps:$4 sm:$0xff]  }
 0x1b1   : > { %2850 = vmatpush1.bf16.msra.mxu0 %v7868_v51  ;;  %v7966_v51 = vld [vmem:[#allocation7 + $0x40c] ss:$16 sps:$4 sm:$0xff]  }
 0x1b2   : > { %2891 = vmatpush1.bf16.msra.mxu1 %v7871_v53  ;;  %2851 = vmatprep.subr.bf16.mxu0 %v7876_v54  ;;  %v7969_v53 = vld [vmem:[#allocation7 + $0x60c] ss:$16 sps:$4 sm:$0xff]   ;;  %v7964_v54 = vld [vmem:[#allocation7 + $0x408] ss:$16 sps:$4 sm:$0xff]  }
 0x1b3   : > { %2892 = vmatprep.subr.bf16.mxu1 %v7879_v55  ;;  %v7967_v55 = vld [vmem:[#allocation7 + $0x608] ss:$16 sps:$4 sm:$0xff]  }
 0x1b5   : > { %2852 = vmatpush2.bf16.msra.mxu0 %v7874_v56  ;;  %v7972_v56 = vld [vmem:[#allocation7 + $0x5ec] ss:$16 sps:$4 sm:$0xff]  }
 0x1b6   : > { %2893 = vmatpush2.bf16.msra.mxu1 %v7877_v57  ;;  %2853 = vmatprep.subr.bf16.mxu0 %v7882_v58  ;;  %v7975_v57 = vld [vmem:[#allocation7 + $0x7ec] ss:$16 sps:$4 sm:$0xff]   ;;  %v7970_v58 = vld [vmem:[#allocation7 + $0x5e8] ss:$16 sps:$4 sm:$0xff]  }
 0x1b7   : > { %2894 = vmatprep.subr.bf16.mxu1 %v7885_v59  ;;  %v7973_v59 = vld [vmem:[#allocation7 + $0x7e8] ss:$16 sps:$4 sm:$0xff]  }
 0x1b9   : > { %2854 = vmatpush2.bf16.msra.mxu0 %v7880_v60  ;;  %v7978_v60 = vld [vmem:[#allocation7 + $0x5cc] ss:$16 sps:$4 sm:$0xff]  }
 0x1ba   : > { %2895 = vmatpush2.bf16.msra.mxu1 %v7883_v61  ;;  %2855 = vmatprep.subr.bf16.mxu0 %v7888_v62  ;;  %v7981_v61 = vld [vmem:[#allocation7 + $0x7cc] ss:$16 sps:$4 sm:$0xff]   ;;  %v7976_v62 = vld [vmem:[#allocation7 + $0x5c8] ss:$16 sps:$4 sm:$0xff]  }
 0x1bb   : > { %2896 = vmatprep.subr.bf16.mxu1 %v7891_v63  ;;  %v7979_v63 = vld [vmem:[#allocation7 + $0x7c8] ss:$16 sps:$4 sm:$0xff]  }
 0x1bd   : > { %2856 = vmatpush2.bf16.msra.mxu0 %v7886_v0  ;;  %v7984_v0 = vld [vmem:[#allocation7 + $0x5ac] ss:$16 sps:$4 sm:$0xff]  }
 0x1be   : > { %2897 = vmatpush2.bf16.msra.mxu1 %v7889_v1  ;;  %2857 = vmatprep.subr.bf16.mxu0 %v7894_v2  ;;  %v7987_v1 = vld [vmem:[#allocation7 + $0x7ac] ss:$16 sps:$4 sm:$0xff]   ;;  %v7982_v2 = vld [vmem:[#allocation7 + $0x5a8] ss:$16 sps:$4 sm:$0xff]  }
 0x1bf   : > { %2898 = vmatprep.subr.bf16.mxu1 %v7897_v3  ;;  %v7985_v3 = vld [vmem:[#allocation7 + $0x7a8] ss:$16 sps:$4 sm:$0xff]  }
 0x1c1   : > { %2858 = vmatpush2.bf16.msra.mxu0 %v7892_v4  ;;  %v7990_v4 = vld [vmem:[#allocation7 + $0x58c] ss:$16 sps:$4 sm:$0xff]  }
 0x1c2   : > { %2899 = vmatpush2.bf16.msra.mxu1 %v7895_v5  ;;  %2859 = vmatprep.subr.bf16.mxu0 %v7900_v6  ;;  %v7993_v5 = vld [vmem:[#allocation7 + $0x78c] ss:$16 sps:$4 sm:$0xff]   ;;  %v7988_v6 = vld [vmem:[#allocation7 + $0x588] ss:$16 sps:$4 sm:$0xff]  }
 0x1c3   : > { %2900 = vmatprep.subr.bf16.mxu1 %v7903_v7  ;;  %v7991_v7 = vld [vmem:[#allocation7 + $0x788] ss:$16 sps:$4 sm:$0xff]  }
 0x1c5   : > { %2860 = vmatpush2.bf16.msra.mxu0 %v7898_v10  ;;  %v7996_v10 = vld [vmem:[#allocation7 + $0x56c] ss:$16 sps:$4 sm:$0xff]  }
 0x1c6   : > { %2901 = vmatpush2.bf16.msra.mxu1 %v7901_v11  ;;  %2861 = vmatprep.subr.bf16.mxu0 %v7906_v12  ;;  %v7999_v11 = vld [vmem:[#allocation7 + $0x76c] ss:$16 sps:$4 sm:$0xff]   ;;  %v7994_v12 = vld [vmem:[#allocation7 + $0x568] ss:$16 sps:$4 sm:$0xff]  }
 0x1c7   : > { %2902 = vmatprep.subr.bf16.mxu1 %v7909_v13  ;;  %v7997_v13 = vld [vmem:[#allocation7 + $0x768] ss:$16 sps:$4 sm:$0xff]  }
 0x1c9   : > { %2862 = vmatpush2.bf16.msra.mxu0 %v7904_v14  ;;  %v8002_v14 = vld [vmem:[#allocation7 + $0x54c] ss:$16 sps:$4 sm:$0xff]  }
 0x1ca   : > { %2903 = vmatpush2.bf16.msra.mxu1 %v7907_v15  ;;  %2863 = vmatprep.subr.bf16.mxu0 %v7912_v16  ;;  %v8005_v15 = vld [vmem:[#allocation7 + $0x74c] ss:$16 sps:$4 sm:$0xff]   ;;  %v8000_v16 = vld [vmem:[#allocation7 + $0x548] ss:$16 sps:$4 sm:$0xff]  }
 0x1cb   : > { %2904 = vmatprep.subr.bf16.mxu1 %v7915_v17  ;;  %v8003_v17 = vld [vmem:[#allocation7 + $0x748] ss:$16 sps:$4 sm:$0xff]  }
 0x1cd   : > { %2864 = vmatpush2.bf16.msra.mxu0 %v7910_v18  ;;  %v8008_v18 = vld [vmem:[#allocation7 + $0x52c] ss:$16 sps:$4 sm:$0xff]  }
 0x1ce   : > { %2905 = vmatpush2.bf16.msra.mxu1 %v7913_v19  ;;  %2865 = vmatprep.subr.bf16.mxu0 %v7918_v22  ;;  %v8011_v19 = vld [vmem:[#allocation7 + $0x72c] ss:$16 sps:$4 sm:$0xff]   ;;  %v8006_v22 = vld [vmem:[#allocation7 + $0x528] ss:$16 sps:$4 sm:$0xff]  }
 0x1cf   : > { %2906 = vmatprep.subr.bf16.mxu1 %v7921_v23  ;;  %v8009_v23 = vld [vmem:[#allocation7 + $0x728] ss:$16 sps:$4 sm:$0xff]  }
 0x1d1   : > { %2866 = vmatpush2.bf16.msra.mxu0 %v7916_v24  ;;  %v8014_v24 = vld [vmem:[#allocation7 + $0x50c] ss:$16 sps:$4 sm:$0xff]  }
 0x1d2   : > { %2907 = vmatpush2.bf16.msra.mxu1 %v7919_v25  ;;  %2917 = vmatprep.subr.bf16.mxu0 %v7924_v26  ;;  %v8017_v25 = vld [vmem:[#allocation7 + $0x70c] ss:$16 sps:$4 sm:$0xff]   ;;  %v8012_v26 = vld [vmem:[#allocation7 + $0x508] ss:$16 sps:$4 sm:$0xff]  }
 0x1d3   : > { %2958 = vmatprep.subr.bf16.mxu1 %v7927_v27  ;;  %v8015_v27 = vld [vmem:[#allocation7 + $0x708] ss:$16 sps:$4 sm:$0xff]  }
 0x1d4   : > { %2868 = vmatmul.mubr.bf16.vlgmr.msra.gmra.mxu0 %v9518_v8  ;;  %v7945_v8 = vld [vmem:[#allocation7 + $0x68c] ss:$16 sps:$4 sm:$0xff]  }
 0x1d5   : > { %2909 = vmatmul.mubr.bf16.vlgmr.msra.gmra.mxu1 %v9520_v9  ;;  %2918 = vmatpush1.bf16.msra.mxu0 %v7922_v28  ;;  %v7940_v9 = vld [vmem:[#allocation7 + $0x488] ss:$16 sps:$4 sm:$0xff]   ;;  %v8020_v28 = vld [vmem:[#allocation5 + $0xe4] ss:$16 sps:$4 sm:$0xff]  }
 0x1d6   : > { %2959 = vmatpush1.bf16.msra.mxu1 %v7925_v29  ;;  %2919 = vmatprep.subr.bf16.mxu0 %v7930_v30  ;;  %v8023_v29 = vld [vmem:[#allocation5 + $0x2e4] ss:$16 sps:$4 sm:$0xff]   ;;  %v8018_v30 = vld [vmem:[#allocation5 + $0xe0] ss:$16 sps:$4 sm:$0xff]  }
 0x1d7   : > { %2960 = vmatprep.subr.bf16.mxu1 %v7933_v31  ;;  %2949 = vmatprep.mubr.bf16.mxu0 %v9525_v37  ;;  %v7949_v37 = vld [vmem:[#allocation7 + $0x668] ss:$16 sps:$4 sm:$0xff]   ;;  %v8021_v31 = vld [vmem:[#allocation5 + $0x2e0] ss:$16 sps:$4 sm:$0xff]  }
 0x1d8   : > { %2990 = vmatprep.mubr.bf16.mxu1 %v9528_v40  ;;  %v7954_v40 = vld [vmem:[#allocation7 + $0x44c] ss:$16 sps:$4 sm:$0xff]  }
 0x1d9   : > { %2920 = vmatpush1.bf16.msra.mxu0 %v7928_v32  ;;  %v984_v32 = vld [vmem:[%s9554_s5 + $0x8] sm:$0xff] }
 0x1da   : > { %2961 = vmatpush1.bf16.msra.mxu1 %v7931_v33  ;;  %2921 = vmatprep.subr.bf16.mxu0 %v7936_v34  ;;  %v986_v33 = vld [vmem:[%s9554_s5 + $0x18] sm:$0xff]  ;;  %v8026_v34 = vld [vmem:[#allocation5 + $0xc4] ss:$16 sps:$4 sm:$0xff]  }
 0x1db   : > { %2962 = vmatprep.subr.bf16.mxu1 %v7939_v35  ;;  %v8029_v35 = vld [vmem:[#allocation5 + $0x2c4] ss:$16 sps:$4 sm:$0xff]  }
 0x1dd   : > { %2922 = vmatpush1.bf16.msra.mxu0 %v7934_v36  ;;  %v9558_v36 = vpack.c.bf16 %v984_v32, %v984_v32  ;;  %v8096_v32 = vld [vmem:[#allocation5 + $0x140] ss:$16 sps:$4 sm:$0xff]  }
 0x1de   : > { %2963 = vmatpush1.bf16.msra.mxu1 %v7937_v38  ;;  %2923 = vmatprep.subr.bf16.mxu0 %v7942_v39  ;;  %v9560_v38 = vpack.c.bf16 %v986_v33, %v986_v33  ;;  %v8099_v33 = vld [vmem:[#allocation5 + $0x340] ss:$16 sps:$4 sm:$0xff]  }
 0x1df   : > { %2964 = vmatprep.subr.bf16.mxu1 %v7945_v8 }
 0x1e1   : > { %2924 = vmatpush1.bf16.msra.mxu0 %v7940_v9  ;;  %v8024_v9 = vld [vmem:[#allocation5 + $0xc0] ss:$16 sps:$4 sm:$0xff]  }
 0x1e2   : > { %2965 = vmatpush1.bf16.msra.mxu1 %v7943_v49  ;;  %2925 = vmatprep.subr.bf16.mxu0 %v7948_v52  ;;  %v8027_v49 = vld [vmem:[#allocation5 + $0x2c0] ss:$16 sps:$4 sm:$0xff]  }
 0x1e3   : > { %2966 = vmatprep.subr.bf16.mxu1 %v7951_v41  ;;  %v8032_v41 = vld [vmem:[#allocation5 + $0xa4] ss:$16 sps:$4 sm:$0xff]  }
 0x1e5   : > { %2926 = vmatpush1.bf16.msra.mxu0 %v7946_v42 }
 0x1e6   : > { %2967 = vmatpush1.bf16.msra.mxu1 %v7949_v37  ;;  %2927 = vmatprep.subr.bf16.mxu0 %v7954_v40  ;;  %v8035_v40 = vld [vmem:[#allocation5 + $0x2a4] ss:$16 sps:$4 sm:$0xff]  }
 0x1e7   : > { %2968 = vmatprep.subr.bf16.mxu1 %v7957_v43 }
 0x1e9   : > { %2928 = vmatpush1.bf16.msra.mxu0 %v7952_v44  ;;  %v8030_v44 = vld [vmem:[#allocation5 + $0xa0] ss:$16 sps:$4 sm:$0xff]  }
 0x1ea   : > { %2969 = vmatpush1.bf16.msra.mxu1 %v7955_v45  ;;  %2929 = vmatprep.subr.bf16.mxu0 %v7960_v46  ;;  %v8033_v45 = vld [vmem:[#allocation5 + $0x2a0] ss:$16 sps:$4 sm:$0xff]  }
 0x1eb   : > { %2970 = vmatprep.subr.bf16.mxu1 %v7963_v47 }
 0x1ed   : > { %2930 = vmatpush1.bf16.msra.mxu0 %v7958_v48  ;;  %v8038_v48 = vld [vmem:[#allocation5 + $0x84] ss:$16 sps:$4 sm:$0xff]  }
 0x1ee   : > { %2971 = vmatpush1.bf16.msra.mxu1 %v7961_v50  ;;  %2931 = vmatprep.subr.bf16.mxu0 %v7966_v51  ;;  %v8041_v50 = vld [vmem:[#allocation5 + $0x284] ss:$16 sps:$4 sm:$0xff]   ;;  %v8036_v51 = vld [vmem:[#allocation5 + $0x80] ss:$16 sps:$4 sm:$0xff]  }
 0x1ef   : > { %2972 = vmatprep.subr.bf16.mxu1 %v7969_v53  ;;  %v8039_v53 = vld [vmem:[#allocation5 + $0x280] ss:$16 sps:$4 sm:$0xff]  }
 0x1f1   : > { %2932 = vmatpush1.bf16.msra.mxu0 %v7964_v54  ;;  %v8044_v54 = vld [vmem:[#allocation5 + $0x64] ss:$16 sps:$4 sm:$0xff]  }
 0x1f2   : > { %2973 = vmatpush1.bf16.msra.mxu1 %v7967_v55  ;;  %2933 = vmatprep.subr.bf16.mxu0 %v7972_v56  ;;  %v8047_v55 = vld [vmem:[#allocation5 + $0x264] ss:$16 sps:$4 sm:$0xff]   ;;  %v8042_v56 = vld [vmem:[#allocation5 + $0x60] ss:$16 sps:$4 sm:$0xff]  }
 0x1f3   : > { %2974 = vmatprep.subr.bf16.mxu1 %v7975_v57  ;;  %v8045_v57 = vld [vmem:[#allocation5 + $0x260] ss:$16 sps:$4 sm:$0xff]  }
 0x1f5   : > { %2934 = vmatpush2.bf16.msra.mxu0 %v7970_v58  ;;  %v8050_v58 = vld [vmem:[#allocation5 + $0x44] ss:$16 sps:$4 sm:$0xff]  }
 0x1f6   : > { %2975 = vmatpush2.bf16.msra.mxu1 %v7973_v59  ;;  %2935 = vmatprep.subr.bf16.mxu0 %v7978_v60  ;;  %v8053_v59 = vld [vmem:[#allocation5 + $0x244] ss:$16 sps:$4 sm:$0xff]   ;;  %v8048_v60 = vld [vmem:[#allocation5 + $0x40] ss:$16 sps:$4 sm:$0xff]  }
 0x1f7   : > { %2976 = vmatprep.subr.bf16.mxu1 %v7981_v61  ;;  %v8051_v61 = vld [vmem:[#allocation5 + $0x240] ss:$16 sps:$4 sm:$0xff]  }
 0x1f9   : > { %2936 = vmatpush2.bf16.msra.mxu0 %v7976_v62  ;;  %v8056_v62 = vld [vmem:[#allocation5 + $0x24] ss:$16 sps:$4 sm:$0xff]  }
 0x1fa   : > { %2977 = vmatpush2.bf16.msra.mxu1 %v7979_v63  ;;  %2937 = vmatprep.subr.bf16.mxu0 %v7984_v0  ;;  %v8059_v63 = vld [vmem:[#allocation5 + $0x224] ss:$16 sps:$4 sm:$0xff]   ;;  %v8054_v0 = vld [vmem:[#allocation5 + $0x20] ss:$16 sps:$4 sm:$0xff]  }
 0x1fb   : > { %2978 = vmatprep.subr.bf16.mxu1 %v7987_v1  ;;  %v8057_v1 = vld [vmem:[#allocation5 + $0x220] ss:$16 sps:$4 sm:$0xff]  }
 0x1fd   : > { %2938 = vmatpush2.bf16.msra.mxu0 %v7982_v2  ;;  %v8062_v2 = vld [vmem:[#allocation5 + $0x4] ss:$16 sps:$4 sm:$0xff]  }
 0x1fe   : > { %2979 = vmatpush2.bf16.msra.mxu1 %v7985_v3  ;;  %2939 = vmatprep.subr.bf16.mxu0 %v7990_v4  ;;  %v8065_v3 = vld [vmem:[#allocation5 + $0x204] ss:$16 sps:$4 sm:$0xff]   ;;  %v8060_v4 = vld [vmem:[#allocation5] ss:$16 sps:$4 sm:$0xff]  }
 0x1ff   : > { %2980 = vmatprep.subr.bf16.mxu1 %v7993_v5  ;;  %v8063_v5 = vld [vmem:[#allocation5 + $0x200] ss:$16 sps:$4 sm:$0xff]  }
 0x201   : > { %2940 = vmatpush2.bf16.msra.mxu0 %v7988_v6  ;;  %v8068_v6 = vld [vmem:[#allocation5 + $0x1e4] ss:$16 sps:$4 sm:$0xff]  }
 0x202   : > { %2981 = vmatpush2.bf16.msra.mxu1 %v7991_v7  ;;  %2941 = vmatprep.subr.bf16.mxu0 %v7996_v10  ;;  %v8071_v7 = vld [vmem:[#allocation5 + $0x3e4] ss:$16 sps:$4 sm:$0xff]   ;;  %v8066_v10 = vld [vmem:[#allocation5 + $0x1e0] ss:$16 sps:$4 sm:$0xff]  }
 0x203   : > { %2982 = vmatprep.subr.bf16.mxu1 %v7999_v11  ;;  %v8069_v11 = vld [vmem:[#allocation5 + $0x3e0] ss:$16 sps:$4 sm:$0xff]  }
 0x205   : > { %2942 = vmatpush2.bf16.msra.mxu0 %v7994_v12  ;;  %v8074_v12 = vld [vmem:[#allocation5 + $0x1c4] ss:$16 sps:$4 sm:$0xff]  }
 0x206   : > { %2983 = vmatpush2.bf16.msra.mxu1 %v7997_v13  ;;  %2943 = vmatprep.subr.bf16.mxu0 %v8002_v14  ;;  %v8077_v13 = vld [vmem:[#allocation5 + $0x3c4] ss:$16 sps:$4 sm:$0xff]   ;;  %v8072_v14 = vld [vmem:[#allocation5 + $0x1c0] ss:$16 sps:$4 sm:$0xff]  }
 0x207   : > { %2984 = vmatprep.subr.bf16.mxu1 %v8005_v15  ;;  %v8075_v15 = vld [vmem:[#allocation5 + $0x3c0] ss:$16 sps:$4 sm:$0xff]  }
 0x209   : > { %2944 = vmatpush2.bf16.msra.mxu0 %v8000_v16  ;;  %v8080_v16 = vld [vmem:[#allocation5 + $0x1a4] ss:$16 sps:$4 sm:$0xff]  }
 0x20a   : > { %2985 = vmatpush2.bf16.msra.mxu1 %v8003_v17  ;;  %2945 = vmatprep.subr.bf16.mxu0 %v8008_v18  ;;  %v8083_v17 = vld [vmem:[#allocation5 + $0x3a4] ss:$16 sps:$4 sm:$0xff]   ;;  %v8078_v18 = vld [vmem:[#allocation5 + $0x1a0] ss:$16 sps:$4 sm:$0xff]  }
 0x20b   : > { %2986 = vmatprep.subr.bf16.mxu1 %v8011_v19  ;;  %v8081_v19 = vld [vmem:[#allocation5 + $0x3a0] ss:$16 sps:$4 sm:$0xff]  }
 0x20d   : > { %2946 = vmatpush2.bf16.msra.mxu0 %v8006_v22  ;;  %v8086_v22 = vld [vmem:[#allocation5 + $0x184] ss:$16 sps:$4 sm:$0xff]  }
 0x20e   : > { %2987 = vmatpush2.bf16.msra.mxu1 %v8009_v23  ;;  %2947 = vmatprep.subr.bf16.mxu0 %v8014_v24  ;;  %v8089_v23 = vld [vmem:[#allocation5 + $0x384] ss:$16 sps:$4 sm:$0xff]   ;;  %v8084_v24 = vld [vmem:[#allocation5 + $0x180] ss:$16 sps:$4 sm:$0xff]  }
 0x20f   : > { %2988 = vmatprep.subr.bf16.mxu1 %v8017_v25  ;;  %v8087_v25 = vld [vmem:[#allocation5 + $0x380] ss:$16 sps:$4 sm:$0xff]  }
 0x211   : > { %2948 = vmatpush2.bf16.msra.mxu0 %v8012_v26  ;;  %v8092_v26 = vld [vmem:[#allocation5 + $0x164] ss:$16 sps:$4 sm:$0xff]  }
 0x212   : > { %2989 = vmatpush2.bf16.msra.mxu1 %v8015_v27  ;;  %3639 = vmatprep.subr.bf16.mxu0 %v8020_v28  ;;  %v8095_v27 = vld [vmem:[#allocation5 + $0x364] ss:$16 sps:$4 sm:$0xff]   ;;  %v8090_v28 = vld [vmem:[#allocation5 + $0x160] ss:$16 sps:$4 sm:$0xff]  }
 0x213   : > { %3680 = vmatprep.subr.bf16.mxu1 %v8023_v29  ;;  %v8093_v29 = vld [vmem:[#allocation5 + $0x360] ss:$16 sps:$4 sm:$0xff]  }
 0x214   : > { %v2705_v39 = vpop.f32.mrf.mxu0  ;;  %2950 = vmatmul.mubr.bf16.vlgmr.msra.gmra.mxu0 %v9534_v20 }
 0x215   : > { %v2746_v8 = vpop.f32.mrf.mxu1  ;;  %2991 = vmatmul.mubr.bf16.vlgmr.msra.gmra.mxu1 %v9536_v21  ;;  %3640 = vmatpush1.bf16.msra.mxu0 %v8018_v30  ;;  %v8098_v30 = vld [vmem:[#allocation5 + $0x144] ss:$16 sps:$4 sm:$0xff]  }
 0x216   : > { %v9564_v52 = vadd.f32 %v2746_v8, %v2705_v39  ;;  %3681 = vmatpush1.bf16.msra.mxu1 %v8021_v31  ;;  %v2707_v42 = vpop.f32.mrf.mxu0  ;;  %3641 = vmatprep.subr.bf16.mxu0 %v8026_v34  ;;  %v8101_v31 = vld [vmem:[#allocation5 + $0x344] ss:$16 sps:$4 sm:$0xff]   ;;  %v8102_v39 = vld [vmem:[#allocation5 + $0x120] ss:$16 sps:$4 sm:$0xff]  }
 0x217   : > { %v2748_v37 = vpop.f32.mrf.mxu1  ;;  %3682 = vmatprep.subr.bf16.mxu1 %v8029_v35  ;;  %3671 = vmatprep.mubr.bf16.mxu0 %v9558_v36  ;;  %v8104_v34 = vld [vmem:[#allocation5 + $0x124] ss:$16 sps:$4 sm:$0xff]   ;;  %v8105_v8 = vld [vmem:[#allocation5 + $0x320] ss:$16 sps:$4 sm:$0xff]  }
 0x218   : > { %v9566_v43 = vadd.f32 %v2748_v37, %v2707_v42  ;;  %3712 = vmatprep.mubr.bf16.mxu1 %v9560_v38  ;;  %v2709_v20 = vpop.f32.mrf.mxu0  ;;  %v8107_v35 = vld [vmem:[#allocation5 + $0x324] ss:$16 sps:$4 sm:$0xff]   ;;  %v8111_v42 = vld [vmem:[#allocation5 + $0x300] ss:$16 sps:$4 sm:$0xff]  }
 0x219   : > { %v2750_v21 = vpop.f32.mrf.mxu1  ;;  %3642 = vmatpush1.bf16.msra.mxu0 %v8024_v9  ;;  %v8110_v9 = vld [vmem:[#allocation5 + $0x104] ss:$16 sps:$4 sm:$0xff]  }
 0x21a   : > { %3683 = vmatpush1.bf16.msra.mxu1 %v8027_v49  ;;  %v2710_v46 = vpop.f32.mrf.mxu0  ;;  %3643 = vmatprep.subr.bf16.mxu0 %v8032_v41  ;;  %v8113_v49 = vld [vmem:[#allocation5 + $0x304] ss:$16 sps:$4 sm:$0xff]   ;;  %v8108_v41 = vld [vmem:[#allocation5 + $0x100] ss:$16 sps:$4 sm:$0xff]  }
 0x21b   : > { %v2751_v47 = vpop.f32.mrf.mxu1  ;;  %3684 = vmatprep.subr.bf16.mxu1 %v8035_v40  ;;  %v983_v37 = vld [vmem:[%s9554_s5] sm:$0xff]  ;;  %v985_v40 = vld [vmem:[%s9554_s5 + $0x10] sm:$0xff]  ;;  %v8114_v46 = vld [vmem:[#allocation5 + $0xe8] ss:$16 sps:$4 sm:$0xff]   ;;  %s8942_s5 = scalar_lea.vmem %s6253_s15, 512 }
 0x21c   : > { %v9572_v20 = vpack.c.bf16 %v983_v37, %v983_v37  ;;  %v9574_v21 = vpack.c.bf16 %v985_v40, %v985_v40  ;;  %v8117_v47 = vld [vmem:[#allocation5 + $0x2e8] ss:$16 sps:$4 sm:$0xff]   ;;  %v8188_v37 = vld [vmem:[#allocation5 + $0x16c] ss:$16 sps:$4 sm:$0xff]   ;;  %p8943_p0 = scmp.ne.s32.totalorder %s6253_s15, %s8942_s5 }
 0x21d   : > { %3644 = vmatpush1.bf16.msra.mxu0 %v8030_v44  ;;  %v8116_v44 = vld [vmem:[#allocation5 + $0xec] ss:$16 sps:$4 sm:$0xff]  }
 0x21e   : > { %3685 = vmatpush1.bf16.msra.mxu1 %v8033_v45  ;;  %3645 = vmatprep.subr.bf16.mxu0 %v8038_v48  ;;  %v8119_v45 = vld [vmem:[#allocation5 + $0x2ec] ss:$16 sps:$4 sm:$0xff]   ;;  %p8944_p2 = pnand %p8943_p0, %p10156_p13 }
 0x21f   : > { %3686 = vmatprep.subr.bf16.mxu1 %v8041_v50  ;;  %v8122_v48 = vld [vmem:[#allocation5 + $0xcc] ss:$16 sps:$4 sm:$0xff]  }
 0x220   : > { %v8125_v50 = vld [vmem:[#allocation5 + $0x2cc] ss:$16 sps:$4 sm:$0xff]   ;;  %p8945_p1 = pneg %p8944_p2 }
 0x221   : > { %3646 = vmatpush1.bf16.msra.mxu0 %v8036_v51  ;;  %v8120_v51 = vld [vmem:[#allocation5 + $0xc8] ss:$16 sps:$4 sm:$0xff]   ;;  %v8191_v40 = vld [vmem:[#allocation5 + $0x36c] ss:$16 sps:$4 sm:$0xff]  }
 0x222   : > { %3687 = vmatpush1.bf16.msra.mxu1 %v8039_v53  ;;  %3647 = vmatprep.subr.bf16.mxu0 %v8044_v54  ;;  %v8123_v53 = vld [vmem:[#allocation5 + $0x2c8] ss:$16 sps:$4 sm:$0xff]  }
 0x223   : > { %3688 = vmatprep.subr.bf16.mxu1 %v8047_v55 }
 0x225   : > { %3648 = vmatpush1.bf16.msra.mxu0 %v8042_v56  ;;  %v8128_v56 = vld [vmem:[#allocation5 + $0xac] ss:$16 sps:$4 sm:$0xff]  }
 0x226   : > { %3689 = vmatpush1.bf16.msra.mxu1 %v8045_v57  ;;  %3649 = vmatprep.subr.bf16.mxu0 %v8050_v58 }
 0x227   : > { %3690 = vmatprep.subr.bf16.mxu1 %v8053_v59 }
 0x229   : > { %3650 = vmatpush1.bf16.msra.mxu0 %v8048_v60  ;;  %v8131_v60 = vld [vmem:[#allocation5 + $0x2ac] ss:$16 sps:$4 sm:$0xff]  }
 0x22a   : > { %3691 = vmatpush1.bf16.msra.mxu1 %v8051_v61  ;;  %3651 = vmatprep.subr.bf16.mxu0 %v8056_v62 }
 0x22b   : > { %3692 = vmatprep.subr.bf16.mxu1 %v8059_v63  ;;  %v8126_v63 = vld [vmem:[#allocation5 + $0xa8] ss:$16 sps:$4 sm:$0xff]  }
 0x22d   : > { %3652 = vmatpush1.bf16.msra.mxu0 %v8054_v0 }
 0x22e   : > { %3693 = vmatpush1.bf16.msra.mxu1 %v8057_v1  ;;  %3653 = vmatprep.subr.bf16.mxu0 %v8062_v2  ;;  %v8129_v2 = vld [vmem:[#allocation5 + $0x2a8] ss:$16 sps:$4 sm:$0xff]  }
 0x22f   : > { %3694 = vmatprep.subr.bf16.mxu1 %v8065_v3 }
 0x231   : > { %3654 = vmatpush1.bf16.msra.mxu0 %v8060_v4 }
 0x232   : > { %3695 = vmatpush1.bf16.msra.mxu1 %v8063_v5  ;;  %3655 = vmatprep.subr.bf16.mxu0 %v8068_v6  ;;  %v8134_v5 = vld [vmem:[#allocation5 + $0x8c] ss:$16 sps:$4 sm:$0xff]  }
 0x233   : > { %3696 = vmatprep.subr.bf16.mxu1 %v8071_v7  ;;  %v8137_v6 = vld [vmem:[#allocation5 + $0x28c] ss:$16 sps:$4 sm:$0xff]   ;;  %v8135_v7 = vld [vmem:[#allocation5 + $0x288] ss:$16 sps:$4 sm:$0xff]  }
 0x235   : > { %3656 = vmatpush2.bf16.msra.mxu0 %v8066_v10  ;;  %v8138_v10 = vld [vmem:[#allocation5 + $0x68] ss:$16 sps:$4 sm:$0xff]  }
 0x236   : > { %3697 = vmatpush2.bf16.msra.mxu1 %v8069_v11  ;;  %3657 = vmatprep.subr.bf16.mxu0 %v8074_v12  ;;  %v8141_v11 = vld [vmem:[#allocation5 + $0x268] ss:$16 sps:$4 sm:$0xff]   ;;  %v8146_v12 = vld [vmem:[#allocation5 + $0x4c] ss:$16 sps:$4 sm:$0xff]  }
 0x237   : > { %3698 = vmatprep.subr.bf16.mxu1 %v8077_v13  ;;  %v8149_v13 = vld [vmem:[#allocation5 + $0x24c] ss:$16 sps:$4 sm:$0xff]  }
 0x239   : > { %3658 = vmatpush2.bf16.msra.mxu0 %v8072_v14  ;;  %v8144_v14 = vld [vmem:[#allocation5 + $0x48] ss:$16 sps:$4 sm:$0xff]  }
 0x23a   : > { %3699 = vmatpush2.bf16.msra.mxu1 %v8075_v15  ;;  %3659 = vmatprep.subr.bf16.mxu0 %v8080_v16  ;;  %v8147_v15 = vld [vmem:[#allocation5 + $0x248] ss:$16 sps:$4 sm:$0xff]   ;;  %v8152_v16 = vld [vmem:[#allocation5 + $0x2c] ss:$16 sps:$4 sm:$0xff]  }
 0x23b   : > { %3700 = vmatprep.subr.bf16.mxu1 %v8083_v17  ;;  %v8155_v17 = vld [vmem:[#allocation5 + $0x22c] ss:$16 sps:$4 sm:$0xff]  }
 0x23d   : > { %3660 = vmatpush2.bf16.msra.mxu0 %v8078_v18  ;;  %v8150_v18 = vld [vmem:[#allocation5 + $0x28] ss:$16 sps:$4 sm:$0xff]  }
 0x23e   : > { %3701 = vmatpush2.bf16.msra.mxu1 %v8081_v19  ;;  %3661 = vmatprep.subr.bf16.mxu0 %v8086_v22  ;;  %v8153_v19 = vld [vmem:[#allocation5 + $0x228] ss:$16 sps:$4 sm:$0xff]   ;;  %v8158_v22 = vld [vmem:[#allocation5 + $0xc] ss:$16 sps:$4 sm:$0xff]  }
 0x23f   : > { %3702 = vmatprep.subr.bf16.mxu1 %v8089_v23  ;;  %v8161_v23 = vld [vmem:[#allocation5 + $0x20c] ss:$16 sps:$4 sm:$0xff]  }
 0x241   : > { %3662 = vmatpush2.bf16.msra.mxu0 %v8084_v24  ;;  %v8156_v24 = vld [vmem:[#allocation5 + $0x8] ss:$16 sps:$4 sm:$0xff]  }
 0x242   : > { %3703 = vmatpush2.bf16.msra.mxu1 %v8087_v25  ;;  %3663 = vmatprep.subr.bf16.mxu0 %v8092_v26  ;;  %v8159_v25 = vld [vmem:[#allocation5 + $0x208] ss:$16 sps:$4 sm:$0xff]   ;;  %v8164_v26 = vld [vmem:[#allocation5 + $0x1ec] ss:$16 sps:$4 sm:$0xff]  }
 0x243   : > { %3704 = vmatprep.subr.bf16.mxu1 %v8095_v27  ;;  %v8167_v27 = vld [vmem:[#allocation5 + $0x3ec] ss:$16 sps:$4 sm:$0xff]  }
 0x245   : > { %3664 = vmatpush2.bf16.msra.mxu0 %v8090_v28  ;;  %v8162_v28 = vld [vmem:[#allocation5 + $0x1e8] ss:$16 sps:$4 sm:$0xff]  }
 0x246   : > { %3705 = vmatpush2.bf16.msra.mxu1 %v8093_v29  ;;  %3665 = vmatprep.subr.bf16.mxu0 %v8098_v30  ;;  %v8165_v29 = vld [vmem:[#allocation5 + $0x3e8] ss:$16 sps:$4 sm:$0xff]   ;;  %v8170_v30 = vld [vmem:[#allocation5 + $0x1cc] ss:$16 sps:$4 sm:$0xff]  }
 0x247   : > { %3706 = vmatprep.subr.bf16.mxu1 %v8101_v31  ;;  %v8173_v31 = vld [vmem:[#allocation5 + $0x3cc] ss:$16 sps:$4 sm:$0xff]  }
 0x249   : > { %3666 = vmatpush2.bf16.msra.mxu0 %v8096_v32  ;;  %v8168_v32 = vld [vmem:[#allocation5 + $0x1c8] ss:$16 sps:$4 sm:$0xff]  }
 0x24a   : > { %3707 = vmatpush2.bf16.msra.mxu1 %v8099_v33  ;;  %3667 = vmatprep.subr.bf16.mxu0 %v8104_v34  ;;  %v8171_v33 = vld [vmem:[#allocation5 + $0x3c8] ss:$16 sps:$4 sm:$0xff]   ;;  %v8176_v34 = vld [vmem:[#allocation5 + $0x1ac] ss:$16 sps:$4 sm:$0xff]  }
 0x24b   : > { %3708 = vmatprep.subr.bf16.mxu1 %v8107_v35  ;;  %v8179_v35 = vld [vmem:[#allocation5 + $0x3ac] ss:$16 sps:$4 sm:$0xff]  }
 0x24d   : > { %3668 = vmatpush2.bf16.msra.mxu0 %v8102_v39  ;;  %v8174_v39 = vld [vmem:[#allocation5 + $0x1a8] ss:$16 sps:$4 sm:$0xff]  }
 0x24e   : > { %3709 = vmatpush2.bf16.msra.mxu1 %v8105_v8  ;;  %3669 = vmatprep.subr.bf16.mxu0 %v8110_v9  ;;  %v8177_v8 = vld [vmem:[#allocation5 + $0x3a8] ss:$16 sps:$4 sm:$0xff]   ;;  %v8182_v9 = vld [vmem:[#allocation5 + $0x18c] ss:$16 sps:$4 sm:$0xff]  }
 0x24f   : > { %3710 = vmatprep.subr.bf16.mxu1 %v8113_v49  ;;  %v8185_v49 = vld [vmem:[#allocation5 + $0x38c] ss:$16 sps:$4 sm:$0xff]  }
 0x251   : > { %3670 = vmatpush2.bf16.msra.mxu0 %v8108_v41  ;;  %v8180_v41 = vld [vmem:[#allocation5 + $0x188] ss:$16 sps:$4 sm:$0xff]  }
 0x252   : > { %3711 = vmatpush2.bf16.msra.mxu1 %v8111_v42  ;;  %3721 = vmatprep.subr.bf16.mxu0 %v8116_v44  ;;  %v8183_v42 = vld [vmem:[#allocation5 + $0x388] ss:$16 sps:$4 sm:$0xff]  }
 0x253   : > { %3762 = vmatprep.subr.bf16.mxu1 %v8119_v45  ;;  %v8186_v44 = vld [vmem:[#allocation5 + $0x168] ss:$16 sps:$4 sm:$0xff]  }
 0x254   : > { %v2787_v54 = vpop.f32.mrf.mxu0  ;;  %3672 = vmatmul.mubr.bf16.vlgmr.msra.gmra.mxu0 %v9572_v20  ;;  %v8189_v45 = vld [vmem:[#allocation5 + $0x368] ss:$16 sps:$4 sm:$0xff]  }
 0x255   : > { %v2828_v55 = vpop.f32.mrf.mxu1  ;;  %3713 = vmatmul.mubr.bf16.vlgmr.msra.gmra.mxu1 %v9574_v21  ;;  %v2788_v57 = vadd.f32 %v2787_v54, %v9564_v52  ;;  %3722 = vmatpush1.bf16.msra.mxu0 %v8114_v46  ;;  %v8194_v46 = vld [vmem:[#allocation5 + $0x14c] ss:$16 sps:$4 sm:$0xff]   ;;  %v8198_v54 = vld [vmem:[#allocation5 + $0x128] ss:$16 sps:$4 sm:$0xff]  }
 0x256   : > { %3763 = vmatpush1.bf16.msra.mxu1 %v8117_v47  ;;  %v2789_v58 = vpop.f32.mrf.mxu0  ;;  %3723 = vmatprep.subr.bf16.mxu0 %v8122_v48  ;;  %v8197_v47 = vld [vmem:[#allocation5 + $0x34c] ss:$16 sps:$4 sm:$0xff]   ;;  %v8192_v48 = vld [vmem:[#allocation5 + $0x148] ss:$16 sps:$4 sm:$0xff]  }
 0x257   : > { %v2830_v59 = vpop.f32.mrf.mxu1  ;;  %3764 = vmatprep.subr.bf16.mxu1 %v8125_v50  ;;  %v9579_v61 = vadd.f32 %v2828_v55, %v2788_v57  ;;  %v2790_v62 = vadd.f32 %v2789_v58, %v9566_v43  ;;  %3753 = vmatprep.mubr.bf16.mxu0 %v9558_v36  ;;  %v8132_v43 = vld [vmem:[#allocation5 + $0x88] ss:$16 sps:$4 sm:$0xff]   ;;  %v8140_v36 = vld [vmem:[#allocation5 + $0x6c] ss:$16 sps:$4 sm:$0xff]  }
 0x258   : > { %3794 = vmatprep.mubr.bf16.mxu1 %v9560_v38  ;;  %v2791_v0 = vpop.f32.mrf.mxu0  ;;  %v8143_v38 = vld [vmem:[#allocation5 + $0x26c] ss:$16 sps:$4 sm:$0xff]   ;;  %v8195_v50 = vld [vmem:[#allocation5 + $0x348] ss:$16 sps:$4 sm:$0xff]  }
 0x259   : > { %v2832_v1 = vpop.f32.mrf.mxu1  ;;  %v9584_v52 = vadd.f32 %v2830_v59, %v2790_v62  ;;  %3724 = vmatpush1.bf16.msra.mxu0 %v8120_v51  ;;  %v8200_v51 = vld [vmem:[#allocation5 + $0x12c] ss:$16 sps:$4 sm:$0xff]   ;;  %v8201_v55 = vld [vmem:[#allocation5 + $0x328] ss:$16 sps:$4 sm:$0xff]   ;;  %v8243_v0 = vld [vmem:[#allocation10 + $0x2e0] ss:$16 sps:$4 sm:$0xff]  }
 0x25a   : > { %3765 = vmatpush1.bf16.msra.mxu1 %v8123_v53  ;;  %v2792_v3 = vpop.f32.mrf.mxu0  ;;  %3725 = vmatprep.subr.bf16.mxu0 %v8128_v56  ;;  %v8203_v53 = vld [vmem:[#allocation5 + $0x32c] ss:$16 sps:$4 sm:$0xff]   ;;  %v8204_v58 = vld [vmem:[#allocation5 + $0x108] ss:$16 sps:$4 sm:$0xff]  }
 0x25b   : > { %v2833_v4 = vpop.f32.mrf.mxu1  ;;  %3766 = vmatprep.subr.bf16.mxu1 %v8131_v60  ;;  %v8206_v56 = vld [vmem:[#allocation5 + $0x10c] ss:$16 sps:$4 sm:$0xff]   ;;  %v8207_v59 = vld [vmem:[#allocation5 + $0x308] ss:$16 sps:$4 sm:$0xff]  }
 0x25c   : > { %v8209_v57 = vld [vmem:[#allocation5 + $0x30c] ss:$16 sps:$4 sm:$0xff]   ;;  %v8212_v60 = vld [vmem:[#allocation10 + $0xe4] ss:$16 sps:$4 sm:$0xff]  }
 0x25d   : > { %3726 = vmatpush1.bf16.msra.mxu0 %v8126_v63  ;;  %v8245_v62 = vld [vmem:[#allocation10 + $0x2e4] ss:$16 sps:$4 sm:$0xff]   ;;  %v8210_v63 = vld [vmem:[#allocation10 + $0xe0] ss:$16 sps:$4 sm:$0xff]  }
 0x25e   : > { %3767 = vmatpush1.bf16.msra.mxu1 %v8129_v2  ;;  %3727 = vmatprep.subr.bf16.mxu0 %v8134_v5  ;;  %v3834_v1 = vld [vmem:[%s9590_s0 + $0x8] sm:$0xff]  ;;  %v3836_v3 = vld [vmem:[%s9590_s0 + $0x18] sm:$0xff]  ;;  %v8213_v5 = vld [vmem:[#allocation10 + $0xc0] ss:$16 sps:$4 sm:$0xff]  }
 0x25f   : > { %3768 = vmatprep.subr.bf16.mxu1 %v8137_v6  ;;  %v8215_v2 = vld [vmem:[#allocation10 + $0xc4] ss:$16 sps:$4 sm:$0xff]   ;;  %v9594_v6 = vpack.c.bf16 %v3834_v1, %v3834_v1 }
 0x260   : > { %v8251_v4 = vld [vmem:[#allocation10 + $0x2c4] ss:$16 sps:$4 sm:$0xff]  }
 0x261   : > { %3728 = vmatpush1.bf16.msra.mxu0 %v8132_v43  ;;  %v9596_v43 = vpack.c.bf16 %v3836_v3, %v3836_v3  ;;  %v8260_v1 = vld [vmem:[#allocation10 + $0x144] ss:$16 sps:$4 sm:$0xff]   ;;  %v8258_v3 = vld [vmem:[#allocation10 + $0x140] ss:$16 sps:$4 sm:$0xff]  }
 0x262   : > { %3769 = vmatpush1.bf16.msra.mxu1 %v8135_v7  ;;  %3729 = vmatprep.subr.bf16.mxu0 %v8140_v36 }
 0x263   : > { %3770 = vmatprep.subr.bf16.mxu1 %v8143_v38  ;;  %v8249_v38 = vld [vmem:[#allocation10 + $0x2c0] ss:$16 sps:$4 sm:$0xff]  }
 0x265   : > { %3730 = vmatpush1.bf16.msra.mxu0 %v8138_v10 }
 0x266   : > { %3771 = vmatpush1.bf16.msra.mxu1 %v8141_v11  ;;  %3731 = vmatprep.subr.bf16.mxu0 %v8146_v12 }
 0x267   : > { %3772 = vmatprep.subr.bf16.mxu1 %v8149_v13  ;;  %v8218_v13 = vld [vmem:[#allocation10 + $0xa4] ss:$16 sps:$4 sm:$0xff]  }
 0x269   : > { %3732 = vmatpush1.bf16.msra.mxu0 %v8144_v14  ;;  %v8257_v14 = vld [vmem:[#allocation10 + $0x2a4] ss:$16 sps:$4 sm:$0xff]  }
 0x26a   : > { %3773 = vmatpush1.bf16.msra.mxu1 %v8147_v15  ;;  %3733 = vmatprep.subr.bf16.mxu0 %v8152_v16  ;;  %v8216_v16 = vld [vmem:[#allocation10 + $0xa0] ss:$16 sps:$4 sm:$0xff]  }
 0x26b   : > { %3774 = vmatprep.subr.bf16.mxu1 %v8155_v17  ;;  %v8221_v17 = vld [vmem:[#allocation10 + $0x84] ss:$16 sps:$4 sm:$0xff]  }
 0x26d   : > { %3734 = vmatpush1.bf16.msra.mxu0 %v8150_v18  ;;  %v8255_v18 = vld [vmem:[#allocation10 + $0x2a0] ss:$16 sps:$4 sm:$0xff]  }
 0x26e   : > { %3775 = vmatpush1.bf16.msra.mxu1 %v8153_v19  ;;  %3735 = vmatprep.subr.bf16.mxu0 %v8158_v22 }
 0x26f   : > { %3776 = vmatprep.subr.bf16.mxu1 %v8161_v23  ;;  %v8263_v23 = vld [vmem:[#allocation10 + $0x284] ss:$16 sps:$4 sm:$0xff]  }
 0x271   : > { %3736 = vmatpush1.bf16.msra.mxu0 %v8156_v24  ;;  %v8219_v24 = vld [vmem:[#allocation10 + $0x80] ss:$16 sps:$4 sm:$0xff]  }
 0x272   : > { %3777 = vmatpush1.bf16.msra.mxu1 %v8159_v25  ;;  %3737 = vmatprep.subr.bf16.mxu0 %v8164_v26  ;;  %v8224_v25 = vld [vmem:[#allocation10 + $0x64] ss:$16 sps:$4 sm:$0xff]   ;;  %v8261_v26 = vld [vmem:[#allocation10 + $0x280] ss:$16 sps:$4 sm:$0xff]  }
 0x273   : > { %3778 = vmatprep.subr.bf16.mxu1 %v8167_v27  ;;  %v8269_v27 = vld [vmem:[#allocation10 + $0x264] ss:$16 sps:$4 sm:$0xff]  }
 0x275   : > { %3738 = vmatpush2.bf16.msra.mxu0 %v8162_v28  ;;  %v8222_v28 = vld [vmem:[#allocation10 + $0x60] ss:$16 sps:$4 sm:$0xff]  }
 0x276   : > { %3779 = vmatpush2.bf16.msra.mxu1 %v8165_v29  ;;  %3739 = vmatprep.subr.bf16.mxu0 %v8170_v30  ;;  %v8267_v29 = vld [vmem:[#allocation10 + $0x260] ss:$16 sps:$4 sm:$0xff]   ;;  %v8227_v30 = vld [vmem:[#allocation10 + $0x44] ss:$16 sps:$4 sm:$0xff]  }
 0x277   : > { %3780 = vmatprep.subr.bf16.mxu1 %v8173_v31  ;;  %v8275_v31 = vld [vmem:[#allocation10 + $0x244] ss:$16 sps:$4 sm:$0xff]  }
 0x279   : > { %3740 = vmatpush2.bf16.msra.mxu0 %v8168_v32  ;;  %v8225_v32 = vld [vmem:[#allocation10 + $0x40] ss:$16 sps:$4 sm:$0xff]  }
 0x27a   : > { %3781 = vmatpush2.bf16.msra.mxu1 %v8171_v33  ;;  %3741 = vmatprep.subr.bf16.mxu0 %v8176_v34  ;;  %v8273_v33 = vld [vmem:[#allocation10 + $0x240] ss:$16 sps:$4 sm:$0xff]   ;;  %v8230_v34 = vld [vmem:[#allocation10 + $0x24] ss:$16 sps:$4 sm:$0xff]  }
 0x27b   : > { %3782 = vmatprep.subr.bf16.mxu1 %v8179_v35  ;;  %v8281_v35 = vld [vmem:[#allocation10 + $0x224] ss:$16 sps:$4 sm:$0xff]  }
 0x27d   : > { %3742 = vmatpush2.bf16.msra.mxu0 %v8174_v39  ;;  %v8228_v39 = vld [vmem:[#allocation10 + $0x20] ss:$16 sps:$4 sm:$0xff]  }
 0x27e   : > { %3783 = vmatpush2.bf16.msra.mxu1 %v8177_v8  ;;  %3743 = vmatprep.subr.bf16.mxu0 %v8182_v9  ;;  %v8279_v8 = vld [vmem:[#allocation10 + $0x220] ss:$16 sps:$4 sm:$0xff]   ;;  %v8233_v9 = vld [vmem:[#allocation10 + $0x4] ss:$16 sps:$4 sm:$0xff]  }
 0x27f   : > { %3784 = vmatprep.subr.bf16.mxu1 %v8185_v49  ;;  %v8287_v49 = vld [vmem:[#allocation10 + $0x204] ss:$16 sps:$4 sm:$0xff]  }
 0x281   : > { %3744 = vmatpush2.bf16.msra.mxu0 %v8180_v41  ;;  %v8231_v41 = vld [vmem:[#allocation10] ss:$16 sps:$4 sm:$0xff]  }
 0x282   : > { %3785 = vmatpush2.bf16.msra.mxu1 %v8183_v42  ;;  %3745 = vmatprep.subr.bf16.mxu0 %v8188_v37  ;;  %v8285_v42 = vld [vmem:[#allocation10 + $0x200] ss:$16 sps:$4 sm:$0xff]   ;;  %v8236_v37 = vld [vmem:[#allocation10 + $0x1e4] ss:$16 sps:$4 sm:$0xff]  }
 0x283   : > { %3786 = vmatprep.subr.bf16.mxu1 %v8191_v40  ;;  %v8293_v40 = vld [vmem:[#allocation10 + $0x3e4] ss:$16 sps:$4 sm:$0xff]  }
 0x285   : > { %3746 = vmatpush2.bf16.msra.mxu0 %v8186_v44  ;;  %v8234_v44 = vld [vmem:[#allocation10 + $0x1e0] ss:$16 sps:$4 sm:$0xff]  }
 0x286   : > { %3787 = vmatpush2.bf16.msra.mxu1 %v8189_v45  ;;  %3747 = vmatprep.subr.bf16.mxu0 %v8194_v46  ;;  %v8291_v45 = vld [vmem:[#allocation10 + $0x3e0] ss:$16 sps:$4 sm:$0xff]   ;;  %v8239_v46 = vld [vmem:[#allocation10 + $0x1c4] ss:$16 sps:$4 sm:$0xff]  }
 0x287   : > { %3788 = vmatprep.subr.bf16.mxu1 %v8197_v47  ;;  %v8299_v47 = vld [vmem:[#allocation10 + $0x3c4] ss:$16 sps:$4 sm:$0xff]  }
 0x289   : > { %3748 = vmatpush2.bf16.msra.mxu0 %v8192_v48  ;;  %v8237_v48 = vld [vmem:[#allocation10 + $0x1c0] ss:$16 sps:$4 sm:$0xff]  }
 0x28a   : > { %3789 = vmatpush2.bf16.msra.mxu1 %v8195_v50  ;;  %3749 = vmatprep.subr.bf16.mxu0 %v8200_v51  ;;  %v8297_v50 = vld [vmem:[#allocation10 + $0x3c0] ss:$16 sps:$4 sm:$0xff]   ;;  %v8242_v51 = vld [vmem:[#allocation10 + $0x1a4] ss:$16 sps:$4 sm:$0xff]  }
 0x28b   : > { %3790 = vmatprep.subr.bf16.mxu1 %v8203_v53  ;;  %v8305_v53 = vld [vmem:[#allocation10 + $0x3a4] ss:$16 sps:$4 sm:$0xff]  }
 0x28d   : > { %3750 = vmatpush2.bf16.msra.mxu0 %v8198_v54  ;;  %v8240_v54 = vld [vmem:[#allocation10 + $0x1a0] ss:$16 sps:$4 sm:$0xff]  }
 0x28e   : > { %3791 = vmatpush2.bf16.msra.mxu1 %v8201_v55  ;;  %3751 = vmatprep.subr.bf16.mxu0 %v8206_v56  ;;  %v8303_v55 = vld [vmem:[#allocation10 + $0x3a0] ss:$16 sps:$4 sm:$0xff]   ;;  %v8248_v56 = vld [vmem:[#allocation10 + $0x184] ss:$16 sps:$4 sm:$0xff]  }
 0x28f   : > { %3792 = vmatprep.subr.bf16.mxu1 %v8209_v57  ;;  %v8311_v57 = vld [vmem:[#allocation10 + $0x384] ss:$16 sps:$4 sm:$0xff]  }
 0x291   : > { %3752 = vmatpush2.bf16.msra.mxu0 %v8204_v58  ;;  %v8246_v58 = vld [vmem:[#allocation10 + $0x180] ss:$16 sps:$4 sm:$0xff]  }
 0x292   : > { %3793 = vmatpush2.bf16.msra.mxu1 %v8207_v59  ;;  %4631 = vmatprep.subr.bf16.mxu0 %v8212_v60  ;;  %v8309_v59 = vld [vmem:[#allocation10 + $0x380] ss:$16 sps:$4 sm:$0xff]   ;;  %v8254_v60 = vld [vmem:[#allocation10 + $0x164] ss:$16 sps:$4 sm:$0xff]  }
 0x293   : > { %4672 = vmatprep.subr.bf16.mxu1 %v8245_v62  ;;  %v8317_v62 = vld [vmem:[#allocation10 + $0x364] ss:$16 sps:$4 sm:$0xff]  }
 0x294   : > { %v2869_v7 = vpop.f32.mrf.mxu0  ;;  %3754 = vmatmul.mubr.bf16.vlgmr.msra.gmra.mxu0 %v9572_v20 }
 0x295   : > { %v2910_v36 = vpop.f32.mrf.mxu1  ;;  %3795 = vmatmul.mubr.bf16.vlgmr.msra.gmra.mxu1 %v9574_v21  ;;  %4632 = vmatpush1.bf16.msra.mxu0 %v8210_v63  ;;  %v8252_v63 = vld [vmem:[#allocation10 + $0x160] ss:$16 sps:$4 sm:$0xff]  }
 0x296   : > { %v9600_v10 = vadd.f32 %v2910_v36, %v2869_v7  ;;  %4673 = vmatpush1.bf16.msra.mxu1 %v8243_v0  ;;  %v2871_v11 = vpop.f32.mrf.mxu0  ;;  %4633 = vmatprep.subr.bf16.mxu0 %v8215_v2  ;;  %v8315_v0 = vld [vmem:[#allocation10 + $0x360] ss:$16 sps:$4 sm:$0xff]   ;;  %v8323_v2 = vld [vmem:[#allocation10 + $0x344] ss:$16 sps:$4 sm:$0xff]  }
 0x297   : > { %v2912_v12 = vpop.f32.mrf.mxu1  ;;  %4674 = vmatprep.subr.bf16.mxu1 %v8251_v4  ;;  %4663 = vmatprep.mubr.bf16.mxu0 %v9594_v6  ;;  %v8321_v4 = vld [vmem:[#allocation10 + $0x340] ss:$16 sps:$4 sm:$0xff]   ;;  %v8329_v7 = vld [vmem:[#allocation10 + $0x324] ss:$16 sps:$4 sm:$0xff]  }
 0x298   : > { %v9602_v15 = vadd.f32 %v2912_v12, %v2871_v11  ;;  %4704 = vmatprep.mubr.bf16.mxu1 %v9596_v43  ;;  %v2873_v20 = vpop.f32.mrf.mxu0  ;;  %v8264_v36 = vld [vmem:[#allocation10 + $0x120] ss:$16 sps:$4 sm:$0xff]   ;;  %v8272_v11 = vld [vmem:[#allocation10 + $0x104] ss:$16 sps:$4 sm:$0xff]  }
 0x299   : > { %v2914_v21 = vpop.f32.mrf.mxu1  ;;  %4634 = vmatpush1.bf16.msra.mxu0 %v8213_v5  ;;  %v8266_v5 = vld [vmem:[#allocation10 + $0x124] ss:$16 sps:$4 sm:$0xff]   ;;  %v3835_v20 = vld [vmem:[%s9590_s0 + $0x10] sm:$0xff] }
 0x29a   : > { %4675 = vmatpush1.bf16.msra.mxu1 %v8249_v38  ;;  %v2874_v19 = vpop.f32.mrf.mxu0  ;;  %4635 = vmatprep.subr.bf16.mxu0 %v8218_v13  ;;  %v8327_v38 = vld [vmem:[#allocation10 + $0x320] ss:$16 sps:$4 sm:$0xff]   ;;  %v8335_v12 = vld [vmem:[#allocation10 + $0x304] ss:$16 sps:$4 sm:$0xff]   ;;  %v8278_v21 = vld [vmem:[#allocation10 + $0xec] ss:$16 sps:$4 sm:$0xff]  }
 0x29b   : > { %v2915_v22 = vpop.f32.mrf.mxu1  ;;  %4676 = vmatprep.subr.bf16.mxu1 %v8257_v14  ;;  %v8270_v13 = vld [vmem:[#allocation10 + $0x100] ss:$16 sps:$4 sm:$0xff]   ;;  %v9610_v19 = vpack.c.bf16 %v3835_v20, %v3835_v20  ;;  %v8398_v20 = vld [vmem:[#allocation10 + $0x388] ss:$16 sps:$4 sm:$0xff]  }
 0x29c   : > { %v3833_v14 = vld [vmem:[%s9590_s0] sm:$0xff]  ;;  %v8276_v22 = vld [vmem:[#allocation10 + $0xe8] ss:$16 sps:$4 sm:$0xff]  }
 0x29d   : > { %4636 = vmatpush1.bf16.msra.mxu0 %v8216_v16  ;;  %v8333_v16 = vld [vmem:[#allocation10 + $0x300] ss:$16 sps:$4 sm:$0xff]  }
 0x29e   : > { %4677 = vmatpush1.bf16.msra.mxu1 %v8255_v18  ;;  %4637 = vmatprep.subr.bf16.mxu0 %v8221_v17  ;;  %v8341_v17 = vld [vmem:[#allocation10 + $0x2ec] ss:$16 sps:$4 sm:$0xff]   ;;  %v9608_v18 = vpack.c.bf16 %v3833_v14, %v3833_v14 }
 0x29f   : > { %4678 = vmatprep.subr.bf16.mxu1 %v8263_v23  ;;  %v8339_v23 = vld [vmem:[#allocation10 + $0x2e8] ss:$16 sps:$4 sm:$0xff]   ;;  %v8400_v14 = vld [vmem:[#allocation10 + $0x38c] ss:$16 sps:$4 sm:$0xff]  }
 0x2a1   : > { %4638 = vmatpush1.bf16.msra.mxu0 %v8219_v24  ;;  %v8284_v24 = vld [vmem:[#allocation10 + $0xcc] ss:$16 sps:$4 sm:$0xff]  }
 0x2a2   : > { %4679 = vmatpush1.bf16.msra.mxu1 %v8261_v26  ;;  %4639 = vmatprep.subr.bf16.mxu0 %v8224_v25  ;;  %v8347_v25 = vld [vmem:[#allocation10 + $0x2cc] ss:$16 sps:$4 sm:$0xff]  }
 0x2a3   : > { %4680 = vmatprep.subr.bf16.mxu1 %v8269_v27 }
 0x2a5   : > { %4640 = vmatpush1.bf16.msra.mxu0 %v8222_v28 }
 0x2a6   : > { %4681 = vmatpush1.bf16.msra.mxu1 %v8267_v29  ;;  %4641 = vmatprep.subr.bf16.mxu0 %v8227_v30  ;;  %v8282_v29 = vld [vmem:[#allocation10 + $0xc8] ss:$16 sps:$4 sm:$0xff]  }
 0x2a7   : > { %4682 = vmatprep.subr.bf16.mxu1 %v8275_v31  ;;  %v8345_v30 = vld [vmem:[#allocation10 + $0x2c8] ss:$16 sps:$4 sm:$0xff]  }
 0x2a9   : > { %4642 = vmatpush1.bf16.msra.mxu0 %v8225_v32 }
 0x2aa   : > { %4683 = vmatpush1.bf16.msra.mxu1 %v8273_v33  ;;  %4643 = vmatprep.subr.bf16.mxu0 %v8230_v34  ;;  %v8290_v33 = vld [vmem:[#allocation10 + $0xac] ss:$16 sps:$4 sm:$0xff]  }
 0x2ab   : > { %4684 = vmatprep.subr.bf16.mxu1 %v8281_v35  ;;  %v8353_v34 = vld [vmem:[#allocation10 + $0x2ac] ss:$16 sps:$4 sm:$0xff]  }
 0x2ad   : > { %4644 = vmatpush1.bf16.msra.mxu0 %v8228_v39 }
 0x2ae   : > { %4685 = vmatpush1.bf16.msra.mxu1 %v8279_v8  ;;  %4645 = vmatprep.subr.bf16.mxu0 %v8233_v9 }
 0x2af   : > { %4686 = vmatprep.subr.bf16.mxu1 %v8287_v49  ;;  %v8288_v49 = vld [vmem:[#allocation10 + $0xa8] ss:$16 sps:$4 sm:$0xff]  }
 0x2b1   : > { %4646 = vmatpush1.bf16.msra.mxu0 %v8231_v41  ;;  %v8351_v41 = vld [vmem:[#allocation10 + $0x2a8] ss:$16 sps:$4 sm:$0xff]  }
 0x2b2   : > { %4687 = vmatpush1.bf16.msra.mxu1 %v8285_v42  ;;  %4647 = vmatprep.subr.bf16.mxu0 %v8236_v37 }
 0x2b3   : > { %4688 = vmatprep.subr.bf16.mxu1 %v8293_v40  ;;  %v8296_v40 = vld [vmem:[#allocation10 + $0x8c] ss:$16 sps:$4 sm:$0xff]  }
 0x2b5   : > { %4648 = vmatpush2.bf16.msra.mxu0 %v8234_v44  ;;  %v8359_v44 = vld [vmem:[#allocation10 + $0x28c] ss:$16 sps:$4 sm:$0xff]  }
 0x2b6   : > { %4689 = vmatpush2.bf16.msra.mxu1 %v8291_v45  ;;  %4649 = vmatprep.subr.bf16.mxu0 %v8239_v46  ;;  %v8365_v45 = vld [vmem:[#allocation10 + $0x26c] ss:$16 sps:$4 sm:$0xff]   ;;  %v8300_v46 = vld [vmem:[#allocation10 + $0x68] ss:$16 sps:$4 sm:$0xff]  }
 0x2b7   : > { %4690 = vmatprep.subr.bf16.mxu1 %v8299_v47  ;;  %v8363_v47 = vld [vmem:[#allocation10 + $0x268] ss:$16 sps:$4 sm:$0xff]  }
 0x2b9   : > { %4650 = vmatpush2.bf16.msra.mxu0 %v8237_v48  ;;  %v8308_v48 = vld [vmem:[#allocation10 + $0x4c] ss:$16 sps:$4 sm:$0xff]  }
 0x2ba   : > { %4691 = vmatpush2.bf16.msra.mxu1 %v8297_v50  ;;  %4651 = vmatprep.subr.bf16.mxu0 %v8242_v51  ;;  %v8371_v50 = vld [vmem:[#allocation10 + $0x24c] ss:$16 sps:$4 sm:$0xff]   ;;  %v8306_v51 = vld [vmem:[#allocation10 + $0x48] ss:$16 sps:$4 sm:$0xff]  }
 0x2bb   : > { %4692 = vmatprep.subr.bf16.mxu1 %v8305_v53  ;;  %v8369_v53 = vld [vmem:[#allocation10 + $0x248] ss:$16 sps:$4 sm:$0xff]  }
 0x2bd   : > { %4652 = vmatpush2.bf16.msra.mxu0 %v8240_v54  ;;  %v8314_v54 = vld [vmem:[#allocation10 + $0x2c] ss:$16 sps:$4 sm:$0xff]  }
 0x2be   : > { %4693 = vmatpush2.bf16.msra.mxu1 %v8303_v55  ;;  %4653 = vmatprep.subr.bf16.mxu0 %v8248_v56  ;;  %v8375_v55 = vld [vmem:[#allocation10 + $0x22c] ss:$16 sps:$4 sm:$0xff]   ;;  %v8312_v56 = vld [vmem:[#allocation10 + $0x28] ss:$16 sps:$4 sm:$0xff]  }
 0x2bf   : > { %4694 = vmatprep.subr.bf16.mxu1 %v8311_v57  ;;  %v8373_v57 = vld [vmem:[#allocation10 + $0x228] ss:$16 sps:$4 sm:$0xff]  }
 0x2c1   : > { %4654 = vmatpush2.bf16.msra.mxu0 %v8246_v58  ;;  %v8320_v58 = vld [vmem:[#allocation10 + $0xc] ss:$16 sps:$4 sm:$0xff]  }
 0x2c2   : > { %4695 = vmatpush2.bf16.msra.mxu1 %v8309_v59  ;;  %4655 = vmatprep.subr.bf16.mxu0 %v8254_v60  ;;  %v8380_v59 = vld [vmem:[#allocation10 + $0x20c] ss:$16 sps:$4 sm:$0xff]   ;;  %v8318_v60 = vld [vmem:[#allocation10 + $0x8] ss:$16 sps:$4 sm:$0xff]  }
 0x2c3   : > { %4696 = vmatprep.subr.bf16.mxu1 %v8317_v62  ;;  %v8378_v62 = vld [vmem:[#allocation10 + $0x208] ss:$16 sps:$4 sm:$0xff]  }
 0x2c5   : > { %4656 = vmatpush2.bf16.msra.mxu0 %v8252_v63  ;;  %v8326_v63 = vld [vmem:[#allocation10 + $0x1ec] ss:$16 sps:$4 sm:$0xff]  }
 0x2c6   : > { %4697 = vmatpush2.bf16.msra.mxu1 %v8315_v0  ;;  %4657 = vmatprep.subr.bf16.mxu0 %v8260_v1  ;;  %v8385_v0 = vld [vmem:[#allocation10 + $0x3ec] ss:$16 sps:$4 sm:$0xff]   ;;  %v8324_v1 = vld [vmem:[#allocation10 + $0x1e8] ss:$16 sps:$4 sm:$0xff]  }
 0x2c7   : > { %4698 = vmatprep.subr.bf16.mxu1 %v8323_v2  ;;  %v8383_v2 = vld [vmem:[#allocation10 + $0x3e8] ss:$16 sps:$4 sm:$0xff]  }
 0x2c9   : > { %4658 = vmatpush2.bf16.msra.mxu0 %v8258_v3  ;;  %v8332_v3 = vld [vmem:[#allocation10 + $0x1cc] ss:$16 sps:$4 sm:$0xff]  }
 0x2ca   : > { %4699 = vmatpush2.bf16.msra.mxu1 %v8321_v4  ;;  %4659 = vmatprep.subr.bf16.mxu0 %v8266_v5  ;;  %v8390_v4 = vld [vmem:[#allocation10 + $0x3cc] ss:$16 sps:$4 sm:$0xff]   ;;  %v8330_v5 = vld [vmem:[#allocation10 + $0x1c8] ss:$16 sps:$4 sm:$0xff]  }
 0x2cb   : > { %4700 = vmatprep.subr.bf16.mxu1 %v8329_v7  ;;  %v8388_v7 = vld [vmem:[#allocation10 + $0x3c8] ss:$16 sps:$4 sm:$0xff]  }
 0x2cd   : > { %4660 = vmatpush2.bf16.msra.mxu0 %v8264_v36  ;;  %v8338_v36 = vld [vmem:[#allocation10 + $0x1ac] ss:$16 sps:$4 sm:$0xff]  }
 0x2ce   : > { %4701 = vmatpush2.bf16.msra.mxu1 %v8327_v38  ;;  %4661 = vmatprep.subr.bf16.mxu0 %v8272_v11  ;;  %v8395_v38 = vld [vmem:[#allocation10 + $0x3ac] ss:$16 sps:$4 sm:$0xff]   ;;  %v8336_v11 = vld [vmem:[#allocation10 + $0x1a8] ss:$16 sps:$4 sm:$0xff]  }
 0x2cf   : > { %4702 = vmatprep.subr.bf16.mxu1 %v8335_v12  ;;  %v8393_v12 = vld [vmem:[#allocation10 + $0x3a8] ss:$16 sps:$4 sm:$0xff]  }
 0x2d1   : > { %4662 = vmatpush2.bf16.msra.mxu0 %v8270_v13  ;;  %v8344_v13 = vld [vmem:[#allocation10 + $0x18c] ss:$16 sps:$4 sm:$0xff]  }
 0x2d2   : > { %4703 = vmatpush2.bf16.msra.mxu1 %v8333_v16  ;;  %4713 = vmatprep.subr.bf16.mxu0 %v8278_v21  ;;  %v8342_v16 = vld [vmem:[#allocation10 + $0x188] ss:$16 sps:$4 sm:$0xff]   ;;  %v8350_v21 = vld [vmem:[#allocation10 + $0x16c] ss:$16 sps:$4 sm:$0xff]  }
 0x2d3   : > { %4754 = vmatprep.subr.bf16.mxu1 %v8341_v17  ;;  %v8405_v17 = vld [vmem:[#allocation10 + $0x36c] ss:$16 sps:$4 sm:$0xff]  }
 0x2d4   : > { %v2951_v26 = vpop.f32.mrf.mxu0  ;;  %4664 = vmatmul.mubr.bf16.vlgmr.msra.gmra.mxu0 %v9608_v18 }
 0x2d5   : > { %v2992_v27 = vpop.f32.mrf.mxu1  ;;  %4705 = vmatmul.mubr.bf16.vlgmr.msra.gmra.mxu1 %v9610_v19  ;;  %v2952_v28 = vadd.f32 %v2951_v26, %v9600_v10  ;;  %4714 = vmatpush1.bf16.msra.mxu0 %v8276_v22  ;;  %v8348_v22 = vld [vmem:[#allocation10 + $0x168] ss:$16 sps:$4 sm:$0xff]  }
 0x2d6   : > { %4755 = vmatpush1.bf16.msra.mxu1 %v8339_v23  ;;  %v2953_v31 = vpop.f32.mrf.mxu0  ;;  %4715 = vmatprep.subr.bf16.mxu0 %v8284_v24  ;;  %v8403_v23 = vld [vmem:[#allocation10 + $0x368] ss:$16 sps:$4 sm:$0xff]   ;;  %v8356_v24 = vld [vmem:[#allocation10 + $0x14c] ss:$16 sps:$4 sm:$0xff]  }
 0x2d7   : > { %v2994_v32 = vpop.f32.mrf.mxu1  ;;  %4756 = vmatprep.subr.bf16.mxu1 %v8347_v25  ;;  %v9615_v35 = vadd.f32 %v2992_v27, %v2952_v28  ;;  %v2954_v39 = vadd.f32 %v2953_v31, %v9602_v15  ;;  %4745 = vmatprep.mubr.bf16.mxu0 %v9594_v6  ;;  %v8294_v15 = vld [vmem:[#allocation10 + $0x88] ss:$16 sps:$4 sm:$0xff]   ;;  %v8410_v25 = vld [vmem:[#allocation10 + $0x34c] ss:$16 sps:$4 sm:$0xff]  }
 0x2d8   : > { %4786 = vmatprep.mubr.bf16.mxu1 %v9596_v43  ;;  %v2955_v8 = vpop.f32.mrf.mxu0  ;;  %v8357_v6 = vld [vmem:[#allocation10 + $0x288] ss:$16 sps:$4 sm:$0xff]   ;;  %v8302_v43 = vld [vmem:[#allocation10 + $0x6c] ss:$16 sps:$4 sm:$0xff]  }
 0x2d9   : > { %v2996_v10 = vpop.f32.mrf.mxu1  ;;  %v9620_v9 = vadd.f32 %v2994_v32, %v2954_v39  ;;  %4716 = vmatpush1.bf16.msra.mxu0 %v8282_v29  ;;  %v8354_v26 = vld [vmem:[#allocation10 + $0x148] ss:$16 sps:$4 sm:$0xff]   ;;  %v8362_v28 = vld [vmem:[#allocation10 + $0x12c] ss:$16 sps:$4 sm:$0xff]   ;;  %v3805_v39 = vlaneseq }
 0x2da   : > { %4757 = vmatpush1.bf16.msra.mxu1 %v8345_v30  ;;  %v2956_v42 = vpop.f32.mrf.mxu0  ;;  %4717 = vmatprep.subr.bf16.mxu0 %v8290_v33  ;;  %v8408_v27 = vld [vmem:[#allocation10 + $0x348] ss:$16 sps:$4 sm:$0xff]   ;;  %v8414_v29 = vld [vmem:[#allocation10 + $0x32c] ss:$16 sps:$4 sm:$0xff]  }
 0x2db   : > { %v2997_v37 = vpop.f32.mrf.mxu1  ;;  %4758 = vmatprep.subr.bf16.mxu1 %v8353_v34  ;;  %v8360_v30 = vld [vmem:[#allocation10 + $0x128] ss:$16 sps:$4 sm:$0xff]   ;;  %v8368_v32 = vld [vmem:[#allocation10 + $0x10c] ss:$16 sps:$4 sm:$0xff]  }
 0x2dc   : > { %v8412_v31 = vld [vmem:[#allocation10 + $0x328] ss:$16 sps:$4 sm:$0xff]   ;;  %v8417_v33 = vld [vmem:[#allocation10 + $0x30c] ss:$16 sps:$4 sm:$0xff]  }
 0x2dd   : > { %4718 = vmatpush1.bf16.msra.mxu0 %v8288_v49  ;;  %v8366_v34 = vld [vmem:[#allocation10 + $0x108] ss:$16 sps:$4 sm:$0xff]  }
 0x2de   : > { %4759 = vmatpush1.bf16.msra.mxu1 %v8351_v41  ;;  %4719 = vmatprep.subr.bf16.mxu0 %v8296_v40  ;;  %v8415_v8 = vld [vmem:[#allocation10 + $0x308] ss:$16 sps:$4 sm:$0xff]   ;;  %v9628_v41 = vshrl.u32 %v3805_v39, 7  ;;  %v8377_v40 = vld [vmem:[%s10152_s8 + $0x70] sm:$0xff]  }
 0x2df   : > { %4760 = vmatprep.subr.bf16.mxu1 %v8359_v44  ;;  %v8372_v10 = vld [vmem:[%s10152_s8 + $0x78] sm:$0xff]   ;;  %v8420_v44 = vld [vmem:[%s10152_s8 + $0xf0] sm:$0xff]  }
 0x2e0   : > { %v8418_v49 = vld [vmem:[%s10152_s8 + $0xf8] sm:$0xff]  }
 0x2e1   : > { %4720 = vmatpush1.bf16.msra.mxu0 %v8294_v15  ;;  %v8376_v42 = vld [vmem:[%s10152_s8 + $0x38] sm:$0xff]   ;;  %v9643_v15 = vsub.s32 1, %v9628_v41 }
 0x2e2   : > { %4761 = vmatpush1.bf16.msra.mxu1 %v8357_v6  ;;  %4721 = vmatprep.subr.bf16.mxu0 %v8302_v43  ;;  %v8419_v37 = vld [vmem:[%s10152_s8 + $0xb8] sm:$0xff]  }
 0x2e3   : > { %4762 = vmatprep.subr.bf16.mxu1 %v8365_v45  ;;  %v8381_v45 = vld [vmem:[%s10152_s8 + $0x30] sm:$0xff]  }
 0x2e5   : > { %4722 = vmatpush1.bf16.msra.mxu0 %v8300_v46  ;;  %v8421_v46 = vld [vmem:[%s10152_s8 + $0xb0] sm:$0xff]  }
 0x2e6   : > { %4763 = vmatpush1.bf16.msra.mxu1 %v8363_v47  ;;  %4723 = vmatprep.subr.bf16.mxu0 %v8308_v48  ;;  %v9653_v47 = vld [vmem:[#allocation8] sm:$0xf] }
 0x2e7   : > { %4764 = vmatprep.subr.bf16.mxu1 %v8371_v50 }
 0x2e9   : > { %4724 = vmatpush1.bf16.msra.mxu0 %v8306_v51 }
 0x2ea   : > { %4765 = vmatpush1.bf16.msra.mxu1 %v8369_v53  ;;  %4725 = vmatprep.subr.bf16.mxu0 %v8314_v54  ;;  %v3812_v53 = vrot.slane %v9653_v47, %v9643_v15 }
 0x2eb   : > { %4766 = vmatprep.subr.bf16.mxu1 %v8375_v55 }
 0x2ed   : > { %4726 = vmatpush1.bf16.msra.mxu0 %v8312_v56 }
 0x2ee   : > { %4767 = vmatpush1.bf16.msra.mxu1 %v8373_v57  ;;  %4727 = vmatprep.subr.bf16.mxu0 %v8320_v58  ;;  %v8386_v57 = vld [vmem:[%s10152_s8 + $0x28] sm:$0xff]  }
 0x2ef   : > { %4768 = vmatprep.subr.bf16.mxu1 %v8380_v59  ;;  %v8423_v58 = vld [vmem:[%s10152_s8 + $0xa8] sm:$0xff]  }
 0x2f1   : > { %4728 = vmatpush1.bf16.msra.mxu0 %v8318_v60 }
 0x2f2   : > { %4769 = vmatpush1.bf16.msra.mxu1 %v8378_v62  ;;  %4729 = vmatprep.subr.bf16.mxu0 %v8326_v63  ;;  %v8424_v62 = vld [vmem:[%s10152_s8 + $0xe0] sm:$0xff]  }
 0x2f3   : > { %4770 = vmatprep.subr.bf16.mxu1 %v8385_v0 }
 0x2f5   : > { %4730 = vmatpush2.bf16.msra.mxu0 %v8324_v1  ;;  %v8391_v1 = vld [vmem:[%s10152_s8 + $0x20] sm:$0xff]  }
 0x2f6   : > { %4771 = vmatpush2.bf16.msra.mxu1 %v8383_v2  ;;  %4731 = vmatprep.subr.bf16.mxu0 %v8332_v3  ;;  %v8392_v2 = vld [vmem:[%s10152_s8 + $0x58] sm:$0xff]   ;;  %v8425_v3 = vld [vmem:[%s10152_s8 + $0xa0] sm:$0xff]  }
 0x2f7   : > { %4772 = vmatprep.subr.bf16.mxu1 %v8390_v4 }
 0x2f9   : > { %4732 = vmatpush2.bf16.msra.mxu0 %v8330_v5  ;;  %v8426_v5 = vld [vmem:[%s10152_s8 + $0xd8] sm:$0xff]  }
 0x2fa   : > { %4773 = vmatpush2.bf16.msra.mxu1 %v8388_v7  ;;  %4733 = vmatprep.subr.bf16.mxu0 %v8338_v36  ;;  %v8396_v7 = vld [vmem:[%s10152_s8 + $0x18] sm:$0xff]  }
 0x2fb   : > { %4774 = vmatprep.subr.bf16.mxu1 %v8395_v38  ;;  %v9693_v38 = vsub.s32 0, %v9628_v41 }
 0x2fd   : > { %4734 = vmatpush2.bf16.msra.mxu0 %v8336_v11  ;;  %v8397_v11 = vld [vmem:[%s10152_s8 + $0x50] sm:$0xff]  }
 0x2fe   : > { %4775 = vmatpush2.bf16.msra.mxu1 %v8393_v12  ;;  %4735 = vmatprep.subr.bf16.mxu0 %v8344_v13  ;;  %v8427_v12 = vld [vmem:[%s10152_s8 + $0x98] sm:$0xff]   ;;  %v8428_v13 = vld [vmem:[%s10152_s8 + $0xd0] sm:$0xff]  }
 0x2ff   : > { %4776 = vmatprep.subr.bf16.mxu1 %v8400_v14 }
 0x301   : > { %4736 = vmatpush2.bf16.msra.mxu0 %v8342_v16  ;;  %v3808_v16 = vrot.slane %v9653_v47, %v9693_v38 }
 0x302   : > { %4777 = vmatpush2.bf16.msra.mxu1 %v8398_v20  ;;  %4737 = vmatprep.subr.bf16.mxu0 %v8350_v21  ;;  %v8402_v20 = vld [vmem:[%s10152_s8 + $0x48] sm:$0xff]   ;;  %v8429_v21 = vld [vmem:[%s10152_s8 + $0x90] sm:$0xff]  }
 0x303   : > { %4778 = vmatprep.subr.bf16.mxu1 %v8405_v17  ;;  %v8430_v17 = vld [vmem:[%s10152_s8 + $0xc8] sm:$0xff]  }
 0x305   : > { %4738 = vmatpush2.bf16.msra.mxu0 %v8348_v22  ;;  %v8406_v22 = vld [vmem:[%s10152_s8 + $0x8] sm:$0xff]  }
 0x306   : > { %4779 = vmatpush2.bf16.msra.mxu1 %v8403_v23  ;;  %4739 = vmatprep.subr.bf16.mxu0 %v8356_v24  ;;  %v8407_v24 = vld [vmem:[%s10152_s8 + $0x40] sm:$0xff]  }
 0x307   : > { %4780 = vmatprep.subr.bf16.mxu1 %v8410_v25  ;;  %v8431_v25 = vld [vmem:[%s10152_s8 + $0x88] sm:$0xff]  }
 0x309   : > { %4740 = vmatpush2.bf16.msra.mxu0 %v8354_v26  ;;  %v8432_v26 = vld [vmem:[%s10152_s8 + $0xc0] sm:$0xff]  }
 0x30a   : > { %4781 = vmatpush2.bf16.msra.mxu1 %v8408_v27  ;;  %4741 = vmatprep.subr.bf16.mxu0 %v8362_v28  ;;  %v8411_v27 = vld [vmem:[%s10152_s8] sm:$0xff]  }
 0x30b   : > { %4782 = vmatprep.subr.bf16.mxu1 %v8414_v29  ;;  %v8433_v29 = vld [vmem:[%s10152_s8 + $0x80] sm:$0xff]  }
 0x30d   : > { %4742 = vmatpush2.bf16.msra.mxu0 %v8360_v30 }
 0x30e   : > { %4783 = vmatpush2.bf16.msra.mxu1 %v8412_v31  ;;  %4743 = vmatprep.subr.bf16.mxu0 %v8368_v32  ;;  %v9737_v31 = vsub.s32 2, %v9628_v41  ;;  %v9740_v32 = vsub.s32 3, %v9628_v41 }
 0x30f   : > { %4784 = vmatprep.subr.bf16.mxu1 %v8417_v33 }
 0x311   : > { %4744 = vmatpush2.bf16.msra.mxu0 %v8366_v34 }
 0x312   : > { %4785 = vmatpush2.bf16.msra.mxu1 %v8415_v8  ;;  %7294 = vmatprep.subr.bf16.mxu0 %v8372_v10  ;;  %v3816_v8 = vrot.slane %v9653_v47, %v9737_v31 }
 0x313   : > { %7316 = vmatprep.subr.bf16.mxu1 %v8418_v49 }
 0x314   : > { %v3673_v6 = vpop.f32.mrf.mxu0  ;;  %4746 = vmatmul.mubr.bf16.vlgmr.msra.gmra.mxu0 %v9608_v18  ;;  %v8382_v18 = vld [vmem:[%s10152_s8 + $0x68] sm:$0xff]  }
 0x315   : > { %v3714_v43 = vpop.f32.mrf.mxu1  ;;  %4787 = vmatmul.mubr.bf16.vlgmr.msra.gmra.mxu1 %v9610_v19  ;;  %7295 = vmatpush3.bf16.msra.mxu0 %v8376_v42  ;;  %v8422_v19 = vld [vmem:[%s10152_s8 + $0xe8] sm:$0xff]   ;;  %v3674_v36 = vadd.f32 %v3673_v6, %v9579_v61  ;;  %v8401_v61 = vld [vmem:[%s10152_s8 + $0x10] sm:$0xff]  }
 0x316   : > { %7317 = vmatpush3.bf16.msra.mxu1 %v8419_v37  ;;  %v3675_v48 = vpop.f32.mrf.mxu0  ;;  %7296 = vmatprep.subr.bf16.mxu0 %v8377_v40  ;;  %v3820_v40 = vrot.slane %v9653_v47, %v9740_v32  ;;  %v8435_v47 = vld [vmem:[%s10153_s10 + $0x30] sm:$0xff]  }
 0x317   : > { %v3716_v50 = vpop.f32.mrf.mxu1  ;;  %7318 = vmatprep.subr.bf16.mxu1 %v8420_v44  ;;  %v3676_v51 = vadd.f32 %v3675_v48, %v9584_v52  ;;  %v8387_v52 = vld [vmem:[%s10152_s8 + $0x60] sm:$0xff]   ;;  %v3715_v14 = vadd.f32 %v3714_v43, %v3674_v36 }
 0x318   : > { %v3677_v54 = vpop.f32.mrf.mxu0 }
 0x319   : > { %v3718_v55 = vpop.f32.mrf.mxu1  ;;  %v3717_v56 = vadd.f32 %v3716_v50, %v3676_v51  ;;  %7297 = vmatpush3.bf16.msra.mxu0 %v8381_v45  ;;  %v3825_v23 = vadd.f32 %v3808_v16, %v3715_v14  ;;  %v9111_v51 = vmov 0.0   ;;  %v8437_v54 = vld [vmem:[%s10153_s10 + $0x20] sm:$0xff]  }
 0x31a   : > { %7319 = vmatpush3.bf16.msra.mxu1 %v8421_v46  ;;  %v3678_v59 = vpop.f32.mrf.mxu0  ;;  %7298 = vmatprep.subr.bf16.mxu0 %v8382_v18  ;;  %v8438_v55 = vld [vmem:[%s10153_s10 + $0x18] sm:$0xff]   ;;  %v8442_v14 = vld [vmem:[#allocation16 + $0x18] sm:$0xff]  }
 0x31b   : > { %v3719_v60 = vpop.f32.mrf.mxu1  ;;  %7320 = vmatprep.subr.bf16.mxu1 %v8422_v19  ;;  %v3826_v63 = vadd.f32 %v3812_v53, %v3717_v56  ;;  %v3829_v28 = vmax.f32 %v3825_v23, 0.0  ;;  %v8436_v53 = vld [vmem:[%s10153_s10 + $0x28] sm:$0xff]   ;;  %v3969_v56 = vld [vmem:[#allocation11] sm:$0xf]  ;;  %v8443_v16 = vld [vmem:[#allocation16 + $0x10] sm:$0xff]  }
 0x31d   : > { %v3830_v0 = vmax.f32 %v3826_v63, 0.0  ;;  %7299 = vmatpush3.bf16.msra.mxu0 %v8386_v57  ;;  %v4799_v30 = vpack.c.bf16 %v3829_v28, %v3829_v28  ;;  %v3974_v57 = vrot.slane %v3969_v56, %v9693_v38 }
 0x31e   : > { %7321 = vmatpush3.bf16.msra.mxu1 %v8423_v58  ;;  %7300 = vmatprep.subr.bf16.mxu0 %v8387_v52  ;;  %v3978_v58 = vrot.slane %v3969_v56, %v9643_v15 }
 0x31f   : > { %7322 = vmatprep.subr.bf16.mxu1 %v8424_v62  ;;  %v4800_v4 = vpack.c.bf16 %v3830_v0, %v3830_v0 }
 0x321   : > { %7301 = vmatpush3.bf16.msra.mxu0 %v8391_v1  ;;  %5098 = vmatprep.mubr.bf16.mxu0 %v4800_v4 }
 0x322   : > { %7302 = vmatprep.subr.bf16.mxu0 %v8392_v2  ;;  %7323 = vmatpush3.bf16.msra.mxu1 %v8425_v3 }
 0x323   : > { %7324 = vmatprep.subr.bf16.mxu1 %v8426_v5 }
 0x325   : > { %7303 = vmatpush3.bf16.msra.mxu0 %v8396_v7 }
 0x326   : > { %7304 = vmatprep.subr.bf16.mxu0 %v8397_v11  ;;  %7325 = vmatpush3.bf16.msra.mxu1 %v8427_v12  ;;  %v8439_v12 = vld [vmem:[%s10153_s10 + $0x10] sm:$0xff]  }
 0x327   : > { %7326 = vmatprep.subr.bf16.mxu1 %v8428_v13  ;;  %v8440_v13 = vld [vmem:[%s10153_s10 + $0x8] sm:$0xff]  }
 0x329   : > { %7305 = vmatpush3.bf16.msra.mxu0 %v8401_v61  ;;  %v8441_v61 = vld [vmem:[%s10153_s10] sm:$0xff]  }
 0x32a   : > { %7306 = vmatprep.subr.bf16.mxu0 %v8402_v20  ;;  %7327 = vmatpush3.bf16.msra.mxu1 %v8429_v21  ;;  %v3982_v20 = vrot.slane %v3969_v56, %v9737_v31  ;;  %v3986_v21 = vrot.slane %v3969_v56, %v9740_v32  ;;  %v8455_v56 = vld [vmem:[#allocation19 + $0xc8] ss:$16 sps:$4 sm:$0xff]  }
 0x32b   : > { %7328 = vmatprep.subr.bf16.mxu1 %v8430_v17 }
 0x32d   : > { %7307 = vmatpush3.bf16.msra.mxu0 %v8406_v22 }
 0x32e   : > { %7308 = vmatprep.subr.bf16.mxu0 %v8407_v24  ;;  %7329 = vmatpush3.bf16.msra.mxu1 %v8431_v25 }
 0x32f   : > { %7330 = vmatprep.subr.bf16.mxu1 %v8432_v26 }
 0x331   : > { %7309 = vmatpush3.bf16.msra.mxu0 %v8411_v27 }
 0x332   : > { %7331 = vmatpush3.bf16.msra.mxu1 %v8433_v29  ;;  %7396 = vmatprep.subr.bf16.mxu0 %v9111_v51 }
 0x333   : > { %7416 = vmatprep.subr.bf16.mxu1 %v9111_v51 }
 0x334   : > { %5099 = vmatmul.mubr.bf16.vlgmr.msra.gmra.mxu0 %v4799_v30 }
 0x335   : > { %7412 = vmatprep.mubr.msk.bf16.mxu0 %vm9112_vm0, %v9111_v51 }
 0x354   : > { %v3755_v33 = vpop.f32.mrf.mxu0 }
 0x355   : > { %v3796_v34 = vpop.f32.mrf.mxu1  ;;  %v3756_v39 = vadd.f32 %v3755_v33, %v9615_v35 }
 0x356   : > { %v3757_v10 = vpop.f32.mrf.mxu0 }
 0x357   : > { %v3798_v49 = vpop.f32.mrf.mxu1  ;;  %v3797_v42 = vadd.f32 %v3796_v34, %v3756_v39  ;;  %v3758_v37 = vadd.f32 %v3757_v10, %v9620_v9  ;;  %v8434_v9 = vld [vmem:[%s10153_s10 + $0x38] sm:$0xff]  }
 0x358   : > { %v3759_v44 = vpop.f32.mrf.mxu0  ;;  %7397 = vmatpush3.bf16.msra.mxu0 %v8434_v9  ;;  %v8445_v9 = vld [vmem:[#allocation16] sm:$0xff]  }
 0x359   : > { %v3800_v6 = vpop.f32.mrf.mxu1  ;;  %v3827_v43 = vadd.f32 %v3816_v8, %v3797_v42  ;;  %v3799_v41 = vadd.f32 %v3798_v49, %v3758_v37  ;;  %7398 = vmatprep.subr.bf16.mxu0 %v9111_v51  ;;  %v7147_v44 = vld [vmem:[#allocation13] ss:$0 sm:$0xff] }
 0x35a   : > { %v3760_v45 = vpop.f32.mrf.mxu0 }
 0x35b   : > { %v3801_v46 = vpop.f32.mrf.mxu1  ;;  %v3828_v48 = vadd.f32 %v3820_v40, %v3799_v41  ;;  %v3831_v50 = vmax.f32 %v3827_v43, 0.0 }
 0x35c   : > { %7399 = vmatpush3.bf16.msra.mxu0 %v8435_v47  ;;  %v8448_v47 = vld [vmem:[#allocation19 + $0xe4] ss:$16 sps:$4 sm:$0xff]  }
 0x35d   : > { %v3832_v35 = vmax.f32 %v3828_v48, 0.0  ;;  %v4801_v19 = vpack.c.bf16 %v3831_v50, %v3831_v50  ;;  %7400 = vmatprep.subr.bf16.mxu0 %v9111_v51 }
 0x35f   : > { %v4802_v18 = vpack.c.bf16 %v3832_v35, %v3832_v35 }
 0x360   : > { %7401 = vmatpush3.bf16.msra.mxu0 %v8436_v53  ;;  %v8449_v53 = vld [vmem:[#allocation19 + $0xe8] ss:$16 sps:$4 sm:$0xff]  }
 0x361   : > { %5138 = vmatprep.mubr.bf16.mxu1 %v4802_v18  ;;  %7402 = vmatprep.subr.bf16.mxu0 %v9111_v51 }
 0x362   : > { %5139 = vmatmul.mubr.bf16.vlgmr.msra.gmra.mxu1 %v4801_v19  ;;  %v8444_v19 = vld [vmem:[#allocation16 + $0x8] sm:$0xff]  }
 0x363   : > { %7424 = vmatprep.mubr.msk.bf16.mxu1 %vm9112_vm0, %v9111_v51  ;;  %7417 = vmatpush3.bf16.msra.mxu1 %v8442_v14  ;;  %v8454_v14 = vld [vmem:[#allocation19 + $0xc4] ss:$16 sps:$4 sm:$0xff]  }
 0x364   : > { %7403 = vmatpush3.bf16.msra.mxu0 %v8437_v54  ;;  %7418 = vmatprep.subr.bf16.mxu1 %v9111_v51  ;;  %v8451_v54 = vld [vmem:[#allocation19 + $0xec] ss:$16 sps:$4 sm:$0xff]  }
 0x365   : > { %7404 = vmatprep.subr.bf16.mxu0 %v9111_v51 }
 0x367   : > { %7419 = vmatpush3.bf16.msra.mxu1 %v8443_v16 }
 0x368   : > { %7405 = vmatpush3.bf16.msra.mxu0 %v8438_v55  ;;  %7420 = vmatprep.subr.bf16.mxu1 %v9111_v51  ;;  %v8457_v55 = vld [vmem:[#allocation19 + $0xcc] ss:$16 sps:$4 sm:$0xff]  }
 0x369   : > { %7406 = vmatprep.subr.bf16.mxu0 %v9111_v51 }
 0x36b   : > { %7421 = vmatpush3.bf16.msra.mxu1 %v8444_v19  ;;  %v8499_v19 = vld [vmem:[%s10154_s20 + $0xf0] sm:$0xff]  }
 0x36c   : > { %7407 = vmatpush3.bf16.msra.mxu0 %v8439_v12  ;;  %7422 = vmatprep.subr.bf16.mxu1 %v9111_v51 }
 0x36d   : > { %7408 = vmatprep.subr.bf16.mxu0 %v9111_v51 }
 0x36f   : > { %7423 = vmatpush3.bf16.msra.mxu1 %v8445_v9 }
 0x370   : > { %7409 = vmatpush3.bf16.msra.mxu0 %v8440_v13  ;;  %5560 = vmatprep.subr.bf16.mxu1 %v8448_v47  ;;  %v8446_v13 = vld [vmem:[#allocation19 + $0xe0] ss:$16 sps:$4 sm:$0xff]  }
 0x371   : > { %7410 = vmatprep.subr.bf16.mxu0 %v9111_v51  ;;  %v8475_v51 = vld [vmem:[#allocation19 + $0x6c] ss:$16 sps:$4 sm:$0xff]  }
 0x374   : > { %7411 = vmatpush3.bf16.msra.mxu0 %v8441_v61 }
 0x375   : > { %5601 = vmatprep.subr.bf16.mxu0 %v8451_v54  ;;  %v8501_v54 = vld [vmem:[%s10154_s20 + $0xb0] sm:$0xff]  }
 0x394   : > { %v4665_v59 = vpop.f32.mrf.mxu0 }
 0x395   : > { %v4706_v60 = vpop.f32.mrf.mxu1  ;;  %v4666_v52 = vadd.f32 %v4665_v59, %v3974_v57  ;;  %v8463_v57 = vld [vmem:[#allocation19 + $0xac] ss:$16 sps:$4 sm:$0xff]  }
 0x396   : > { %v4667_v62 = vpop.f32.mrf.mxu0  ;;  %v8469_v59 = vld [vmem:[#allocation19 + $0x8c] ss:$16 sps:$4 sm:$0xff]  }
 0x397   : > { %v4708_v63 = vpop.f32.mrf.mxu1  ;;  %v4668_v0 = vadd.f32 %v4667_v62, %v3978_v58  ;;  %v4707_v1 = vadd.f32 %v4706_v60, %v4666_v52  ;;  %v8461_v58 = vld [vmem:[#allocation19 + $0xa8] ss:$16 sps:$4 sm:$0xff]   ;;  %v8481_v62 = vld [vmem:[#allocation19 + $0x4c] ss:$16 sps:$4 sm:$0xff]  }
 0x398   : > { %v4669_v2 = vpop.f32.mrf.mxu0  ;;  %v8467_v60 = vld [vmem:[#allocation19 + $0x88] ss:$16 sps:$4 sm:$0xff]  }
 0x399   : > { %v4710_v3 = vpop.f32.mrf.mxu1  ;;  %v9775_v4 = vmax.f32 %v4707_v1, 0.0  ;;  %v4709_v5 = vadd.f32 %v4708_v63, %v4668_v0  ;;  %v8473_v52 = vld [vmem:[#allocation19 + $0x68] ss:$16 sps:$4 sm:$0xff]   ;;  %v8487_v0 = vld [vmem:[#allocation19 + $0x2c] ss:$16 sps:$4 sm:$0xff]  }
 0x39a   : > { %v4670_v7 = vpop.f32.mrf.mxu0  ;;  %v8479_v63 = vld [vmem:[#allocation19 + $0x48] ss:$16 sps:$4 sm:$0xff]   ;;  %v7180_v2 = vld [vmem:[#allocation14] ss:$0 sm:$0xff] }
 0x39b   : > { %v4711_v36 = vpop.f32.mrf.mxu1  ;;  %6208 = vst [vmem:[%s9778_s12] sm:$0xff] %v9775_v4  ;;  %v9782_v11 = vmax.f32 %v4709_v5, 0.0  ;;  %v8485_v1 = vld [vmem:[#allocation19 + $0x28] ss:$16 sps:$4 sm:$0xff]  }
 0x39d   : > { %6209 = vst [vmem:[%s9778_s12 + $0x8] sm:$0xff] %v9782_v11  ;;  %v5647_v9 = vpack.c.bf16 %v9782_v11, %v9782_v11  ;;  %v8502_v11 = vld [vmem:[%s10154_s20 + $0x68] sm:$0xff]  }
 0x3d4   : > { %v4747_v17 = vpop.f32.mrf.mxu0 }
 0x3d5   : > { %v4788_v22 = vpop.f32.mrf.mxu1  ;;  %v4748_v23 = vadd.f32 %v4747_v17, %v3982_v20  ;;  %v8452_v20 = vld [vmem:[#allocation19 + $0xc0] ss:$16 sps:$4 sm:$0xff]  }
 0x3d6   : > { %v4749_v24 = vpop.f32.mrf.mxu0  ;;  %v8458_v17 = vld [vmem:[#allocation19 + $0xa0] ss:$16 sps:$4 sm:$0xff]  }
 0x3d7   : > { %v4790_v25 = vpop.f32.mrf.mxu1  ;;  %v4750_v26 = vadd.f32 %v4749_v24, %v3986_v21  ;;  %v4789_v27 = vadd.f32 %v4788_v22, %v4748_v23  ;;  %v8460_v21 = vld [vmem:[#allocation19 + $0xa4] ss:$16 sps:$4 sm:$0xff]   ;;  %v8464_v23 = vld [vmem:[#allocation19 + $0x80] ss:$16 sps:$4 sm:$0xff]  }
 0x3d8   : > { %v4751_v28 = vpop.f32.mrf.mxu0  ;;  %v8466_v22 = vld [vmem:[#allocation19 + $0x84] ss:$16 sps:$4 sm:$0xff]  }
 0x3d9   : > { %v4792_v29 = vpop.f32.mrf.mxu1  ;;  %v9803_v30 = vmax.f32 %v4789_v27, 0.0  ;;  %v4791_v33 = vadd.f32 %v4790_v25, %v4750_v26  ;;  %v8472_v24 = vld [vmem:[#allocation19 + $0x64] ss:$16 sps:$4 sm:$0xff]   ;;  %v8470_v25 = vld [vmem:[#allocation19 + $0x60] ss:$16 sps:$4 sm:$0xff]  }
 0x3da   : > { %v4752_v34 = vpop.f32.mrf.mxu0  ;;  %v8478_v26 = vld [vmem:[#allocation19 + $0x44] ss:$16 sps:$4 sm:$0xff]   ;;  %v8476_v27 = vld [vmem:[#allocation19 + $0x40] ss:$16 sps:$4 sm:$0xff]  }
 0x3db   : > { %v4793_v39 = vpop.f32.mrf.mxu1  ;;  %6210 = vst [vmem:[%s9778_s12 + $0x10] sm:$0xff] %v9803_v30  ;;  %v9807_v8 = vmax.f32 %v4791_v33, 0.0  ;;  %v8484_v28 = vld [vmem:[#allocation19 + $0x24] ss:$16 sps:$4 sm:$0xff]   ;;  %v8482_v29 = vld [vmem:[#allocation19 + $0x20] ss:$16 sps:$4 sm:$0xff]  }
 0x3dc   : > { %v8490_v33 = vld [vmem:[#allocation19 + $0x4] ss:$16 sps:$4 sm:$0xff]   ;;  %v8493_v34 = vld [vmem:[#allocation19 + $0xc] ss:$16 sps:$4 sm:$0xff]   ;;  %v8488_v39 = vld [vmem:[#allocation19] ss:$16 sps:$4 sm:$0xff]  }
 0x3dd   : > { %6211 = vst [vmem:[%s9778_s12 + $0x18] sm:$0xff] %v9807_v8  ;;  %v5649_v47 = vpack.c.bf16 %v9807_v8, %v9807_v8  ;;  %v8503_v8 = vld [vmem:[%s10154_s20 + $0xe8] sm:$0xff]  }
 0x3f4   : > { %v7310_v10 = vpop.f32.mrf.mxu0 }
 0x3f6   : > { %v7311_v49 = vpop.f32.mrf.mxu0 }
 0x3f7   : > { %v7312_v40 = vadd.f32 %v7311_v49, %v7310_v10  ;;  %v8491_v10 = vld [vmem:[#allocation19 + $0x8] ss:$16 sps:$4 sm:$0xff]  }
 0x3f8   : > { %v7313_v42 = vpop.f32.mrf.mxu0  ;;  %v8494_v49 = vld [vmem:[%s10154_s20 + $0x78] sm:$0xff]  }
 0x3f9   : > { %v5101_v41 = vadd.f32 %v7312_v40, %v7147_v44  ;;  %v8495_v42 = vld [vmem:[%s10154_s20 + $0xf8] sm:$0xff]   ;;  %v7189_v40 = vld [vmem:[#allocation17] ss:$0 sm:$0xff] }
 0x3fa   : > { %v7314_v37 = vpop.f32.mrf.mxu0 }
 0x3fb   : > { %v9113_v37 = vmov 0  }
 0x422   : > { %v7332_v6 = vpop.f32.mrf.mxu1 }
 0x424   : > { %v7333_v43 = vpop.f32.mrf.mxu1 }
 0x425   : > { %v7334_v45 = vadd.f32 %v7333_v43, %v7332_v6 }
 0x426   : > { %v7335_v46 = vpop.f32.mrf.mxu1 }
 0x427   : > { %v5141_v48 = vadd.f32 %v7334_v45, %v5101_v41  ;;  %v8496_v46 = vld [vmem:[%s10154_s20 + $0x38] sm:$0xff]  }
 0x428   : > { %v7336_v50 = vpop.f32.mrf.mxu1 }
 0x429   : > { %v5146_v35 = vmax.f32 %v5141_v48, 0.0  ;;  %v8497_v48 = vld [vmem:[%s10154_s20 + $0xb8] sm:$0xff]  }
 0x42b   : > { %v5147_v18 = vpack.c.bf16 %v5146_v35, %v5146_v35 }
 0x42d   : > { %7413 = vmatmul.mubr.bf16.vlgmr.msra.gmra.mxu0 %v5147_v18  ;;  %v8498_v18 = vld [vmem:[%s10154_s20 + $0x70] sm:$0xff]  }
 0x42e   : > { %5602 = vmatpush1.bf16.msra.mxu0 %v8449_v53  ;;  %5633 = vmatprep.mubr.bf16.mxu0 %v9113_v37  ;;  %v8500_v53 = vld [vmem:[%s10154_s20 + $0x30] sm:$0xff]  }
 0x42f   : > { %5603 = vmatprep.subr.bf16.mxu0 %v8457_v55  ;;  %v8504_v55 = vld [vmem:[%s10154_s20 + $0x28] sm:$0xff]  }
 0x432   : > { %5604 = vmatpush1.bf16.msra.mxu0 %v8455_v56  ;;  %v8505_v56 = vld [vmem:[%s10154_s20 + $0xa8] sm:$0xff]  }
 0x433   : > { %5605 = vmatprep.subr.bf16.mxu0 %v8463_v57  ;;  %v8506_v57 = vld [vmem:[%s10154_s20 + $0x60] sm:$0xff]  }
 0x436   : > { %5606 = vmatpush1.bf16.msra.mxu0 %v8461_v58  ;;  %v8507_v58 = vld [vmem:[%s10154_s20 + $0xe0] sm:$0xff]  }
 0x437   : > { %5607 = vmatprep.subr.bf16.mxu0 %v8469_v59  ;;  %v8508_v59 = vld [vmem:[%s10154_s20 + $0x20] sm:$0xff]  }
 0x43a   : > { %5608 = vmatpush1.bf16.msra.mxu0 %v8467_v60  ;;  %v8509_v60 = vld [vmem:[%s10154_s20 + $0xa0] sm:$0xff]  }
 0x43b   : > { %5609 = vmatprep.subr.bf16.mxu0 %v8475_v51  ;;  %v8510_v51 = vld [vmem:[%s10154_s20 + $0x58] sm:$0xff]  }
 0x43e   : > { %5610 = vmatpush1.bf16.msra.mxu0 %v8473_v52  ;;  %v8511_v52 = vld [vmem:[%s10154_s20 + $0xd8] sm:$0xff]  }
 0x43f   : > { %5611 = vmatprep.subr.bf16.mxu0 %v8481_v62  ;;  %v8512_v62 = vld [vmem:[%s10154_s20 + $0x18] sm:$0xff]  }
 0x442   : > { %5612 = vmatpush1.bf16.msra.mxu0 %v8479_v63  ;;  %v8513_v63 = vld [vmem:[%s10154_s20 + $0x98] sm:$0xff]  }
 0x443   : > { %5613 = vmatprep.subr.bf16.mxu0 %v8487_v0  ;;  %v8514_v0 = vld [vmem:[%s10154_s20 + $0x50] sm:$0xff]  }
 0x446   : > { %5614 = vmatpush1.bf16.msra.mxu0 %v8485_v1  ;;  %v8515_v1 = vld [vmem:[%s10154_s20 + $0xd0] sm:$0xff]  }
 0x447   : > { %5615 = vmatprep.subr.bf16.mxu0 %v8493_v34  ;;  %v8541_v34 = vld [vmem:[#allocation23 + $0x28] ss:$16 sps:$4 sm:$0xff]  }
 0x44a   : > { %5616 = vmatpush1.bf16.msra.mxu0 %v8491_v10  ;;  %v8546_v10 = vld [vmem:[#allocation23 + $0x4] ss:$16 sps:$4 sm:$0xff]  }
 0x44b   : > { %7374 = vmatprep.subr.bf16.mxu0 %v8495_v42  ;;  %v8549_v42 = vld [vmem:[#allocation23 + $0xc] ss:$16 sps:$4 sm:$0xff]  }
 0x4ed   : > { %v5253_v3 = vpop.f32.mrf.mxu0 }
 0x4ee   : > { %v5254_v5 = vadd.f32 %v7180_v2, %v5253_v3  ;;  %v8516_v2 = vld [vmem:[%s10154_s20 + $0x10] sm:$0xff]  }
 0x4ef   : > { %v7414_v7 = vpop.f32.mrf.mxu0  ;;  %v8517_v3 = vld [vmem:[%s10154_s20 + $0x90] sm:$0xff]  }
 0x4f0   : > { %v9812_v36 = vmax.f32 %v5254_v5, 0.0  ;;  %v8518_v5 = vld [vmem:[%s10154_s20 + $0x48] sm:$0xff]  }
 0x4f1   : > { %v5256_v12 = vpop.f32.mrf.mxu0  ;;  %v8519_v7 = vld [vmem:[%s10154_s20 + $0xc8] sm:$0xff]  }
 0x4f2   : > { %v5260_v61 = vpack.c.bf16 %v9812_v36, %v9812_v36  ;;  %v8520_v12 = vld [vmem:[%s10154_s20 + $0x8] sm:$0xff]  }
 0x4f3   : > { %v7415_v16 = vpop.f32.mrf.mxu0 }
 0x4f4   : > { %7425 = vmatmul.mubr.msk.bf16.vlgmr.msra.gmra.mxu1 %vm5300_vm1, %v5260_v61  ;;  %v8522_v61 = vld [vmem:[%s10154_s20 + $0x40] sm:$0xff]  }
 0x4f5   : > { %5561 = vmatpush1.bf16.msra.mxu1 %v8446_v13  ;;  %5592 = vmatprep.mubr.bf16.mxu1 %v9113_v37  ;;  %v8521_v13 = vld [vmem:[%s10154_s20 + $0x88] sm:$0xff]   ;;  %v8524_v16 = vld [vmem:[%s10154_s20] sm:$0xff]  }
 0x4f6   : > { %5562 = vmatprep.subr.bf16.mxu1 %v8454_v14  ;;  %v8523_v14 = vld [vmem:[%s10154_s20 + $0xc0] sm:$0xff]  }
 0x4f9   : > { %5563 = vmatpush1.bf16.msra.mxu1 %v8452_v20  ;;  %v8525_v20 = vld [vmem:[%s10154_s20 + $0x80] sm:$0xff]  }
 0x4fa   : > { %5564 = vmatprep.subr.bf16.mxu1 %v8460_v21  ;;  %v5646_v21 = vpack.c.bf16 %v9775_v4, %v9775_v4  ;;  %v8532_v4 = vld [vmem:[#allocation23 + $0x40] ss:$16 sps:$4 sm:$0xff]  }
 0x4fd   : > { %5565 = vmatpush1.bf16.msra.mxu1 %v8458_v17  ;;  %v5648_v17 = vpack.c.bf16 %v9803_v30, %v9803_v30  ;;  %v8540_v30 = vld [vmem:[#allocation23 + $0x24] ss:$16 sps:$4 sm:$0xff]  }
 0x4fe   : > { %5566 = vmatprep.subr.bf16.mxu1 %v8466_v22  ;;  %v8526_v22 = vld [vmem:[#allocation23 + $0x60] ss:$16 sps:$4 sm:$0xff]  }
 0x501   : > { %5567 = vmatpush1.bf16.msra.mxu1 %v8464_v23  ;;  %v8528_v23 = vld [vmem:[#allocation23 + $0x64] ss:$16 sps:$4 sm:$0xff]  }
 0x502   : > { %5568 = vmatprep.subr.bf16.mxu1 %v8472_v24  ;;  %v8529_v24 = vld [vmem:[#allocation23 + $0x68] ss:$16 sps:$4 sm:$0xff]  }
 0x505   : > { %5569 = vmatpush1.bf16.msra.mxu1 %v8470_v25  ;;  %v8531_v25 = vld [vmem:[#allocation23 + $0x6c] ss:$16 sps:$4 sm:$0xff]  }
 0x506   : > { %5570 = vmatprep.subr.bf16.mxu1 %v8478_v26  ;;  %v8534_v26 = vld [vmem:[#allocation23 + $0x44] ss:$16 sps:$4 sm:$0xff]  }
 0x509   : > { %5571 = vmatpush1.bf16.msra.mxu1 %v8476_v27  ;;  %v8537_v27 = vld [vmem:[#allocation23 + $0x4c] ss:$16 sps:$4 sm:$0xff]  }
 0x50a   : > { %5572 = vmatprep.subr.bf16.mxu1 %v8484_v28  ;;  %v8535_v28 = vld [vmem:[#allocation23 + $0x48] ss:$16 sps:$4 sm:$0xff]  }
 0x50d   : > { %5573 = vmatpush1.bf16.msra.mxu1 %v8482_v29  ;;  %v8543_v29 = vld [vmem:[#allocation23 + $0x2c] ss:$16 sps:$4 sm:$0xff]  }
 0x50e   : > { %5574 = vmatprep.subr.bf16.mxu1 %v8490_v33  ;;  %v8538_v33 = vld [vmem:[#allocation23 + $0x20] ss:$16 sps:$4 sm:$0xff]  }
 0x511   : > { %5575 = vmatpush1.bf16.msra.mxu1 %v8488_v39  ;;  %v8544_v39 = vld [vmem:[#allocation23] ss:$16 sps:$4 sm:$0xff]  }
 0x512   : > { %7352 = vmatprep.subr.bf16.mxu1 %v8494_v49  ;;  %v8547_v49 = vld [vmem:[#allocation23 + $0x8] ss:$16 sps:$4 sm:$0xff]  }
 0x5b4   : > { %v5338_v44 = vpop.f32.mrf.mxu1 }
 0x5b5   : > { %v5339_v6 = vadd.f32 %v7189_v40, %v5338_v44 }
 0x5b6   : > { %v7426_v43 = vpop.f32.mrf.mxu1 }
 0x5b7   : > { %v5344_v41 = vmax.f32 %v5339_v6, 0.0 }
 0x5b8   : > { %v5341_v45 = vpop.f32.mrf.mxu1 }
 0x5b9   : > { %v5345_v50 = vpack.c.bf16 %v5344_v41, %v5344_v41 }
 0x5ba   : > { %v7427_v35 = vpop.f32.mrf.mxu1 }
 0x5bb   : > { %5593 = vmatmul.mubr.bf16.vlgmr.msra.gmra.mxu1 %v5345_v50  ;;  %5634 = vmatmul.mubr.bf16.vlgmr.msra.gmra.mxu0 %v5345_v50 }
 0x5bc   : > { %7353 = vmatpush3.bf16.msra.mxu1 %v8496_v46  ;;  %7375 = vmatpush3.bf16.msra.mxu0 %v8497_v48 }
 0x5bd   : > { %5945 = vmatprep.mubr.bf16.mxu1 %v5647_v9  ;;  %5985 = vmatprep.mubr.bf16.mxu0 %v5649_v47 }
 0x5be   : > { %7354 = vmatprep.subr.bf16.mxu1 %v8498_v18  ;;  %7376 = vmatprep.subr.bf16.mxu0 %v8499_v19 }
 0x5c0   : > { %7355 = vmatpush3.bf16.msra.mxu1 %v8500_v53  ;;  %7377 = vmatpush3.bf16.msra.mxu0 %v8501_v54 }
 0x5c1   : > { %7356 = vmatprep.subr.bf16.mxu1 %v8502_v11  ;;  %7378 = vmatprep.subr.bf16.mxu0 %v8503_v8 }
 0x5c4   : > { %7357 = vmatpush3.bf16.msra.mxu1 %v8504_v55  ;;  %7379 = vmatpush3.bf16.msra.mxu0 %v8505_v56 }
 0x5c5   : > { %7358 = vmatprep.subr.bf16.mxu1 %v8506_v57  ;;  %7380 = vmatprep.subr.bf16.mxu0 %v8507_v58 }
 0x5c8   : > { %7359 = vmatpush3.bf16.msra.mxu1 %v8508_v59  ;;  %7381 = vmatpush3.bf16.msra.mxu0 %v8509_v60  ;;  %v7227_v59 = vld [vmem:[#allocation22] ss:$0 sm:$0xff] }
 0x5c9   : > { %7360 = vmatprep.subr.bf16.mxu1 %v8510_v51  ;;  %7382 = vmatprep.subr.bf16.mxu0 %v8511_v52 }
 0x5cc   : > { %7361 = vmatpush3.bf16.msra.mxu1 %v8512_v62  ;;  %7383 = vmatpush3.bf16.msra.mxu0 %v8513_v63 }
 0x5cd   : > { %7362 = vmatprep.subr.bf16.mxu1 %v8514_v0  ;;  %7384 = vmatprep.subr.bf16.mxu0 %v8515_v1 }
 0x5d0   : > { %7363 = vmatpush3.bf16.msra.mxu1 %v8516_v2  ;;  %7385 = vmatpush3.bf16.msra.mxu0 %v8517_v3 }
 0x5d1   : > { %7364 = vmatprep.subr.bf16.mxu1 %v8518_v5  ;;  %7386 = vmatprep.subr.bf16.mxu0 %v8519_v7 }
 0x5d4   : > { %7365 = vmatpush3.bf16.msra.mxu1 %v8520_v12  ;;  %7387 = vmatpush3.bf16.msra.mxu0 %v8521_v13 }
 0x5d5   : > { %7366 = vmatprep.subr.bf16.mxu1 %v8522_v61  ;;  %7388 = vmatprep.subr.bf16.mxu0 %v8523_v14 }
 0x5d8   : > { %7367 = vmatpush3.bf16.msra.mxu1 %v8524_v16  ;;  %7389 = vmatpush3.bf16.msra.mxu0 %v8525_v20 }
 0x5d9   : > { %6124 = vmatprep.subr.bf16.mxu1 %v8528_v23  ;;  %6165 = vmatprep.subr.bf16.mxu0 %v8531_v25 }
 0x5db   : > { %5946 = vmatmul.mubr.bf16.vlgmr.msra.gmra.mxu1 %v5646_v21  ;;  %5986 = vmatmul.mubr.bf16.vlgmr.msra.gmra.mxu0 %v5648_v17 }
 0x5dc   : > { %6148 = vmatprep.mubr.bf16.mxu1 %v9113_v37  ;;  %6189 = vmatprep.mubr.bf16.mxu0 %v9113_v37  ;;  %v5378_v37 = vld [vmem:[#allocation20] sm:$0xf] }
 0x5dd   : > { %6125 = vmatpush1.bf16.msra.mxu1 %v8526_v22  ;;  %6166 = vmatpush1.bf16.msra.mxu0 %v8529_v24  ;;  %v5383_v40 = vrot.slane %v5378_v37, %v9693_v38  ;;  %v5391_v44 = vrot.slane %v5378_v37, %v9737_v31  ;;  %v5387_v6 = vrot.slane %v5378_v37, %v9643_v15 }
 0x5de   : > { %6126 = vmatprep.subr.bf16.mxu1 %v8534_v26  ;;  %6167 = vmatprep.subr.bf16.mxu0 %v8537_v27  ;;  %v5395_v43 = vrot.slane %v5378_v37, %v9740_v32 }
 0x5e1   : > { %6127 = vmatpush1.bf16.msra.mxu1 %v8532_v4  ;;  %6168 = vmatpush1.bf16.msra.mxu0 %v8535_v28 }
 0x5e2   : > { %6128 = vmatprep.subr.bf16.mxu1 %v8540_v30  ;;  %6169 = vmatprep.subr.bf16.mxu0 %v8543_v29 }
 0x5e5   : > { %6129 = vmatpush1.bf16.msra.mxu1 %v8538_v33  ;;  %6170 = vmatpush1.bf16.msra.mxu0 %v8541_v34 }
 0x5e6   : > { %6130 = vmatprep.subr.bf16.mxu1 %v8546_v10  ;;  %6171 = vmatprep.subr.bf16.mxu0 %v8549_v42 }
 0x5e9   : > { %6131 = vmatpush1.bf16.msra.mxu1 %v8544_v39  ;;  %6172 = vmatpush1.bf16.msra.mxu0 %v8547_v49 }
 0x67b   : > { %v5594_v41 = vpop.f32.mrf.mxu1  ;;  %v5635_v45 = vpop.f32.mrf.mxu0 }
 0x67c   : > { %v5595_v46 = vadd.f32 %v5594_v41, %v5383_v40  ;;  %v5636_v48 = vadd.f32 %v5635_v45, %v5391_v44 }
 0x67d   : > { %v5596_v50 = vpop.f32.mrf.mxu1  ;;  %v5637_v35 = vpop.f32.mrf.mxu0 }
 0x67e   : > { %v5642_v18 = vmax.f32 %v5595_v46, 0.0  ;;  %v5644_v19 = vmax.f32 %v5636_v48, 0.0  ;;  %v5597_v9 = vadd.f32 %v5596_v50, %v5387_v6  ;;  %v5638_v47 = vadd.f32 %v5637_v35, %v5395_v43 }
 0x67f   : > { %v5598_v53 = vpop.f32.mrf.mxu1  ;;  %v5639_v54 = vpop.f32.mrf.mxu0 }
 0x680   : > { %6216 = vst [vmem:[%s9930_s1] sm:$0xff] %v5642_v18  ;;  %6218 = vst [vmem:[%s9930_s1 + $0x10] sm:$0xff] %v5644_v19  ;;  %v5643_v11 = vmax.f32 %v5597_v9, 0.0  ;;  %v5645_v8 = vmax.f32 %v5638_v47, 0.0 }
 0x681   : > { %v5599_v55 = vpop.f32.mrf.mxu1  ;;  %v5640_v56 = vpop.f32.mrf.mxu0 }
 0x682   : > { %6217 = vst [vmem:[%s9930_s1 + $0x8] sm:$0xff] %v5643_v11  ;;  %6219 = vst [vmem:[%s9930_s1 + $0x18] sm:$0xff] %v5645_v8 }
 0x69b   : > { %v7368_v57 = vpop.f32.mrf.mxu1  ;;  %v7390_v58 = vpop.f32.mrf.mxu0 }
 0x69d   : > { %v7369_v60 = vpop.f32.mrf.mxu1  ;;  %v7391_v51 = vpop.f32.mrf.mxu0 }
 0x69e   : > { %v7370_v52 = vadd.f32 %v7369_v60, %v7368_v57  ;;  %v7392_v1 = vadd.f32 %v7391_v51, %v7390_v58 }
 0x69f   : > { %v7371_v62 = vpop.f32.mrf.mxu1  ;;  %v7393_v63 = vpop.f32.mrf.mxu0 }
 0x6a0   : > { %v5948_v0 = vadd.f32 %v7370_v52, %v7227_v59 }
 0x6a1   : > { %v7372_v2 = vpop.f32.mrf.mxu1  ;;  %v7394_v3 = vpop.f32.mrf.mxu0 }
 0x6a2   : > { %v5988_v5 = vadd.f32 %v7392_v1, %v5948_v0 }
 0x6a4   : > { %v5993_v7 = vmax.f32 %v5988_v5, 0.0 }
 0x6a6   : > { %v5994_v12 = vpack.c.bf16 %v5993_v7, %v5993_v7  ;;  %6203 = vrot.lane.b32.xlu0 %v5993_v7, %s9114_s21  ;;  %s8946_s21 = sshll.u32 %s9115_s23, 4  ;;  %s8947_s21 = int_to_ptr.vmem [resolvable:$false] %s8946_s21 }
 0x6a7   : > { %s8948_s8 = scalar_lea.vmem %s8947_s21, 1024  ;;  %p8949_p9 = scmp.lt.s32.totalorder %s6253_s15, %s8947_s21 }
 0x6a8   : > { %7276 = vmatmul.mubr.msk.bf16.vlgmr.msra.gmra.mxu1 %vm5300_vm1, %v5994_v12  ;;  %7277 = vmatmul.mubr.msk.bf16.vlgmr.msra.gmra.mxu0 %vm5300_vm1, %v5994_v12  ;;  %p8950_p8 = scmp.lt.s32.totalorder %s8948_s8, %s8942_s5 }
 0x6aa   : > { %p8951_p10 = por %p8950_p8, %p8949_p9 }
 0x6ac   : > { %p8952_p11 = pnand %p8951_p10, %p8945_p1 }
 0x6ae   : > { %8955 = shalt.err (!%p8952_p11)
}
 0x6af   : > { %s8956_s10 = scalar_lea.hbm %s6250_s14, 512  ;;  %s8960_s0 = scalar_lea.hbm %s10155_s27, 1024 }
 0x6b0   : > { %p8957_p12 = scmp.ne.s32.totalorder %s6250_s14, %s8956_s10  ;;  %p8961_p3 = scmp.lt.s32.totalorder %s6250_s14, %s10155_s27 }
 0x6b1   : > { %p8962_p7 = scmp.lt.s32.totalorder %s8960_s0, %s8956_s10 }
 0x6b2   : > { %p8958_p5 = pnand %p8957_p12, %p10156_p13 }
 0x6b3   : > { %p8963_p6 = por %p8962_p7, %p8961_p3 }
 0x6b4   : > { %p8959_p4 = pneg %p8958_p5 }
 0x6b6   : > { %p8964_p0 = pnand %p8963_p6, %p8959_p4 }
 0x6b8   : > { %8967 = shalt.err (!%p8964_p0)
}
 0x6b9   : > { %7487 = dma.vmem_to_hbm [thread:$0]  (%p10156_p13), %s6253_s15, 512, %s6250_s14, %s6225_s2   ;;  %v6011_v14 = vld [vmem:[#allocation25] sm:$0xf] }
 0x6ba   : > { %s6634_s8 = sshll.u32 %s9548_s9, 3  ;;  %s10157_s21 = sld [smem:[#allocation59_spill]]  ;;  %v6016_v16 = vrot.slane %v6011_v14, %v9693_v38  ;;  %v6024_v20 = vrot.slane %v6011_v14, %v9737_v31  ;;  %v6020_v21 = vrot.slane %v6011_v14, %v9643_v15  ;;  %v6028_v17 = vrot.slane %v6011_v14, %v9740_v32 }
 0x6bb   : > { %s6229_s10 = sand.u32 1, %s9259_s26   ;;  %s960_s17 = scalar_lea.vmem [#allocation27], %s9773_s11 }
 0x6bc   : > { %s6266_s9 = sshll.u32 %s960_s17, 4  ;;  %s10158_s15 = sld [smem:[#allocation61_spill]]  ;;  %s9978_s9 = int_to_ptr.vmem [resolvable:$true] %s6266_s9 }
 0x6bd   : > { %s10159_s13 = sld [smem:[#allocation62_spill]]  ;;  %s9988_s0 = scalar_lea.sflag [#allocation28], %s6229_s10 }
 0x6be   : > { %s8968_s16 = scalar_lea.vmem %s9978_s9, 512 }
 0x6bf   : > { %p8969_p2 = scmp.ne.s32.totalorder %s9978_s9, %s8968_s16 }
 0x6c0   : > { %s981_s18 = scalar_lea.vmem %s10157_s21, %s6634_s8  ;;  %s9116_s8 = smov [#allocation27]  }
 0x6c1   : > { %p8970_p1 = pnand %p8969_p2, %p10156_p13  ;;  %s8972_s5 = sshll.u32 %s9116_s8, 4  ;;  %s8973_s5 = int_to_ptr.vmem [resolvable:$false] %s8972_s5 }
 0x6c2   : > { %s9976_s2 = scalar_lea.hbm %s10158_s15, %s9939_s7  ;;  %s8974_s23 = scalar_lea.vmem %s8973_s5, 1024 }
 0x6c3   : > { %s9986_s12 = scalar_lea.hbm %s10159_s13, %s9939_s7  ;;  %p8971_p9 = pneg %p8970_p1 }
 0x6c4   : > { %p8975_p8 = scmp.lt.s32.totalorder %s9978_s9, %s8973_s5  ;;  %p8976_p10 = scmp.lt.s32.totalorder %s8974_s23, %s8968_s16 }
 0x6c6   : > { %p8977_p11 = por %p8976_p10, %p8975_p8 }
 0x6c8   : > { %p8978_p12 = pnand %p8977_p11, %p8971_p9 }
 0x718   : > { %v6204_v13 = vpop.permute.xlu0 %6203 }
 0x719   : > { %v6206_v61 = vsel %vm5300_vm1, %v9812_v36, %v6204_v13 }
 0x71a   : > { %6207 = vst [vmem:[%s981_s18] sm:$0xff] %v6206_v61  ;;  %s6280_s18 = sshll.u32 %s9930_s1, 4  ;;  %s9980_s18 = int_to_ptr.vmem [resolvable:$true] %s6280_s18 }
 0x768   : > { %v6150_v22 = vpop.f32.mrf.mxu1  ;;  %v6191_v23 = vpop.f32.mrf.mxu0 }
 0x769   : > { %v6151_v24 = vadd.f32 %v6150_v22, %v6016_v16  ;;  %v6192_v25 = vadd.f32 %v6191_v23, %v6024_v20 }
 0x76a   : > { %v6152_v26 = vpop.f32.mrf.mxu1  ;;  %v6193_v27 = vpop.f32.mrf.mxu0 }
 0x76b   : > { %v6198_v36 = vmax.f32 %v6151_v24, 0.0  ;;  %v6200_v38 = vmax.f32 %v6192_v25, 0.0  ;;  %v6153_v4 = vadd.f32 %v6152_v26, %v6020_v21  ;;  %v6194_v31 = vadd.f32 %v6193_v27, %v6028_v17 }
 0x76c   : > { %v6154_v28 = vpop.f32.mrf.mxu1  ;;  %v6195_v15 = vpop.f32.mrf.mxu0 }
 0x76d   : > { %6212 = vst [vmem:[%s960_s17] sm:$0xff] %v6198_v36  ;;  %6214 = vst [vmem:[%s960_s17 + $0x10] sm:$0xff] %v6200_v38  ;;  %v6199_v32 = vmax.f32 %v6153_v4, 0.0  ;;  %v6201_v30 = vmax.f32 %v6194_v31, 0.0 }
 0x76e   : > { %v6155_v29 = vpop.f32.mrf.mxu1  ;;  %v6196_v33 = vpop.f32.mrf.mxu0 }
 0x76f   : > { %6213 = vst [vmem:[%s960_s17 + $0x8] sm:$0xff] %v6199_v32  ;;  %6215 = vst [vmem:[%s960_s17 + $0x18] sm:$0xff] %v6201_v30 }
 0x770   : > { %8981 = shalt.err (!%p8978_p12)
}
 0x771   : > { %s8982_s7 = scalar_lea.hbm %s9976_s2, 512  ;;  %s8986_s17 = scalar_lea.hbm %s10158_s15, 1024 }
 0x772   : > { %p8983_p5 = scmp.ne.s32.totalorder %s9976_s2, %s8982_s7  ;;  %p8987_p7 = scmp.lt.s32.totalorder %s9976_s2, %s10158_s15 }
 0x773   : > { %p8988_p6 = scmp.lt.s32.totalorder %s8986_s17, %s8982_s7 }
 0x774   : > { %p8984_p4 = pnand %p8983_p5, %p10156_p13 }
 0x775   : > { %p8989_p0 = por %p8988_p6, %p8987_p7 }
 0x776   : > { %p8985_p3 = pneg %p8984_p4 }
 0x778   : > { %p8990_p2 = pnand %p8989_p0, %p8985_p3 }
 0x77a   : > { %8993 = shalt.err (!%p8990_p2)
}
 0x77b   : > { %7488 = dma.vmem_to_hbm [thread:$0]  (%p10156_p13), %s9978_s9, 512, %s9976_s2, %s9988_s0  }
 0x77c   : > { %s8994_s11 = scalar_lea.vmem %s9980_s18, 512  ;;  %s9117_s1 = smov [#allocation29]  }
 0x77d   : > { %p8995_p1 = scmp.ne.s32.totalorder %s9980_s18, %s8994_s11  ;;  %s8998_s16 = sshll.u32 %s9117_s1, 4  ;;  %s8999_s16 = int_to_ptr.vmem [resolvable:$false] %s8998_s16 }
 0x77e   : > { %s9000_s8 = scalar_lea.vmem %s8999_s16, 1024  ;;  %p9001_p10 = scmp.lt.s32.totalorder %s9980_s18, %s8999_s16 }
 0x77f   : > { %p8996_p9 = pnand %p8995_p1, %p10156_p13  ;;  %p9002_p11 = scmp.lt.s32.totalorder %s9000_s8, %s8994_s11 }
 0x781   : > { %p8997_p8 = pneg %p8996_p9  ;;  %p9003_p12 = por %p9002_p11, %p9001_p10 }
 0x783   : > { %p9004_p5 = pnand %p9003_p12, %p8997_p8 }
 0x785   : > { %9007 = shalt.err (!%p9004_p5)
}
 0x786   : > { %s9008_s5 = scalar_lea.hbm %s9986_s12, 512  ;;  %s9012_s23 = scalar_lea.hbm %s10159_s13, 1024 }
 0x787   : > { %p9009_p4 = scmp.ne.s32.totalorder %s9986_s12, %s9008_s5  ;;  %p9013_p6 = scmp.lt.s32.totalorder %s9986_s12, %s10159_s13 }
 0x788   : > { %p9014_p0 = scmp.lt.s32.totalorder %s9012_s23, %s9008_s5 }
 0x789   : > { %p9010_p3 = pnand %p9009_p4, %p10156_p13 }
 0x78a   : > { %p9015_p2 = por %p9014_p0, %p9013_p6 }
 0x78b   : > { %p9011_p7 = pneg %p9010_p3 }
 0x78d   : > { %p9016_p1 = pnand %p9015_p2, %p9011_p7 }
 0x78f   : > { %9019 = shalt.err (!%p9016_p1)
}
 0x790   : > { %7489 = dma.vmem_to_hbm [thread:$0]  (%p10156_p13), %s9980_s18, 512, %s9986_s12, %s9988_s0  }
 0x791 PF: > { %s6299_s10 = sand.u32 1, %s9078_s4   ;;  %p10160_p9 = scmp.ne.s32.totalorder %s10131_s6, 0 }
 0x792   : > { %p10161_p8 = scmp.ge.s32.totalorder %s9090_s25, 2  ;;  %s6300_s17 = scalar_lea.sflag [#allocation4], %s6299_s10 }
 0x794   : > { %p7541_p10 = pnand %p10161_p8, %p10160_p9 }
 0x796   : > { %p7542_p11 = pneg %p7541_p10 }
 0x798   : > { %9069 = dma.done.wait (%p7542_p11), %s6300_s17, 512  }
 0x799   : > { %9071 = vsyncadd (%p7542_p11), %s6300_s17, 4294966784  ;;  %s10162_s14 = sadd.s32 4294967294, %s9090_s25  }
 0x79a   : > { %s6308_s26 = sand.u32 1, %s10162_s14  }
 0x79b   : > { %s6309_s28 = scalar_lea.sflag [#allocation28], %s6308_s26 }
 0x79c   : > { %9073 = dma.done.wait (%p7542_p11), %s6309_s28, 1024  }
 0x79d   : > { %9075 = vsyncadd (%p7542_p11), %s6309_s28, 4294966272  ;;  %p47_p13 = scmp.ge.s32.totalorder %s9405_s3, 4   ;;  %s10163_s4 = smov %s9082_s30 }
 0x79e   : > { %s10164_s30 = smov %s9086_s24  ;;  %s10165_s24 = smov %s9416_s22 }
 0x79f   : > { %s10166_s25 = smov %s9405_s3  ;;  %49 = sbr.rel (!%p47_p13) target bundleno = 38 (0x26), region = 251 }
 0x7a4   :  { %6323 = vsyncpa [#allocation3], 1 }
 0x7a5   :  { %6325 = vsyncpa [#allocation3 + $0x1], 1 }
 0x7a6   :  { %6326 = vsyncpa [#allocation6], 1 }
 0x7a7   :  { %6327 = vsyncpa [#allocation9], 1 }
 0x7a8   :  { %6328 = vsyncpa [#allocation12], 1 }
 0x7a9   :  { %6329 = vsyncpa [#allocation15], 1 }
 0x7aa   :  { %6330 = vsyncpa [#allocation18], 1 }
 0x7ab   :  { %6331 = vsyncpa [#allocation21], 1 }
 0x7ac   :  { %6332 = vsyncpa [#allocation24], 1 }
 0x7ad   :  { %6333 = vsyncpa [#allocation4], 1 }
 0x7ae   :  { %6335 = vsyncpa [#allocation4 + $0x1], 1 }
 0x7af   :  { %6336 = vsyncpa [#allocation28], 1 }
 0x7b0   :  { %6338 = vsyncpa [#allocation28 + $0x1], 1 }

</bundles_post_ra>
